<compile_context>
chip_gen: v5e
topology: v5e:2x2
jax: 0.10.0
libtpu: 0.0.40
codegen_flags: <defaults>
</compile_context>

<pallas_src>
import functools
import math

import jax
import jax.numpy as jnp
from jax import lax
from jax.experimental import pallas as pl
from jax.experimental.pallas import tpu as pltpu


# ----------------------------- backbone stand-in -----------------------------

def _linear_relu_kernel(x_ref, w_ref, b_ref, o_ref):
    y = jnp.dot(x_ref[...], w_ref[...], preferred_element_type=jnp.float32)
    o_ref[...] = jnp.maximum(y + b_ref[...], 0.0).astype(o_ref.dtype)


def backbone_linear_relu(x, w, b, *, row_tile=256):
    # TODO(synk): stand-in for the external gvp.models.structure_encoder backbone.
    M, K = x.shape
    N = w.shape[1]
    Mp = ((M + row_tile - 1) // row_tile) * row_tile
    xp = jnp.pad(x, ((0, Mp - M), (0, 0)))
    out = pl.pallas_call(
        _linear_relu_kernel,
        out_shape=jax.ShapeDtypeStruct((Mp, N), jnp.float32),
        grid=(Mp // row_tile,),
        in_specs=[pl.BlockSpec((row_tile, K), lambda i: (i, 0)),
                  pl.BlockSpec((K, N), lambda i: (0, 0)),
                  pl.BlockSpec((1, N), lambda i: (0, 0))],
        out_specs=pl.BlockSpec((row_tile, N), lambda i: (i, 0)),
        compiler_params=pltpu.CompilerParams(dimension_semantics=("parallel",)),
    )(xp, w, b.reshape(1, N))
    return out[:M]


# ----------------------------- fused encoder + pool -----------------------------

def _layernorm(x, g, b, eps=1e-5):
    mu = jnp.mean(x, axis=-1, keepdims=True)
    xc = x - mu
    var = jnp.mean(xc * xc, axis=-1, keepdims=True)
    return xc * lax.rsqrt(var + eps) * g + b


def _fused_encoder_kernel(x_ref, pe_ref,
                          wqkv_ref, bqkv_ref, wo_ref, bo_ref,
                          ln1_g_ref, ln1_b_ref,
                          w1_ref, b1_ref, w2_ref, b2_ref,
                          ln2_g_ref, ln2_b_ref,
                          o_ref, x_scr,
                          *, nhead, num_graphs, pos_block, max_length,
                          approx_softmax=True):
    layer = pl.program_id(1)
    num_layers = pl.num_programs(1)
    B = num_graphs
    LB = pos_block
    Rb, D = x_scr.shape            # Rb = LB * B, rows ordered (position, graph)
    dh = D // nhead
    scale = 1.0 / math.sqrt(dh)

    # First layer of each position block: load rows + positional encoding.
    # pe is indexed by GRAPH index (batch_first=False quirk of the reference) and
    # broadcast over positions; rows are position-major with graph fastest.
    @pl.when(layer == 0)
    def _():
        x_scr[...] = x_ref[...] + jnp.tile(pe_ref[...], (LB, 1))

    x = x_scr[...]                                            # (Rb, D) f32

    # ---- self-attention: LB independent (B,B) blocks, batched over positions ----
    qkv = jnp.dot(x.astype(jnp.bfloat16), wqkv_ref[0],
                  preferred_element_type=jnp.float32) + bqkv_ref[0]    # (Rb, 3D)

    o_heads = []
    for h in range(nhead):                                    # static unroll over heads
        q = qkv[:, h * dh:(h + 1) * dh].reshape(LB, B, dh).astype(jnp.bfloat16)
        k = qkv[:, D + h * dh:D + (h + 1) * dh].reshape(LB, B, dh).astype(jnp.bfloat16)
        v = qkv[:, 2 * D + h * dh:2 * D + (h + 1) * dh].reshape(LB, B, dh).astype(jnp.bfloat16)
        # (LB, B, B) scores: batch dim = position, contraction = head dim
        s = lax.dot_general(q, k, (((2,), (2,)), ((0,), (0,))),
                            preferred_element_type=jnp.float32) * scale
        m = jnp.max(s, axis=-1, keepdims=True)
        p = jnp.exp(s - m)
        denom = jnp.sum(p, axis=-1, keepdims=True)
        if approx_softmax:
            # ~1e-3 rel. error vs exact softmax; set approx_softmax=False for parity tests.
            p = p * pl.reciprocal(denom, approx=True)
        else:
            p = p / denom
        o_h = lax.dot_general(p.astype(jnp.bfloat16), v, (((2,), (1,)), ((0,), (0,))),
                              preferred_element_type=jnp.float32)      # (LB, B, dh)
        o_heads.append(o_h.reshape(Rb, dh))

    attn = jnp.concatenate(o_heads, axis=-1)                  # (Rb, D) lane concat
    attn = jnp.dot(attn.astype(jnp.bfloat16), wo_ref[0],      # single D-deep out-proj
                   preferred_element_type=jnp.float32) + bo_ref[0]

    # ---- post-norm TransformerEncoderLayer (eval mode: dropout = identity) ----
    h1 = _layernorm(x + attn, ln1_g_ref[0], ln1_b_ref[0])
    ff = jnp.dot(h1.astype(jnp.bfloat16), w1_ref[0],
                 preferred_element_type=jnp.float32) + b1_ref[0]
    ff = jnp.maximum(ff, 0.0)
    ff = jnp.dot(ff.astype(jnp.bfloat16), w2_ref[0],
                 preferred_element_type=jnp.float32) + b2_ref[0]
    x_new = _layernorm(h1 + ff, ln2_g_ref[0], ln2_b_ref[0])
    x_scr[...] = x_new                                        # carry to next layer

    # ---- last layer: partial mean pool (zero padding included, as torch.mean) ----
    @pl.when(layer == num_layers - 1)
    def _():
        pooled = jnp.sum(x_new.reshape(LB, B, D), axis=0) * (1.0 / max_length)
        o_ref[...] = pooled.reshape(1, B, D).astype(o_ref.dtype)


def _default_pos_block(max_length, num_graphs, target_rows=512):
    for cand in range(max_length, 0, -1):
        if max_length % cand:
            continue
        rows = cand * num_graphs
        if rows % 8 == 0 and rows <= target_rows:
            return cand
    return max_length


def fused_transformer_pool(x_merged, pe, layers, *, nhead, num_graphs, max_length,
                           pos_block=None):
    R, D = x_merged.shape
    B = num_graphs
    num_layers = layers['wqkv'].shape[0]
    dim_ff = layers['w1'].shape[-1]

    if pos_block is None:
        pos_block = _default_pos_block(max_length, num_graphs)
    assert max_length % pos_block == 0, "pos_block must divide max_length"
    rows_per_block = pos_block * B
    assert rows_per_block % 8 == 0 or rows_per_block == R, \
        "rows per position block must be sublane-aligned (multiple of 8) or full"
    num_pos_blocks = max_length // pos_block

    kern = functools.partial(_fused_encoder_kernel, nhead=nhead, num_graphs=B,
                             pos_block=pos_block, max_length=max_length)

    def wmap(pb, l):          # stream only the current layer's weights into VMEM
        return (l, 0, 0)

    grid_spec = pltpu.PrefetchScalarGridSpec(
        num_scalar_prefetch=0,
        grid=(num_pos_blocks, num_layers),
        in_specs=[
            pl.BlockSpec((rows_per_block, D), lambda pb, l: (pb, 0)),   # x (position-major)
            pl.BlockSpec((B, D), lambda pb, l: (0, 0)),                 # pe (graph-indexed)
            pl.BlockSpec((1, D, 3 * D), wmap),     # wqkv
            pl.BlockSpec((1, 1, 3 * D), wmap),     # bqkv
            pl.BlockSpec((1, D, D), wmap),         # wo
            pl.BlockSpec((1, 1, D), wmap),         # bo
            pl.BlockSpec((1, 1, D), wmap),         # ln1_g
            pl.BlockSpec((1, 1, D), wmap),         # ln1_b
            pl.BlockSpec((1, D, dim_ff), wmap),    # w1
            pl.BlockSpec((1, 1, dim_ff), wmap),    # b1
            pl.BlockSpec((1, dim_ff, D), wmap),    # w2
            pl.BlockSpec((1, 1, D), wmap),         # b2
            pl.BlockSpec((1, 1, D), wmap),         # ln2_g
            pl.BlockSpec((1, 1, D), wmap),         # ln2_b
        ],
        out_specs=pl.BlockSpec((1, B, D), lambda pb, l: (pb, 0, 0)),
        scratch_shapes=[pltpu.VMEM((rows_per_block, D), jnp.float32)],
    )

    out_partial = pl.pallas_call(
        kern,
        out_shape=jax.ShapeDtypeStruct((num_pos_blocks, B, D), jnp.float32),
        grid_spec=grid_spec,
        compiler_params=pltpu.CompilerParams(
            dimension_semantics=("parallel", "arbitrary"),
            vmem_limit_bytes=48 * 1024 * 1024),
    )(x_merged, pe,
      layers['wqkv'], layers['bqkv'], layers['wo'], layers['bo'],
      layers['ln1_g'], layers['ln1_b'],
      layers['w1'], layers['b1'], layers['w2'], layers['b2'],
      layers['ln2_g'], layers['ln2_b'])

    # combine partial per-position-block sums -> mean over max_length
    return out_partial.sum(axis=0)                             # (B, D)


# ----------------------------- model glue (plain JAX) -----------------------------

def merge_features_position_major(emb, batch_ids, num_graphs, max_length):
    # separate_features + merge_features, laid out POSITION-MAJOR (row = pos*B + graph)
    # so rows that attend to each other (same position, batch_first=False) are contiguous
    # and attention becomes L independent (B,B) blocks.
    # TODO(synk): fold this scatter into the fused kernel's input DMA via scalar prefetch.
    n = emb.shape[0]
    counts = jnp.bincount(batch_ids, length=num_graphs)
    offsets = jnp.concatenate(
        [jnp.zeros((1,), counts.dtype), jnp.cumsum(counts)[:-1]]).astype(jnp.int32)
    local_idx = jnp.arange(n, dtype=jnp.int32) - offsets[batch_ids]
    rows = local_idx * num_graphs + batch_ids
    out = jnp.zeros((max_length * num_graphs, emb.shape[1]), emb.dtype)
    return out.at[rows].set(emb)


def gvp_contrastive_forward(params, node_s, batch_ids, *, num_graphs, max_length,
                            nhead, n_pos, n_neg, pos_block=None):
    # backbone (stand-in) -> residue embeddings
    emb = backbone_linear_relu(node_s, params['bb_w'], params['bb_b'])   # (N, D)

    # separate + merge (zero padded), position-major layout
    x = merge_features_position_major(emb, batch_ids, num_graphs, max_length)  # (L*B, D)

    # PositionalEncoding buffer pe[:B] indexed by graph index, broadcast over positions
    pe = params['pe_table'][:num_graphs]                                 # (B, D)

    # fused: PE add + TransformerEncoder + mean over max_length
    graph_feat = fused_transformer_pool(
        x, pe, params['layers'], nhead=nhead, num_graphs=num_graphs,
        max_length=max_length, pos_block=pos_block)                      # (B, D)

    # reorganize_batch: [bsz * n_all, D] -> [bsz, n_all, D]
    n_all = 1 + n_pos + n_neg
    assert num_graphs % n_all == 0, "batch not divisible by 1 + n_pos + n_neg"
    D = graph_feat.shape[-1]
    return graph_feat.reshape(num_graphs // n_all, n_all, D)


# ----------------------------- parameter init -----------------------------

def sinusoidal_pe(max_len, d_model):
    position = jnp.arange(max_len, dtype=jnp.float32)[:, None]
    div_term = jnp.exp(jnp.arange(0, d_model, 2, dtype=jnp.float32)
                       * (-math.log(10000.0) / d_model))
    ang = position * div_term
    pe = jnp.zeros((max_len, d_model), jnp.float32)
    pe = pe.at[:, 0::2].set(jnp.sin(ang))
    pe = pe.at[:, 1::2].set(jnp.cos(ang))
    return pe


def init_params(key, *, node_s_dim, dim_mlp, dim_ff, num_layers, pe_max_len):
    keys = jax.random.split(key, 32)
    ki = iter(list(keys))

    def nrm(shape, s=0.1):
        return jax.random.normal(next(ki), shape, jnp.float32) * s

    params = {
        'bb_w': nrm((node_s_dim, dim_mlp)),
        'bb_b': nrm((dim_mlp,), 0.01),
        'pe_table': sinusoidal_pe(pe_max_len, dim_mlp),
    }
    # NOTE: weights assumed pre-transposed vs. PyTorch storage ((in, out) layout);
    # matmul weights stored bf16, biases / layernorm params stay f32.
    params['layers'] = {
        'wqkv': nrm((num_layers, dim_mlp, 3 * dim_mlp)).astype(jnp.bfloat16),
        'bqkv': nrm((num_layers, 1, 3 * dim_mlp), 0.01),
        'wo':   nrm((num_layers, dim_mlp, dim_mlp)).astype(jnp.bfloat16),
        'bo':   nrm((num_layers, 1, dim_mlp), 0.01),
        'ln1_g': jnp.ones((num_layers, 1, dim_mlp), jnp.float32),
        'ln1_b': jnp.zeros((num_layers, 1, dim_mlp), jnp.float32),
        'w1':   nrm((num_layers, dim_mlp, dim_ff)).astype(jnp.bfloat16),
        'b1':   nrm((num_layers, 1, dim_ff), 0.01),
        'w2':   nrm((num_layers, dim_ff, dim_mlp)).astype(jnp.bfloat16),
        'b2':   nrm((num_layers, 1, dim_mlp), 0.01),
        'ln2_g': jnp.ones((num_layers, 1, dim_mlp), jnp.float32),
        'ln2_b': jnp.zeros((num_layers, 1, dim_mlp), jnp.float32),
    }
    return params


# ----------------------------- main -----------------------------

if __name__ == "__main__":
    NODE_S_DIM = 6          # node_in_dim[0] (v1, no foldseek)
    DIM_MLP = 32            # node_h_dim[0]
    NHEAD = 4               # transformer_num_heads
    DIM_FF = 2048           # nn.TransformerEncoderLayer default dim_feedforward
    NUM_TF_LAYERS = 2       # transformer_num_layers
    MAX_LENGTH = 8          # esm_encoder.max_length
    POS_BLOCK = 4           # positions per grid block (exercises the 2x2 grid)
    N_POS, N_NEG = 0, 1     # contrastive_learning.n_pos / n_neg -> n_all = 2
    NUM_GRAPHS = 2
    COUNTS = (7, 5)         # nodes per graph (<= MAX_LENGTH)
    N_NODES = sum(COUNTS)

    key = jax.random.PRNGKey(0)
    k_params, k_nodes = jax.random.split(key)

    node_s = jax.random.normal(k_nodes, (N_NODES, NODE_S_DIM), jnp.float32)
    batch_ids = jnp.concatenate(
        [jnp.full((c,), i, jnp.int32) for i, c in enumerate(COUNTS)])

    params = init_params(k_params, node_s_dim=NODE_S_DIM, dim_mlp=DIM_MLP,
                         dim_ff=DIM_FF, num_layers=NUM_TF_LAYERS,
                         pe_max_len=max(NUM_GRAPHS, 16))

    fwd = jax.jit(functools.partial(
        gvp_contrastive_forward, num_graphs=NUM_GRAPHS, max_length=MAX_LENGTH,
        nhead=NHEAD, n_pos=N_POS, n_neg=N_NEG, pos_block=POS_BLOCK))

    out = fwd(params, node_s, batch_ids)
    jax.block_until_ready(out)
    n_all = 1 + N_POS + N_NEG
    assert out.shape == (NUM_GRAPHS // n_all, n_all, DIM_MLP)
    assert out.dtype == jnp.float32
    assert bool(jnp.all(jnp.isfinite(out)))
    print("KERNEL_OK")
</pallas_src>

<mosaic_0001>
module attributes {stable_mosaic.version = 11 : i64} {
  func.func @_linear_relu_kernel(%arg0: i32, %arg1: memref<256x6xf32, #tpu.memory_space<vmem>>, %arg2: memref<6x32xf32, #tpu.memory_space<vmem>>, %arg3: memref<1x32xf32, #tpu.memory_space<vmem>>, %arg4: memref<256x32xf32, #tpu.memory_space<vmem>>) attributes {dimension_semantics = [#tpu.dimension_semantics<parallel>], iteration_bounds = array<i64: 1>, scalar_prefetch = 0 : i64, scratch_operands = 0 : i64, tpu.core_type = #tpu.core_type<tc>, window_params = [{transform_indices = @transform_0, window_bounds = array<i64: 256, 6>}, {pipeline_mode = #tpu.pipeline_mode<synchronous>, transform_indices = @transform_1, window_bounds = array<i64: 6, 32>}, {pipeline_mode = #tpu.pipeline_mode<synchronous>, transform_indices = @transform_2, window_bounds = array<i64: 1, 32>}, {transform_indices = @transform_3, window_bounds = array<i64: 256, 32>}]} {
    %c0 = arith.constant 0 : index
    %c0_0 = arith.constant 0 : index
    %0 = vector.load %arg1[%c0, %c0_0] : memref<256x6xf32, #tpu.memory_space<vmem>>, vector<256x6xf32>
    %c0_1 = arith.constant 0 : index
    %c0_2 = arith.constant 0 : index
    %1 = vector.load %arg2[%c0_1, %c0_2] : memref<6x32xf32, #tpu.memory_space<vmem>>, vector<6x32xf32>
    %cst = arith.constant dense<0.000000e+00> : vector<256x32xf32>
    %2 = tpu.matmul %0, %1, %cst {dimension_numbers = #tpu.dot_dimension_numbers<[1], [0], [0], [1], [0, 0, 1, 1], [], []>} : vector<256x6xf32>, vector<6x32xf32>, vector<256x32xf32> -> vector<256x32xf32>
    %c0_3 = arith.constant 0 : index
    %c0_4 = arith.constant 0 : index
    %3 = vector.load %arg3[%c0_3, %c0_4] : memref<1x32xf32, #tpu.memory_space<vmem>>, vector<1x32xf32>
    %4 = vector.broadcast %3 : vector<1x32xf32> to vector<256x32xf32>
    %5 = arith.addf %2, %4 : vector<256x32xf32>
    %cst_5 = arith.constant 0.000000e+00 : f32
    %6 = vector.broadcast %cst_5 : f32 to vector<256x32xf32>
    %7 = arith.maximumf %5, %6 : vector<256x32xf32>
    %c0_6 = arith.constant 0 : index
    %c0_7 = arith.constant 0 : index
    %8 = vector.load %arg4[%c0_6, %c0_7] : memref<256x32xf32, #tpu.memory_space<vmem>>, vector<256x32xf32>
    tpu.vector_store %arg4[%c0_6, %c0_7], %7 {strides = array<i32>} : memref<256x32xf32, #tpu.memory_space<vmem>>, vector<256x32xf32>,
    return
  }
  func.func @transform_0(%arg0: i32) -> (i32, i32) {
    %c0_i32 = arith.constant 0 : i32
    %c0_i32_0 = arith.constant 0 : i32
    return %arg0, %c0_i32 : i32, i32
  }
  func.func @transform_1(%arg0: i32) -> (i32, i32) {
    %c0_i32 = arith.constant 0 : i32
    %c0_i32_0 = arith.constant 0 : i32
    %c0_i32_1 = arith.constant 0 : i32
    return %c0_i32, %c0_i32_0 : i32, i32
  }
  func.func @transform_2(%arg0: i32) -> (i32, i32) {
    %c0_i32 = arith.constant 0 : i32
    %c0_i32_0 = arith.constant 0 : i32
    %c0_i32_1 = arith.constant 0 : i32
    return %c0_i32, %c0_i32_0 : i32, i32
  }
  func.func @transform_3(%arg0: i32) -> (i32, i32) {
    %c0_i32 = arith.constant 0 : i32
    %c0_i32_0 = arith.constant 0 : i32
    return %arg0, %c0_i32 : i32, i32
  }
}

module attributes {stable_mosaic.version = 11 : i64} {
  func.func @_fused_encoder_kernel(%arg0: i32, %arg1: i32, %arg2: memref<8x32xf32, #tpu.memory_space<vmem>>, %arg3: memref<2x32xf32, #tpu.memory_space<vmem>>, %arg4: memref<1x32x96xbf16, #tpu.memory_space<vmem>>, %arg5: memref<1x1x96xf32, #tpu.memory_space<vmem>>, %arg6: memref<1x32x32xbf16, #tpu.memory_space<vmem>>, %arg7: memref<1x1x32xf32, #tpu.memory_space<vmem>>, %arg8: memref<1x1x32xf32, #tpu.memory_space<vmem>>, %arg9: memref<1x1x32xf32, #tpu.memory_space<vmem>>, %arg10: memref<1x32x2048xbf16, #tpu.memory_space<vmem>>, %arg11: memref<1x1x2048xf32, #tpu.memory_space<vmem>>, %arg12: memref<1x2048x32xbf16, #tpu.memory_space<vmem>>, %arg13: memref<1x1x32xf32, #tpu.memory_space<vmem>>, %arg14: memref<1x1x32xf32, #tpu.memory_space<vmem>>, %arg15: memref<1x1x32xf32, #tpu.memory_space<vmem>>, %arg16: memref<1x2x32xf32, #tpu.memory_space<vmem>>, %arg17: memref<8x32xf32, #tpu.memory_space<vmem>>) attributes {dimension_semantics = [#tpu.dimension_semantics<parallel>, #tpu.dimension_semantics<arbitrary>], iteration_bounds = array<i64: 2, 2>, scalar_prefetch = 0 : i64, scratch_operands = 1 : i64, tpu.core_type = #tpu.core_type<tc>, window_params = [{transform_indices = @transform_0, window_bounds = array<i64: 8, 32>}, {pipeline_mode = #tpu.pipeline_mode<synchronous>, transform_indices = @transform_1, window_bounds = array<i64: 2, 32>}, {transform_indices = @transform_2, window_bounds = array<i64: 1, 32, 96>}, {transform_indices = @transform_3, window_bounds = array<i64: 1, 1, 96>}, {transform_indices = @transform_4, window_bounds = array<i64: 1, 32, 32>}, {transform_indices = @transform_5, window_bounds = array<i64: 1, 1, 32>}, {transform_indices = @transform_6, window_bounds = array<i64: 1, 1, 32>}, {transform_indices = @transform_7, window_bounds = array<i64: 1, 1, 32>}, {transform_indices = @transform_8, window_bounds = array<i64: 1, 32, 2048>}, {transform_indices = @transform_9, window_bounds = array<i64: 1, 1, 2048>}, {transform_indices = @transform_10, window_bounds = array<i64: 1, 2048, 32>}, {transform_indices = @transform_11, window_bounds = array<i64: 1, 1, 32>}, {transform_indices = @transform_12, window_bounds = array<i64: 1, 1, 32>}, {transform_indices = @transform_13, window_bounds = array<i64: 1, 1, 32>}, {transform_indices = @transform_14, window_bounds = array<i64: 1, 2, 32>}]} {
    %c0_i32 = arith.constant 0 : i32
    %0 = arith.cmpi eq, %arg1, %c0_i32 : i32
    %1 = arith.extui %0 : i1 to i32
    %c0_i32_0 = arith.constant 0 : i32
    %2 = arith.cmpi ne, %1, %c0_i32_0 : i32
    scf.if %2 {
      %c0_75 = arith.constant 0 : index
      %c0_76 = arith.constant 0 : index
      %193 = vector.load %arg2[%c0_75, %c0_76] : memref<8x32xf32, #tpu.memory_space<vmem>>, vector<8x32xf32>
      %c0_77 = arith.constant 0 : index
      %c0_78 = arith.constant 0 : index
      %194 = vector.load %arg3[%c0_77, %c0_78] : memref<2x32xf32, #tpu.memory_space<vmem>>, vector<2x32xf32>
      %195 = tpu.concatenate %194, %194, %194, %194 in 0 : vector<2x32xf32>, vector<2x32xf32>, vector<2x32xf32>, vector<2x32xf32> -> vector<8x32xf32>
      %196 = arith.addf %193, %195 : vector<8x32xf32>
      %c0_79 = arith.constant 0 : index
      %c0_80 = arith.constant 0 : index
      %197 = vector.load %arg17[%c0_79, %c0_80] : memref<8x32xf32, #tpu.memory_space<vmem>>, vector<8x32xf32>
      tpu.vector_store %arg17[%c0_79, %c0_80], %196 {strides = array<i32>} : memref<8x32xf32, #tpu.memory_space<vmem>>, vector<8x32xf32>,
    } else {
    }
    %c0 = arith.constant 0 : index
    %c0_1 = arith.constant 0 : index
    %3 = vector.load %arg17[%c0, %c0_1] : memref<8x32xf32, #tpu.memory_space<vmem>>, vector<8x32xf32>
    %4 = arith.truncf %3 : vector<8x32xf32> to vector<8x32xbf16>
    %c0_2 = arith.constant 0 : index
    %c0_3 = arith.constant 0 : index
    %c0_4 = arith.constant 0 : index
    %5 = vector.load %arg4[%c0_2, %c0_3, %c0_4] : memref<1x32x96xbf16, #tpu.memory_space<vmem>>, vector<1x32x96xbf16>
    %6 = vector.shape_cast %5 : vector<1x32x96xbf16> to vector<32x96xbf16>
    %cst = arith.constant dense<0.000000e+00> : vector<8x96xf32>
    %7 = tpu.matmul %4, %6, %cst {dimension_numbers = #tpu.dot_dimension_numbers<[1], [0], [0], [1], [0, 0, 1, 1], [], []>} : vector<8x32xbf16>, vector<32x96xbf16>, vector<8x96xf32> -> vector<8x96xf32>
    %c0_5 = arith.constant 0 : index
    %c0_6 = arith.constant 0 : index
    %c0_7 = arith.constant 0 : index
    %8 = vector.load %arg5[%c0_5, %c0_6, %c0_7] : memref<1x1x96xf32, #tpu.memory_space<vmem>>, vector<1x1x96xf32>
    %9 = vector.shape_cast %8 : vector<1x1x96xf32> to vector<1x96xf32>
    %10 = vector.broadcast %9 : vector<1x96xf32> to vector<8x96xf32>
    %11 = arith.addf %7, %10 : vector<8x96xf32>
    %12 = vector.extract_strided_slice %11 {offsets = [0, 0], sizes = [8, 8], strides = [1, 1]} : vector<8x96xf32> to vector<8x8xf32>
    %13 = vector.shape_cast %12 : vector<8x8xf32> to vector<4x2x8xf32>
    %14 = arith.truncf %13 : vector<4x2x8xf32> to vector<4x2x8xbf16>
    %15 = vector.extract_strided_slice %11 {offsets = [0, 32], sizes = [8, 8], strides = [1, 1]} : vector<8x96xf32> to vector<8x8xf32>
    %16 = vector.shape_cast %15 : vector<8x8xf32> to vector<4x2x8xf32>
    %17 = arith.truncf %16 : vector<4x2x8xf32> to vector<4x2x8xbf16>
    %18 = vector.extract_strided_slice %11 {offsets = [0, 64], sizes = [8, 8], strides = [1, 1]} : vector<8x96xf32> to vector<8x8xf32>
    %19 = vector.shape_cast %18 : vector<8x8xf32> to vector<4x2x8xf32>
    %20 = arith.truncf %19 : vector<4x2x8xf32> to vector<4x2x8xbf16>
    %cst_8 = arith.constant dense<0.000000e+00> : vector<4x2x2xf32>
    %21 = tpu.matmul %14, %17, %cst_8 {dimension_numbers = #tpu.dot_dimension_numbers<[2], [2], [1], [1], [0, 0, 0, 1, 1, 1], [0], [0]>} : vector<4x2x8xbf16>, vector<4x2x8xbf16>, vector<4x2x2xf32> -> vector<4x2x2xf32>
    %cst_9 = arith.constant 0.353553385 : f32
    %22 = vector.broadcast %cst_9 : f32 to vector<4x2x2xf32>
    %23 = arith.mulf %21, %22 : vector<4x2x2xf32>
    %cst_10 = arith.constant dense<0xFF800000> : vector<4x2xf32>
    %24 = vector.multi_reduction <maximumf>, %23, %cst_10 [2] : vector<4x2x2xf32> to vector<4x2xf32>
    %25 = vector.shape_cast %24 : vector<4x2xf32> to vector<4x2x1xf32>
    %26 = vector.broadcast %25 : vector<4x2x1xf32> to vector<4x2x2xf32>
    %27 = arith.subf %23, %26 : vector<4x2x2xf32>
    %28 = math.exp %27 : vector<4x2x2xf32>
    %cst_11 = arith.constant dense<0.000000e+00> : vector<4x2xf32>
    %29 = vector.multi_reduction <add>, %28, %cst_11 [2] : vector<4x2x2xf32> to vector<4x2xf32>
    %30 = vector.shape_cast %29 : vector<4x2xf32> to vector<4x2x1xf32>
    %31 = tpu.reciprocal %30 {approx = true} : vector<4x2x1xf32> -> vector<4x2x1xf32>
    %32 = vector.broadcast %31 : vector<4x2x1xf32> to vector<4x2x2xf32>
    %33 = arith.mulf %28, %32 : vector<4x2x2xf32>
    %34 = arith.truncf %33 : vector<4x2x2xf32> to vector<4x2x2xbf16>
    %cst_12 = arith.constant dense<0.000000e+00> : vector<4x2x8xf32>
    %35 = tpu.matmul %34, %20, %cst_12 {dimension_numbers = #tpu.dot_dimension_numbers<[2], [1], [1], [2], [0, 0, 0, 1, 1, 2], [0], [0]>} : vector<4x2x2xbf16>, vector<4x2x8xbf16>, vector<4x2x8xf32> -> vector<4x2x8xf32>
    %36 = vector.shape_cast %35 : vector<4x2x8xf32> to vector<8x8xf32>
    %37 = vector.extract_strided_slice %11 {offsets = [0, 8], sizes = [8, 8], strides = [1, 1]} : vector<8x96xf32> to vector<8x8xf32>
    %38 = vector.shape_cast %37 : vector<8x8xf32> to vector<4x2x8xf32>
    %39 = arith.truncf %38 : vector<4x2x8xf32> to vector<4x2x8xbf16>
    %40 = vector.extract_strided_slice %11 {offsets = [0, 40], sizes = [8, 8], strides = [1, 1]} : vector<8x96xf32> to vector<8x8xf32>
    %41 = vector.shape_cast %40 : vector<8x8xf32> to vector<4x2x8xf32>
    %42 = arith.truncf %41 : vector<4x2x8xf32> to vector<4x2x8xbf16>
    %43 = vector.extract_strided_slice %11 {offsets = [0, 72], sizes = [8, 8], strides = [1, 1]} : vector<8x96xf32> to vector<8x8xf32>
    %44 = vector.shape_cast %43 : vector<8x8xf32> to vector<4x2x8xf32>
    %45 = arith.truncf %44 : vector<4x2x8xf32> to vector<4x2x8xbf16>
    %cst_13 = arith.constant dense<0.000000e+00> : vector<4x2x2xf32>
    %46 = tpu.matmul %39, %42, %cst_13 {dimension_numbers = #tpu.dot_dimension_numbers<[2], [2], [1], [1], [0, 0, 0, 1, 1, 1], [0], [0]>} : vector<4x2x8xbf16>, vector<4x2x8xbf16>, vector<4x2x2xf32> -> vector<4x2x2xf32>
    %cst_14 = arith.constant 0.353553385 : f32
    %47 = vector.broadcast %cst_14 : f32 to vector<4x2x2xf32>
    %48 = arith.mulf %46, %47 : vector<4x2x2xf32>
    %cst_15 = arith.constant dense<0xFF800000> : vector<4x2xf32>
    %49 = vector.multi_reduction <maximumf>, %48, %cst_15 [2] : vector<4x2x2xf32> to vector<4x2xf32>
    %50 = vector.shape_cast %49 : vector<4x2xf32> to vector<4x2x1xf32>
    %51 = vector.broadcast %50 : vector<4x2x1xf32> to vector<4x2x2xf32>
    %52 = arith.subf %48, %51 : vector<4x2x2xf32>
    %53 = math.exp %52 : vector<4x2x2xf32>
    %cst_16 = arith.constant dense<0.000000e+00> : vector<4x2xf32>
    %54 = vector.multi_reduction <add>, %53, %cst_16 [2] : vector<4x2x2xf32> to vector<4x2xf32>
    %55 = vector.shape_cast %54 : vector<4x2xf32> to vector<4x2x1xf32>
    %56 = tpu.reciprocal %55 {approx = true} : vector<4x2x1xf32> -> vector<4x2x1xf32>
    %57 = vector.broadcast %56 : vector<4x2x1xf32> to vector<4x2x2xf32>
    %58 = arith.mulf %53, %57 : vector<4x2x2xf32>
    %59 = arith.truncf %58 : vector<4x2x2xf32> to vector<4x2x2xbf16>
    %cst_17 = arith.constant dense<0.000000e+00> : vector<4x2x8xf32>
    %60 = tpu.matmul %59, %45, %cst_17 {dimension_numbers = #tpu.dot_dimension_numbers<[2], [1], [1], [2], [0, 0, 0, 1, 1, 2], [0], [0]>} : vector<4x2x2xbf16>, vector<4x2x8xbf16>, vector<4x2x8xf32> -> vector<4x2x8xf32>
    %61 = vector.shape_cast %60 : vector<4x2x8xf32> to vector<8x8xf32>
    %62 = vector.extract_strided_slice %11 {offsets = [0, 16], sizes = [8, 8], strides = [1, 1]} : vector<8x96xf32> to vector<8x8xf32>
    %63 = vector.shape_cast %62 : vector<8x8xf32> to vector<4x2x8xf32>
    %64 = arith.truncf %63 : vector<4x2x8xf32> to vector<4x2x8xbf16>
    %65 = vector.extract_strided_slice %11 {offsets = [0, 48], sizes = [8, 8], strides = [1, 1]} : vector<8x96xf32> to vector<8x8xf32>
    %66 = vector.shape_cast %65 : vector<8x8xf32> to vector<4x2x8xf32>
    %67 = arith.truncf %66 : vector<4x2x8xf32> to vector<4x2x8xbf16>
    %68 = vector.extract_strided_slice %11 {offsets = [0, 80], sizes = [8, 8], strides = [1, 1]} : vector<8x96xf32> to vector<8x8xf32>
    %69 = vector.shape_cast %68 : vector<8x8xf32> to vector<4x2x8xf32>
    %70 = arith.truncf %69 : vector<4x2x8xf32> to vector<4x2x8xbf16>
    %cst_18 = arith.constant dense<0.000000e+00> : vector<4x2x2xf32>
    %71 = tpu.matmul %64, %67, %cst_18 {dimension_numbers = #tpu.dot_dimension_numbers<[2], [2], [1], [1], [0, 0, 0, 1, 1, 1], [0], [0]>} : vector<4x2x8xbf16>, vector<4x2x8xbf16>, vector<4x2x2xf32> -> vector<4x2x2xf32>
    %cst_19 = arith.constant 0.353553385 : f32
    %72 = vector.broadcast %cst_19 : f32 to vector<4x2x2xf32>
    %73 = arith.mulf %71, %72 : vector<4x2x2xf32>
    %cst_20 = arith.constant dense<0xFF800000> : vector<4x2xf32>
    %74 = vector.multi_reduction <maximumf>, %73, %cst_20 [2] : vector<4x2x2xf32> to vector<4x2xf32>
    %75 = vector.shape_cast %74 : vector<4x2xf32> to vector<4x2x1xf32>
    %76 = vector.broadcast %75 : vector<4x2x1xf32> to vector<4x2x2xf32>
    %77 = arith.subf %73, %76 : vector<4x2x2xf32>
    %78 = math.exp %77 : vector<4x2x2xf32>
    %cst_21 = arith.constant dense<0.000000e+00> : vector<4x2xf32>
    %79 = vector.multi_reduction <add>, %78, %cst_21 [2] : vector<4x2x2xf32> to vector<4x2xf32>
    %80 = vector.shape_cast %79 : vector<4x2xf32> to vector<4x2x1xf32>
    %81 = tpu.reciprocal %80 {approx = true} : vector<4x2x1xf32> -> vector<4x2x1xf32>
    %82 = vector.broadcast %81 : vector<4x2x1xf32> to vector<4x2x2xf32>
    %83 = arith.mulf %78, %82 : vector<4x2x2xf32>
    %84 = arith.truncf %83 : vector<4x2x2xf32> to vector<4x2x2xbf16>
    %cst_22 = arith.constant dense<0.000000e+00> : vector<4x2x8xf32>
    %85 = tpu.matmul %84, %70, %cst_22 {dimension_numbers = #tpu.dot_dimension_numbers<[2], [1], [1], [2], [0, 0, 0, 1, 1, 2], [0], [0]>} : vector<4x2x2xbf16>, vector<4x2x8xbf16>, vector<4x2x8xf32> -> vector<4x2x8xf32>
    %86 = vector.shape_cast %85 : vector<4x2x8xf32> to vector<8x8xf32>
    %87 = vector.extract_strided_slice %11 {offsets = [0, 24], sizes = [8, 8], strides = [1, 1]} : vector<8x96xf32> to vector<8x8xf32>
    %88 = vector.shape_cast %87 : vector<8x8xf32> to vector<4x2x8xf32>
    %89 = arith.truncf %88 : vector<4x2x8xf32> to vector<4x2x8xbf16>
    %90 = vector.extract_strided_slice %11 {offsets = [0, 56], sizes = [8, 8], strides = [1, 1]} : vector<8x96xf32> to vector<8x8xf32>
    %91 = vector.shape_cast %90 : vector<8x8xf32> to vector<4x2x8xf32>
    %92 = arith.truncf %91 : vector<4x2x8xf32> to vector<4x2x8xbf16>
    %93 = vector.extract_strided_slice %11 {offsets = [0, 88], sizes = [8, 8], strides = [1, 1]} : vector<8x96xf32> to vector<8x8xf32>
    %94 = vector.shape_cast %93 : vector<8x8xf32> to vector<4x2x8xf32>
    %95 = arith.truncf %94 : vector<4x2x8xf32> to vector<4x2x8xbf16>
    %cst_23 = arith.constant dense<0.000000e+00> : vector<4x2x2xf32>
    %96 = tpu.matmul %89, %92, %cst_23 {dimension_numbers = #tpu.dot_dimension_numbers<[2], [2], [1], [1], [0, 0, 0, 1, 1, 1], [0], [0]>} : vector<4x2x8xbf16>, vector<4x2x8xbf16>, vector<4x2x2xf32> -> vector<4x2x2xf32>
    %cst_24 = arith.constant 0.353553385 : f32
    %97 = vector.broadcast %cst_24 : f32 to vector<4x2x2xf32>
    %98 = arith.mulf %96, %97 : vector<4x2x2xf32>
    %cst_25 = arith.constant dense<0xFF800000> : vector<4x2xf32>
    %99 = vector.multi_reduction <maximumf>, %98, %cst_25 [2] : vector<4x2x2xf32> to vector<4x2xf32>
    %100 = vector.shape_cast %99 : vector<4x2xf32> to vector<4x2x1xf32>
    %101 = vector.broadcast %100 : vector<4x2x1xf32> to vector<4x2x2xf32>
    %102 = arith.subf %98, %101 : vector<4x2x2xf32>
    %103 = math.exp %102 : vector<4x2x2xf32>
    %cst_26 = arith.constant dense<0.000000e+00> : vector<4x2xf32>
    %104 = vector.multi_reduction <add>, %103, %cst_26 [2] : vector<4x2x2xf32> to vector<4x2xf32>
    %105 = vector.shape_cast %104 : vector<4x2xf32> to vector<4x2x1xf32>
    %106 = tpu.reciprocal %105 {approx = true} : vector<4x2x1xf32> -> vector<4x2x1xf32>
    %107 = vector.broadcast %106 : vector<4x2x1xf32> to vector<4x2x2xf32>
    %108 = arith.mulf %103, %107 : vector<4x2x2xf32>
    %109 = arith.truncf %108 : vector<4x2x2xf32> to vector<4x2x2xbf16>
    %cst_27 = arith.constant dense<0.000000e+00> : vector<4x2x8xf32>
    %110 = tpu.matmul %109, %95, %cst_27 {dimension_numbers = #tpu.dot_dimension_numbers<[2], [1], [1], [2], [0, 0, 0, 1, 1, 2], [0], [0]>} : vector<4x2x2xbf16>, vector<4x2x8xbf16>, vector<4x2x8xf32> -> vector<4x2x8xf32>
    %111 = vector.shape_cast %110 : vector<4x2x8xf32> to vector<8x8xf32>
    %112 = tpu.concatenate %36, %61, %86, %111 in 1 : vector<8x8xf32>, vector<8x8xf32>, vector<8x8xf32>, vector<8x8xf32> -> vector<8x32xf32>
    %113 = arith.truncf %112 : vector<8x32xf32> to vector<8x32xbf16>
    %c0_28 = arith.constant 0 : index
    %c0_29 = arith.constant 0 : index
    %c0_30 = arith.constant 0 : index
    %114 = vector.load %arg6[%c0_28, %c0_29, %c0_30] : memref<1x32x32xbf16, #tpu.memory_space<vmem>>, vector<1x32x32xbf16>
    %115 = vector.shape_cast %114 : vector<1x32x32xbf16> to vector<32x32xbf16>
    %cst_31 = arith.constant dense<0.000000e+00> : vector<8x32xf32>
    %116 = tpu.matmul %113, %115, %cst_31 {dimension_numbers = #tpu.dot_dimension_numbers<[1], [0], [0], [1], [0, 0, 1, 1], [], []>} : vector<8x32xbf16>, vector<32x32xbf16>, vector<8x32xf32> -> vector<8x32xf32>
    %c0_32 = arith.constant 0 : index
    %c0_33 = arith.constant 0 : index
    %c0_34 = arith.constant 0 : index
    %117 = vector.load %arg7[%c0_32, %c0_33, %c0_34] : memref<1x1x32xf32, #tpu.memory_space<vmem>>, vector<1x1x32xf32>
    %118 = vector.shape_cast %117 : vector<1x1x32xf32> to vector<1x32xf32>
    %119 = vector.broadcast %118 : vector<1x32xf32> to vector<8x32xf32>
    %120 = arith.addf %116, %119 : vector<8x32xf32>
    %121 = arith.addf %3, %120 : vector<8x32xf32>
    %c0_35 = arith.constant 0 : index
    %c0_36 = arith.constant 0 : index
    %c0_37 = arith.constant 0 : index
    %122 = vector.load %arg8[%c0_35, %c0_36, %c0_37] : memref<1x1x32xf32, #tpu.memory_space<vmem>>, vector<1x1x32xf32>
    %123 = vector.shape_cast %122 : vector<1x1x32xf32> to vector<1x32xf32>
    %c0_38 = arith.constant 0 : index
    %c0_39 = arith.constant 0 : index
    %c0_40 = arith.constant 0 : index
    %124 = vector.load %arg9[%c0_38, %c0_39, %c0_40] : memref<1x1x32xf32, #tpu.memory_space<vmem>>, vector<1x1x32xf32>
    %125 = vector.shape_cast %124 : vector<1x1x32xf32> to vector<1x32xf32>
    %cst_41 = arith.constant dense<0.000000e+00> : vector<8xf32>
    %126 = vector.multi_reduction <add>, %121, %cst_41 [1] : vector<8x32xf32> to vector<8xf32>
    %127 = vector.shape_cast %126 : vector<8xf32> to vector<8x1xf32>
    %cst_42 = arith.constant 3.200000e+01 : f32
    %128 = vector.broadcast %cst_42 : f32 to vector<8x1xf32>
    %129 = arith.divf %127, %128 : vector<8x1xf32>
    %130 = vector.broadcast %129 : vector<8x1xf32> to vector<8x32xf32>
    %131 = arith.subf %121, %130 : vector<8x32xf32>
    %132 = arith.mulf %131, %131 : vector<8x32xf32>
    %cst_43 = arith.constant dense<0.000000e+00> : vector<8xf32>
    %133 = vector.multi_reduction <add>, %132, %cst_43 [1] : vector<8x32xf32> to vector<8xf32>
    %134 = vector.shape_cast %133 : vector<8xf32> to vector<8x1xf32>
    %cst_44 = arith.constant 3.200000e+01 : f32
    %135 = vector.broadcast %cst_44 : f32 to vector<8x1xf32>
    %136 = arith.divf %134, %135 : vector<8x1xf32>
    %cst_45 = arith.constant 9.99999974E-6 : f32
    %137 = vector.broadcast %cst_45 : f32 to vector<8x1xf32>
    %138 = arith.addf %136, %137 : vector<8x1xf32>
    %139 = math.rsqrt %138 : vector<8x1xf32>
    %140 = vector.broadcast %139 : vector<8x1xf32> to vector<8x32xf32>
    %141 = arith.mulf %131, %140 : vector<8x32xf32>
    %142 = vector.broadcast %123 : vector<1x32xf32> to vector<8x32xf32>
    %143 = arith.mulf %141, %142 : vector<8x32xf32>
    %144 = vector.broadcast %125 : vector<1x32xf32> to vector<8x32xf32>
    %145 = arith.addf %143, %144 : vector<8x32xf32>
    %146 = arith.truncf %145 : vector<8x32xf32> to vector<8x32xbf16>
    %c0_46 = arith.constant 0 : index
    %c0_47 = arith.constant 0 : index
    %c0_48 = arith.constant 0 : index
    %147 = vector.load %arg10[%c0_46, %c0_47, %c0_48] : memref<1x32x2048xbf16, #tpu.memory_space<vmem>>, vector<1x32x2048xbf16>
    %148 = vector.shape_cast %147 : vector<1x32x2048xbf16> to vector<32x2048xbf16>
    %cst_49 = arith.constant dense<0.000000e+00> : vector<8x2048xf32>
    %149 = tpu.matmul %146, %148, %cst_49 {dimension_numbers = #tpu.dot_dimension_numbers<[1], [0], [0], [1], [0, 0, 1, 1], [], []>} : vector<8x32xbf16>, vector<32x2048xbf16>, vector<8x2048xf32> -> vector<8x2048xf32>
    %c0_50 = arith.constant 0 : index
    %c0_51 = arith.constant 0 : index
    %c0_52 = arith.constant 0 : index
    %150 = vector.load %arg11[%c0_50, %c0_51, %c0_52] : memref<1x1x2048xf32, #tpu.memory_space<vmem>>, vector<1x1x2048xf32>
    %151 = vector.shape_cast %150 : vector<1x1x2048xf32> to vector<1x2048xf32>
    %152 = vector.broadcast %151 : vector<1x2048xf32> to vector<8x2048xf32>
    %153 = arith.addf %149, %152 : vector<8x2048xf32>
    %cst_53 = arith.constant 0.000000e+00 : f32
    %154 = vector.broadcast %cst_53 : f32 to vector<8x2048xf32>
    %155 = arith.maximumf %153, %154 : vector<8x2048xf32>
    %156 = arith.truncf %155 : vector<8x2048xf32> to vector<8x2048xbf16>
    %c0_54 = arith.constant 0 : index
    %c0_55 = arith.constant 0 : index
    %c0_56 = arith.constant 0 : index
    %157 = vector.load %arg12[%c0_54, %c0_55, %c0_56] : memref<1x2048x32xbf16, #tpu.memory_space<vmem>>, vector<1x2048x32xbf16>
    %158 = vector.shape_cast %157 : vector<1x2048x32xbf16> to vector<2048x32xbf16>
    %cst_57 = arith.constant dense<0.000000e+00> : vector<8x32xf32>
    %159 = tpu.matmul %156, %158, %cst_57 {dimension_numbers = #tpu.dot_dimension_numbers<[1], [0], [0], [1], [0, 0, 1, 1], [], []>} : vector<8x2048xbf16>, vector<2048x32xbf16>, vector<8x32xf32> -> vector<8x32xf32>
    %c0_58 = arith.constant 0 : index
    %c0_59 = arith.constant 0 : index
    %c0_60 = arith.constant 0 : index
    %160 = vector.load %arg13[%c0_58, %c0_59, %c0_60] : memref<1x1x32xf32, #tpu.memory_space<vmem>>, vector<1x1x32xf32>
    %161 = vector.shape_cast %160 : vector<1x1x32xf32> to vector<1x32xf32>
    %162 = vector.broadcast %161 : vector<1x32xf32> to vector<8x32xf32>
    %163 = arith.addf %159, %162 : vector<8x32xf32>
    %164 = arith.addf %145, %163 : vector<8x32xf32>
    %c0_61 = arith.constant 0 : index
    %c0_62 = arith.constant 0 : index
    %c0_63 = arith.constant 0 : index
    %165 = vector.load %arg14[%c0_61, %c0_62, %c0_63] : memref<1x1x32xf32, #tpu.memory_space<vmem>>, vector<1x1x32xf32>
    %166 = vector.shape_cast %165 : vector<1x1x32xf32> to vector<1x32xf32>
    %c0_64 = arith.constant 0 : index
    %c0_65 = arith.constant 0 : index
    %c0_66 = arith.constant 0 : index
    %167 = vector.load %arg15[%c0_64, %c0_65, %c0_66] : memref<1x1x32xf32, #tpu.memory_space<vmem>>, vector<1x1x32xf32>
    %168 = vector.shape_cast %167 : vector<1x1x32xf32> to vector<1x32xf32>
    %cst_67 = arith.constant dense<0.000000e+00> : vector<8xf32>
    %169 = vector.multi_reduction <add>, %164, %cst_67 [1] : vector<8x32xf32> to vector<8xf32>
    %170 = vector.shape_cast %169 : vector<8xf32> to vector<8x1xf32>
    %cst_68 = arith.constant 3.200000e+01 : f32
    %171 = vector.broadcast %cst_68 : f32 to vector<8x1xf32>
    %172 = arith.divf %170, %171 : vector<8x1xf32>
    %173 = vector.broadcast %172 : vector<8x1xf32> to vector<8x32xf32>
    %174 = arith.subf %164, %173 : vector<8x32xf32>
    %175 = arith.mulf %174, %174 : vector<8x32xf32>
    %cst_69 = arith.constant dense<0.000000e+00> : vector<8xf32>
    %176 = vector.multi_reduction <add>, %175, %cst_69 [1] : vector<8x32xf32> to vector<8xf32>
    %177 = vector.shape_cast %176 : vector<8xf32> to vector<8x1xf32>
    %cst_70 = arith.constant 3.200000e+01 : f32
    %178 = vector.broadcast %cst_70 : f32 to vector<8x1xf32>
    %179 = arith.divf %177, %178 : vector<8x1xf32>
    %cst_71 = arith.constant 9.99999974E-6 : f32
    %180 = vector.broadcast %cst_71 : f32 to vector<8x1xf32>
    %181 = arith.addf %179, %180 : vector<8x1xf32>
    %182 = math.rsqrt %181 : vector<8x1xf32>
    %183 = vector.broadcast %182 : vector<8x1xf32> to vector<8x32xf32>
    %184 = arith.mulf %174, %183 : vector<8x32xf32>
    %185 = vector.broadcast %166 : vector<1x32xf32> to vector<8x32xf32>
    %186 = arith.mulf %184, %185 : vector<8x32xf32>
    %187 = vector.broadcast %168 : vector<1x32xf32> to vector<8x32xf32>
    %188 = arith.addf %186, %187 : vector<8x32xf32>
    %c0_72 = arith.constant 0 : index
    %c0_73 = arith.constant 0 : index
    %189 = vector.load %arg17[%c0_72, %c0_73] : memref<8x32xf32, #tpu.memory_space<vmem>>, vector<8x32xf32>
    tpu.vector_store %arg17[%c0_72, %c0_73], %188 {strides = array<i32>} : memref<8x32xf32, #tpu.memory_space<vmem>>, vector<8x32xf32>,
    %c1_i32 = arith.constant 1 : i32
    %190 = arith.cmpi eq, %arg1, %c1_i32 : i32
    %191 = arith.extui %190 : i1 to i32
    %c0_i32_74 = arith.constant 0 : i32
    %192 = arith.cmpi ne, %191, %c0_i32_74 : i32
    scf.if %192 {
      %193 = vector.shape_cast %188 : vector<8x32xf32> to vector<4x2x32xf32>
      %cst_75 = arith.constant dense<0.000000e+00> : vector<2x32xf32>
      %194 = vector.multi_reduction <add>, %193, %cst_75 [0] : vector<4x2x32xf32> to vector<2x32xf32>
      %cst_76 = arith.constant 1.250000e-01 : f32
      %195 = vector.broadcast %cst_76 : f32 to vector<2x32xf32>
      %196 = arith.mulf %194, %195 : vector<2x32xf32>
      %197 = vector.shape_cast %196 : vector<2x32xf32> to vector<1x2x32xf32>
      %c0_77 = arith.constant 0 : index
      %c0_78 = arith.constant 0 : index
      %c0_79 = arith.constant 0 : index
      %198 = vector.load %arg16[%c0_77, %c0_78, %c0_79] : memref<1x2x32xf32, #tpu.memory_space<vmem>>, vector<1x2x32xf32>
      tpu.vector_store %arg16[%c0_77, %c0_78, %c0_79], %197 {strides = array<i32>} : memref<1x2x32xf32, #tpu.memory_space<vmem>>, vector<1x2x32xf32>,
    } else {
    }
    return
  }
  func.func @transform_0(%arg0: i32, %arg1: i32) -> (i32, i32) {
    %c0_i32 = arith.constant 0 : i32
    %c0_i32_0 = arith.constant 0 : i32
    return %arg0, %c0_i32 : i32, i32
  }
  func.func @transform_1(%arg0: i32, %arg1: i32) -> (i32, i32) {
    %c0_i32 = arith.constant 0 : i32
    %c0_i32_0 = arith.constant 0 : i32
    %c0_i32_1 = arith.constant 0 : i32
    return %c0_i32, %c0_i32_0 : i32, i32
  }
  func.func @transform_2(%arg0: i32, %arg1: i32) -> (i32, i32, i32) {
    %c0_i32 = arith.constant 0 : i32
    %c0_i32_0 = arith.constant 0 : i32
    %c0_i32_1 = arith.constant 0 : i32
    return %arg1, %c0_i32, %c0_i32_0 : i32, i32, i32
  }
  func.func @transform_3(%arg0: i32, %arg1: i32) -> (i32, i32, i32) {
    %c0_i32 = arith.constant 0 : i32
    %c0_i32_0 = arith.constant 0 : i32
    %c0_i32_1 = arith.constant 0 : i32
    return %arg1, %c0_i32, %c0_i32_0 : i32, i32, i32
  }
  func.func @transform_4(%arg0: i32, %arg1: i32) -> (i32, i32, i32) {
    %c0_i32 = arith.constant 0 : i32
    %c0_i32_0 = arith.constant 0 : i32
    %c0_i32_1 = arith.constant 0 : i32
    return %arg1, %c0_i32, %c0_i32_0 : i32, i32, i32
  }
  func.func @transform_5(%arg0: i32, %arg1: i32) -> (i32, i32, i32) {
    %c0_i32 = arith.constant 0 : i32
    %c0_i32_0 = arith.constant 0 : i32
    %c0_i32_1 = arith.constant 0 : i32
    return %arg1, %c0_i32, %c0_i32_0 : i32, i32, i32
  }
  func.func @transform_6(%arg0: i32, %arg1: i32) -> (i32, i32, i32) {
    %c0_i32 = arith.constant 0 : i32
    %c0_i32_0 = arith.constant 0 : i32
    %c0_i32_1 = arith.constant 0 : i32
    return %arg1, %c0_i32, %c0_i32_0 : i32, i32, i32
  }
  func.func @transform_7(%arg0: i32, %arg1: i32) -> (i32, i32, i32) {
    %c0_i32 = arith.constant 0 : i32
    %c0_i32_0 = arith.constant 0 : i32
    %c0_i32_1 = arith.constant 0 : i32
    return %arg1, %c0_i32, %c0_i32_0 : i32, i32, i32
  }
  func.func @transform_8(%arg0: i32, %arg1: i32) -> (i32, i32, i32) {
    %c0_i32 = arith.constant 0 : i32
    %c0_i32_0 = arith.constant 0 : i32
    %c0_i32_1 = arith.constant 0 : i32
    return %arg1, %c0_i32, %c0_i32_0 : i32, i32, i32
  }
  func.func @transform_9(%arg0: i32, %arg1: i32) -> (i32, i32, i32) {
    %c0_i32 = arith.constant 0 : i32
    %c0_i32_0 = arith.constant 0 : i32
    %c0_i32_1 = arith.constant 0 : i32
    return %arg1, %c0_i32, %c0_i32_0 : i32, i32, i32
  }
  func.func @transform_10(%arg0: i32, %arg1: i32) -> (i32, i32, i32) {
    %c0_i32 = arith.constant 0 : i32
    %c0_i32_0 = arith.constant 0 : i32
    %c0_i32_1 = arith.constant 0 : i32
    return %arg1, %c0_i32, %c0_i32_0 : i32, i32, i32
  }
  func.func @transform_11(%arg0: i32, %arg1: i32) -> (i32, i32, i32) {
    %c0_i32 = arith.constant 0 : i32
    %c0_i32_0 = arith.constant 0 : i32
    %c0_i32_1 = arith.constant 0 : i32
    return %arg1, %c0_i32, %c0_i32_0 : i32, i32, i32
  }
  func.func @transform_12(%arg0: i32, %arg1: i32) -> (i32, i32, i32) {
    %c0_i32 = arith.constant 0 : i32
    %c0_i32_0 = arith.constant 0 : i32
    %c0_i32_1 = arith.constant 0 : i32
    return %arg1, %c0_i32, %c0_i32_0 : i32, i32, i32
  }
  func.func @transform_13(%arg0: i32, %arg1: i32) -> (i32, i32, i32) {
    %c0_i32 = arith.constant 0 : i32
    %c0_i32_0 = arith.constant 0 : i32
    %c0_i32_1 = arith.constant 0 : i32
    return %arg1, %c0_i32, %c0_i32_0 : i32, i32, i32
  }
  func.func @transform_14(%arg0: i32, %arg1: i32) -> (i32, i32, i32) {
    %c0_i32 = arith.constant 0 : i32
    %c0_i32_0 = arith.constant 0 : i32
    %c0_i32_1 = arith.constant 0 : i32
    return %arg0, %c0_i32, %c0_i32_0 : i32, i32, i32
  }
}

</mosaic_0001>

<bundles_post_ra>
// kernel: gvp_contrastive_forward.2
= control target key start
LH: loop header
LB: loop body
LE: loop exit
PB: predicated region body
PF: predicated region fallthrough
CT: control target
= control target key end

     0   :  { %vm148_vm0 = vcmask 1045504   ;;  %vm51_vm1 = vcmask 48128   ;;  %vm297_vm2 = vcmask 261120   ;;  %s687_s1 = inlined_call_operand.vmem [shape: f32[6,32], index: 1, kind: input, shape index: {}]   ;;  %s688_s0 = inlined_call_operand.vmem [shape: f32[256,6], index: 0, kind: input, shape index: {}]   ;;  %s689_s2 = inlined_call_operand.vmem [shape: f32[1,32], index: 2, kind: input, shape index: {}]   ;;  %s690_s3 = inlined_call_operand.vmem [shape: f32[256,32], index: 3, kind: output, shape index: {}]  }
   0x1   :  { %v46_v0 = vld [vmem:[%s687_s1] sm:$0x3f]  ;;  %v31_v5 = vld [vmem:[%s688_s0 + $0x88] sm:$0xff]  ;;  %v32_v9 = vld [vmem:[%s688_s0 + $0x90] sm:$0xff] }
   0x2   :  { %v30_v1 = vld [vmem:[%s688_s0 + $0x80] sm:$0xff]  ;;  %368 = vmatpush.msk.msra.mxu2 %vm148_vm0, %v46_v0  ;;  %369 = vmatpush.msk.msra.mxu3 %vm148_vm0, %v46_v0  ;;  %v39_v6 = vld [vmem:[%s688_s0 + $0xc8] sm:$0xff]  ;;  %v40_v10 = vld [vmem:[%s688_s0 + $0xd0] sm:$0xff] }
   0x3   :  { %v38_v2 = vld [vmem:[%s688_s0 + $0xc0] sm:$0xff]  ;;  %351 = vmatmul.msk.f32.vlgmr.msra.gmra.mxu2 %vm51_vm1, %v30_v1  ;;  %334 = vmatpush.msk.msra.mxu0 %vm148_vm0, %v46_v0  ;;  %v15_v7 = vld [vmem:[%s688_s0 + $0x8] sm:$0xff]  ;;  %v16_v11 = vld [vmem:[%s688_s0 + $0x10] sm:$0xff] }
   0x4   :  { %v14_v3 = vld [vmem:[%s688_s0] sm:$0xff]  ;;  %359 = vmatmul.msk.f32.vlgmr.msra.gmra.mxu3 %vm51_vm1, %v38_v2  ;;  %367 = vmatpush.msk.msra.mxu1 %vm148_vm0, %v46_v0  ;;  %v23_v8 = vld [vmem:[%s688_s0 + $0x48] sm:$0xff]  ;;  %v24_v12 = vld [vmem:[%s688_s0 + $0x50] sm:$0xff] }
   0x5   :  { %v22_v4 = vld [vmem:[%s688_s0 + $0x40] sm:$0xff]  ;;  %335 = vmatmul.msk.f32.vlgmr.msra.gmra.mxu0 %vm51_vm1, %v14_v3  ;;  %v33_v13 = vld [vmem:[%s688_s0 + $0x98] sm:$0xff]  ;;  %v35_v21 = vld [vmem:[%s688_s0 + $0xa8] sm:$0xff] }
   0x6   :  { %343 = vmatmul.msk.f32.vlgmr.msra.gmra.mxu1 %vm51_vm1, %v22_v4  ;;  %v41_v14 = vld [vmem:[%s688_s0 + $0xd8] sm:$0xff]  ;;  %v34_v17 = vld [vmem:[%s688_s0 + $0xa0] sm:$0xff]  ;;  %v43_v22 = vld [vmem:[%s688_s0 + $0xe8] sm:$0xff] }
   0x7   :  { %v17_v15 = vld [vmem:[%s688_s0 + $0x18] sm:$0xff]  ;;  %v42_v18 = vld [vmem:[%s688_s0 + $0xe0] sm:$0xff]  ;;  %v19_v23 = vld [vmem:[%s688_s0 + $0x28] sm:$0xff] }
   0x8   :  { %v25_v16 = vld [vmem:[%s688_s0 + $0x58] sm:$0xff]  ;;  %v18_v19 = vld [vmem:[%s688_s0 + $0x20] sm:$0xff]  ;;  %v27_v24 = vld [vmem:[%s688_s0 + $0x68] sm:$0xff] }
   0x9   :  { %v26_v20 = vld [vmem:[%s688_s0 + $0x60] sm:$0xff]  ;;  %v36_v25 = vld [vmem:[%s688_s0 + $0xb0] sm:$0xff]  ;;  %v37_v29 = vld [vmem:[%s688_s0 + $0xb8] sm:$0xff] }
   0xa   :  { %v44_v26 = vld [vmem:[%s688_s0 + $0xf0] sm:$0xff]  ;;  %v45_v30 = vld [vmem:[%s688_s0 + $0xf8] sm:$0xff]  ;;  %v525_v33 = vld [vmem:[%s689_s2] ss:$0 sm:$0xff] }
   0xb   :  { %352 = vmatmul.msk.f32.gmra.mxu2 %vm51_vm1, %v31_v5  ;;  %v20_v27 = vld [vmem:[%s688_s0 + $0x30] sm:$0xff]  ;;  %v21_v31 = vld [vmem:[%s688_s0 + $0x38] sm:$0xff] }
   0xc   :  { %360 = vmatmul.msk.f32.gmra.mxu3 %vm51_vm1, %v39_v6  ;;  %v28_v28 = vld [vmem:[%s688_s0 + $0x70] sm:$0xff]  ;;  %v29_v32 = vld [vmem:[%s688_s0 + $0x78] sm:$0xff] }
   0xd   :  { %336 = vmatmul.msk.f32.gmra.mxu0 %vm51_vm1, %v15_v7 }
   0xe   :  { %344 = vmatmul.msk.f32.gmra.mxu1 %vm51_vm1, %v23_v8 }
  0x13   :  { %353 = vmatmul.msk.f32.gmra.mxu2 %vm51_vm1, %v32_v9 }
  0x14   :  { %361 = vmatmul.msk.f32.gmra.mxu3 %vm51_vm1, %v40_v10 }
  0x15   :  { %337 = vmatmul.msk.f32.gmra.mxu0 %vm51_vm1, %v16_v11 }
  0x16   :  { %345 = vmatmul.msk.f32.gmra.mxu1 %vm51_vm1, %v24_v12 }
  0x1b   :  { %354 = vmatmul.msk.f32.gmra.mxu2 %vm51_vm1, %v33_v13 }
  0x1c   :  { %362 = vmatmul.msk.f32.gmra.mxu3 %vm51_vm1, %v41_v14 }
  0x1d   :  { %338 = vmatmul.msk.f32.gmra.mxu0 %vm51_vm1, %v17_v15 }
  0x1e   :  { %346 = vmatmul.msk.f32.gmra.mxu1 %vm51_vm1, %v25_v16 }
  0x23   :  { %355 = vmatmul.msk.f32.gmra.mxu2 %vm51_vm1, %v34_v17 }
  0x24   :  { %363 = vmatmul.msk.f32.gmra.mxu3 %vm51_vm1, %v42_v18 }
  0x25   :  { %339 = vmatmul.msk.f32.gmra.mxu0 %vm51_vm1, %v18_v19 }
  0x26   :  { %347 = vmatmul.msk.f32.gmra.mxu1 %vm51_vm1, %v26_v20 }
  0x2b   :  { %356 = vmatmul.msk.f32.gmra.mxu2 %vm51_vm1, %v35_v21 }
  0x2c   :  { %364 = vmatmul.msk.f32.gmra.mxu3 %vm51_vm1, %v43_v22 }
  0x2d   :  { %340 = vmatmul.msk.f32.gmra.mxu0 %vm51_vm1, %v19_v23 }
  0x2e   :  { %348 = vmatmul.msk.f32.gmra.mxu1 %vm51_vm1, %v27_v24 }
  0x33   :  { %357 = vmatmul.msk.f32.gmra.mxu2 %vm51_vm1, %v36_v25 }
  0x34   :  { %365 = vmatmul.msk.f32.gmra.mxu3 %vm51_vm1, %v44_v26 }
  0x35   :  { %341 = vmatmul.msk.f32.gmra.mxu0 %vm51_vm1, %v20_v27 }
  0x36   :  { %349 = vmatmul.msk.f32.gmra.mxu1 %vm51_vm1, %v28_v28 }
  0x3b   :  { %358 = vmatmul.msk.f32.gmra.mxu2 %vm51_vm1, %v37_v29 }
  0x3c   :  { %366 = vmatmul.msk.f32.gmra.mxu3 %vm51_vm1, %v45_v30 }
  0x3d   :  { %342 = vmatmul.msk.f32.gmra.mxu0 %vm51_vm1, %v21_v31 }
  0x3e   :  { %350 = vmatmul.msk.f32.gmra.mxu1 %vm51_vm1, %v29_v32 }
  0x82   :  { %v169_v34 = vpop.f32.mrf.mxu0 }
  0x83   :  { %v193_v35 = vpop.f32.mrf.mxu1  ;;  %v170_v36 = vadd.f32 %v525_v33, %v169_v34 }
  0x84   :  { %v194_v37 = vadd.f32 %v525_v33, %v193_v35 }
  0x85   :  { %v265_v38 = vmax.f32 %v170_v36, 0.0 }
  0x86   :  { %v273_v39 = vmax.f32 %v194_v37, 0.0  ;;  %v217_v40 = vpop.f32.mrf.mxu2 }
  0x87   :  { %v241_v41 = vpop.f32.mrf.mxu3  ;;  %298 = vst.msk [vmem:[%s690_s3] sm:$0xff] %vm297_vm2, %v265_v38  ;;  %v218_v42 = vadd.f32 %v525_v33, %v217_v40 }
  0x88   :  { %v242_v43 = vadd.f32 %v525_v33, %v241_v41  ;;  %306 = vst.msk [vmem:[%s690_s3 + $0x40] sm:$0xff] %vm297_vm2, %v273_v39 }
  0x89   :  { %v281_v44 = vmax.f32 %v218_v42, 0.0 }
  0x8a   :  { %v289_v45 = vmax.f32 %v242_v43, 0.0  ;;  %v172_v46 = vpop.f32.mrf.mxu0 }
  0x8b   :  { %v196_v47 = vpop.f32.mrf.mxu1  ;;  %314 = vst.msk [vmem:[%s690_s3 + $0x80] sm:$0xff] %vm297_vm2, %v281_v44  ;;  %v173_v48 = vadd.f32 %v525_v33, %v172_v46 }
  0x8c   :  { %v197_v49 = vadd.f32 %v525_v33, %v196_v47  ;;  %322 = vst.msk [vmem:[%s690_s3 + $0xc0] sm:$0xff] %vm297_vm2, %v289_v45 }
  0x8d   :  { %v266_v50 = vmax.f32 %v173_v48, 0.0 }
  0x8e   :  { %v274_v51 = vmax.f32 %v197_v49, 0.0  ;;  %v220_v52 = vpop.f32.mrf.mxu2 }
  0x8f   :  { %v244_v53 = vpop.f32.mrf.mxu3  ;;  %299 = vst.msk [vmem:[%s690_s3 + $0x8] sm:$0xff] %vm297_vm2, %v266_v50  ;;  %v221_v54 = vadd.f32 %v525_v33, %v220_v52 }
  0x90   :  { %v245_v55 = vadd.f32 %v525_v33, %v244_v53  ;;  %307 = vst.msk [vmem:[%s690_s3 + $0x48] sm:$0xff] %vm297_vm2, %v274_v51 }
  0x91   :  { %v282_v56 = vmax.f32 %v221_v54, 0.0 }
  0x92   :  { %v290_v57 = vmax.f32 %v245_v55, 0.0  ;;  %v175_v58 = vpop.f32.mrf.mxu0 }
  0x93   :  { %v199_v59 = vpop.f32.mrf.mxu1  ;;  %315 = vst.msk [vmem:[%s690_s3 + $0x88] sm:$0xff] %vm297_vm2, %v282_v56  ;;  %v176_v60 = vadd.f32 %v525_v33, %v175_v58 }
  0x94   :  { %v200_v61 = vadd.f32 %v525_v33, %v199_v59  ;;  %323 = vst.msk [vmem:[%s690_s3 + $0xc8] sm:$0xff] %vm297_vm2, %v290_v57 }
  0x95   :  { %v267_v62 = vmax.f32 %v176_v60, 0.0 }
  0x96   :  { %v275_v63 = vmax.f32 %v200_v61, 0.0  ;;  %v223_v0 = vpop.f32.mrf.mxu2 }
  0x97   :  { %v247_v1 = vpop.f32.mrf.mxu3  ;;  %300 = vst.msk [vmem:[%s690_s3 + $0x10] sm:$0xff] %vm297_vm2, %v267_v62  ;;  %v224_v2 = vadd.f32 %v525_v33, %v223_v0 }
  0x98   :  { %v248_v3 = vadd.f32 %v525_v33, %v247_v1  ;;  %308 = vst.msk [vmem:[%s690_s3 + $0x50] sm:$0xff] %vm297_vm2, %v275_v63 }
  0x99   :  { %v283_v4 = vmax.f32 %v224_v2, 0.0 }
  0x9a   :  { %v291_v5 = vmax.f32 %v248_v3, 0.0  ;;  %v178_v6 = vpop.f32.mrf.mxu0 }
  0x9b   :  { %v202_v7 = vpop.f32.mrf.mxu1  ;;  %316 = vst.msk [vmem:[%s690_s3 + $0x90] sm:$0xff] %vm297_vm2, %v283_v4  ;;  %v179_v8 = vadd.f32 %v525_v33, %v178_v6 }
  0x9c   :  { %v203_v9 = vadd.f32 %v525_v33, %v202_v7  ;;  %324 = vst.msk [vmem:[%s690_s3 + $0xd0] sm:$0xff] %vm297_vm2, %v291_v5 }
  0x9d   :  { %v268_v10 = vmax.f32 %v179_v8, 0.0 }
  0x9e   :  { %v276_v11 = vmax.f32 %v203_v9, 0.0  ;;  %v226_v12 = vpop.f32.mrf.mxu2 }
  0x9f   :  { %v250_v13 = vpop.f32.mrf.mxu3  ;;  %301 = vst.msk [vmem:[%s690_s3 + $0x18] sm:$0xff] %vm297_vm2, %v268_v10  ;;  %v227_v14 = vadd.f32 %v525_v33, %v226_v12 }
  0xa0   :  { %v251_v15 = vadd.f32 %v525_v33, %v250_v13  ;;  %309 = vst.msk [vmem:[%s690_s3 + $0x58] sm:$0xff] %vm297_vm2, %v276_v11 }
  0xa1   :  { %v284_v16 = vmax.f32 %v227_v14, 0.0 }
  0xa2   :  { %v292_v17 = vmax.f32 %v251_v15, 0.0  ;;  %v181_v18 = vpop.f32.mrf.mxu0 }
  0xa3   :  { %v205_v19 = vpop.f32.mrf.mxu1  ;;  %317 = vst.msk [vmem:[%s690_s3 + $0x98] sm:$0xff] %vm297_vm2, %v284_v16  ;;  %v182_v20 = vadd.f32 %v525_v33, %v181_v18 }
  0xa4   :  { %v206_v21 = vadd.f32 %v525_v33, %v205_v19  ;;  %325 = vst.msk [vmem:[%s690_s3 + $0xd8] sm:$0xff] %vm297_vm2, %v292_v17 }
  0xa5   :  { %v269_v22 = vmax.f32 %v182_v20, 0.0 }
  0xa6   :  { %v277_v23 = vmax.f32 %v206_v21, 0.0  ;;  %v229_v24 = vpop.f32.mrf.mxu2 }
  0xa7   :  { %v253_v25 = vpop.f32.mrf.mxu3  ;;  %302 = vst.msk [vmem:[%s690_s3 + $0x20] sm:$0xff] %vm297_vm2, %v269_v22  ;;  %v230_v26 = vadd.f32 %v525_v33, %v229_v24 }
  0xa8   :  { %v254_v27 = vadd.f32 %v525_v33, %v253_v25  ;;  %310 = vst.msk [vmem:[%s690_s3 + $0x60] sm:$0xff] %vm297_vm2, %v277_v23 }
  0xa9   :  { %v285_v28 = vmax.f32 %v230_v26, 0.0 }
  0xaa   :  { %v293_v29 = vmax.f32 %v254_v27, 0.0  ;;  %v184_v30 = vpop.f32.mrf.mxu0 }
  0xab   :  { %v208_v31 = vpop.f32.mrf.mxu1  ;;  %318 = vst.msk [vmem:[%s690_s3 + $0xa0] sm:$0xff] %vm297_vm2, %v285_v28  ;;  %v185_v32 = vadd.f32 %v525_v33, %v184_v30 }
  0xac   :  { %v209_v34 = vadd.f32 %v525_v33, %v208_v31  ;;  %326 = vst.msk [vmem:[%s690_s3 + $0xe0] sm:$0xff] %vm297_vm2, %v293_v29 }
  0xad   :  { %v270_v35 = vmax.f32 %v185_v32, 0.0 }
  0xae   :  { %v278_v36 = vmax.f32 %v209_v34, 0.0  ;;  %v232_v37 = vpop.f32.mrf.mxu2 }
  0xaf   :  { %v256_v38 = vpop.f32.mrf.mxu3  ;;  %303 = vst.msk [vmem:[%s690_s3 + $0x28] sm:$0xff] %vm297_vm2, %v270_v35  ;;  %v233_v39 = vadd.f32 %v525_v33, %v232_v37 }
  0xb0   :  { %v257_v40 = vadd.f32 %v525_v33, %v256_v38  ;;  %311 = vst.msk [vmem:[%s690_s3 + $0x68] sm:$0xff] %vm297_vm2, %v278_v36 }
  0xb1   :  { %v286_v41 = vmax.f32 %v233_v39, 0.0 }
  0xb2   :  { %v294_v42 = vmax.f32 %v257_v40, 0.0  ;;  %v187_v43 = vpop.f32.mrf.mxu0 }
  0xb3   :  { %v211_v44 = vpop.f32.mrf.mxu1  ;;  %319 = vst.msk [vmem:[%s690_s3 + $0xa8] sm:$0xff] %vm297_vm2, %v286_v41  ;;  %v188_v45 = vadd.f32 %v525_v33, %v187_v43 }
  0xb4   :  { %v212_v46 = vadd.f32 %v525_v33, %v211_v44  ;;  %327 = vst.msk [vmem:[%s690_s3 + $0xe8] sm:$0xff] %vm297_vm2, %v294_v42 }
  0xb5   :  { %v271_v47 = vmax.f32 %v188_v45, 0.0 }
  0xb6   :  { %v279_v48 = vmax.f32 %v212_v46, 0.0  ;;  %v235_v49 = vpop.f32.mrf.mxu2 }
  0xb7   :  { %v259_v50 = vpop.f32.mrf.mxu3  ;;  %304 = vst.msk [vmem:[%s690_s3 + $0x30] sm:$0xff] %vm297_vm2, %v271_v47  ;;  %v236_v51 = vadd.f32 %v525_v33, %v235_v49 }
  0xb8   :  { %v260_v52 = vadd.f32 %v525_v33, %v259_v50  ;;  %312 = vst.msk [vmem:[%s690_s3 + $0x70] sm:$0xff] %vm297_vm2, %v279_v48 }
  0xb9   :  { %v287_v53 = vmax.f32 %v236_v51, 0.0 }
  0xba   :  { %v295_v54 = vmax.f32 %v260_v52, 0.0  ;;  %v190_v55 = vpop.f32.mrf.mxu0 }
  0xbb   :  { %v214_v56 = vpop.f32.mrf.mxu1  ;;  %320 = vst.msk [vmem:[%s690_s3 + $0xb0] sm:$0xff] %vm297_vm2, %v287_v53  ;;  %v191_v57 = vadd.f32 %v525_v33, %v190_v55 }
  0xbc   :  { %v215_v58 = vadd.f32 %v525_v33, %v214_v56  ;;  %328 = vst.msk [vmem:[%s690_s3 + $0xf0] sm:$0xff] %vm297_vm2, %v295_v54 }
  0xbd   :  { %v272_v59 = vmax.f32 %v191_v57, 0.0 }
  0xbe   :  { %v280_v60 = vmax.f32 %v215_v58, 0.0  ;;  %v238_v61 = vpop.f32.mrf.mxu2 }
  0xbf   :  { %v262_v62 = vpop.f32.mrf.mxu3  ;;  %305 = vst.msk [vmem:[%s690_s3 + $0x38] sm:$0xff] %vm297_vm2, %v272_v59  ;;  %v239_v63 = vadd.f32 %v525_v33, %v238_v61 }
  0xc0   :  { %v263_v0 = vadd.f32 %v525_v33, %v262_v62  ;;  %313 = vst.msk [vmem:[%s690_s3 + $0x78] sm:$0xff] %vm297_vm2, %v280_v60 }
  0xc1   :  { %v288_v1 = vmax.f32 %v239_v63, 0.0 }
  0xc2   :  { %v296_v2 = vmax.f32 %v263_v0, 0.0 }
  0xc3   :  { %321 = vst.msk [vmem:[%s690_s3 + $0xb8] sm:$0xff] %vm297_vm2, %v288_v1 }
  0xc4   :  { %329 = vst.msk [vmem:[%s690_s3 + $0xf8] sm:$0xff] %vm297_vm2, %v296_v2 }

// kernel: gvp_contrastive_forward.3
= control target key start
LH: loop header
LB: loop body
LE: loop exit
PB: predicated region body
PF: predicated region fallthrough
CT: control target
= control target key end

     0   :  { %s4910_s29 = smov 0   ;;  %s4912_s30 = smov 0   ;;  %s5532_s0 = inlined_call_operand.vmem [shape: f32[16,32], index: 0, kind: input, shape index: {}]   ;;  %s5533_s1 = inlined_call_operand.vmem [shape: f32[2,32], index: 1, kind: input, shape index: {}]   ;;  %s5534_s2 = inlined_call_operand.vmem [shape: bf16[2,32,96], index: 2, kind: input, shape index: {}]   ;;  %s5535_s3 = inlined_call_operand.vmem [shape: f32[2,1,96], index: 3, kind: input, shape index: {}]   ;;  %s5536_s4 = inlined_call_operand.vmem [shape: bf16[2,32,32], index: 4, kind: input, shape index: {}]   ;;  %s5537_s5 = inlined_call_operand.vmem [shape: f32[2,1,32], index: 5, kind: input, shape index: {}]   ;;  %s5538_s6 = inlined_call_operand.vmem [shape: f32[2,1,32], index: 6, kind: input, shape index: {}]   ;;  %s5539_s7 = inlined_call_operand.vmem [shape: f32[2,1,32], index: 7, kind: input, shape index: {}]   ;;  %s5540_s8 = inlined_call_operand.vmem [shape: bf16[2,32,2048], index: 8, kind: input, shape index: {}]   ;;  %s5541_s9 = inlined_call_operand.vmem [shape: f32[2,1,2048], index: 9, kind: input, shape index: {}]   ;;  %s5542_s10 = inlined_call_operand.vmem [shape: bf16[2,2048,32], index: 10, kind: input, shape index: {}]   ;;  %s5543_s11 = inlined_call_operand.vmem [shape: f32[2,1,32], index: 11, kind: input, shape index: {}]   ;;  %s5544_s12 = inlined_call_operand.vmem [shape: f32[2,1,32], index: 12, kind: input, shape index: {}]   ;;  %s5545_s13 = inlined_call_operand.vmem [shape: f32[2,1,32], index: 13, kind: input, shape index: {}]   ;;  %s5546_s14 = inlined_call_operand.vmem [shape: f32[2,2,32], index: 14, kind: output, shape index: {}]  }
   0x1   :  { %5552 = sst [smem:[#allocation10_spill]] %s5532_s0  ;;  %s4914_s15 = smov 0  }
   0x2   :  { %5553 = sst [smem:[#allocation11_spill]] %s5533_s1  ;;  %s4916_s16 = smov 0  }
   0x3   :  { %5554 = sst [smem:[#allocation12_spill]] %s5534_s2  ;;  %s4918_s17 = smov 0  }
   0x4   :  { %5555 = sst [smem:[#allocation13_spill]] %s5536_s4 }
   0x5   :  { %5556 = sst [smem:[#allocation14_spill]] %s5540_s8 }
   0x6   :  { %5557 = sst [smem:[#allocation15_spill]] %s5541_s9 }
   0x7   :  { %5558 = sst [smem:[#allocation16_spill]] %s5546_s14 }
   0x8 LB: > { %5559 = sst [smem:[#allocation3_spill]] %s4802_s29  ;;  %s33_s18 = sadd.s32 1, %s4810_s15  ;;  %s4818_s17 = sphi %s4918_s17, %s24_s17   ;;  %s4814_s16 = sphi %s4916_s16, %s5584_s16   ;;  %s4810_s15 = sphi %s4914_s15, %s5583_s15   ;;  %s4806_s30 = sphi %s4912_s30, %s5582_s30   ;;  %s4802_s29 = sphi %s4910_s29, %s5581_s29  }
   0x9   : > { %5560 = sst [smem:[#allocation4_spill]] %s4810_s15  ;;  %s36_s19 = sadd.s32 1, %s4814_s16 }
   0xa   : > { %5561 = sst [smem:[#allocation5_spill]] %s4814_s16  ;;  %p34_p0 = scmp.ge.s32.totalorder %s33_s18, 2 }
   0xb   : > { %5562 = sst [smem:[#allocation6_spill]] %s4818_s17  ;;  %p3757_p1 = scmp.ge.s32.totalorder %s4818_s17, 1 }
   0xc   : > { %p528_p2 = scmp.lt.s32.totalorder %s4818_s17, 5  ;;  %s5586_s18 = smov (%p34_p0, %s33_s18), 0 }
   0xd   : > { %5563 = sst [smem:[#allocation7_spill]] %s5586_s18  ;;  %s5588_s19 = smov (!%p34_p0, %s36_s19), %s4814_s16 }
   0xe   : > { %p529_p3 = pnand %p3757_p1, %p528_p2  ;;  %p38_p4 = scmp.ge.s32.totalorder %s5588_s19, 2 }
  0x10   : > { %s5590_s19 = smov (%p38_p4, %s5588_s19), 0  ;;  %532 = sbr.rel (%p529_p3) target bundleno = 3232 (0xca0), region = 76 }
  0x11   : > { %5564 = sst [smem:[#allocation8_spill]] %s5590_s19 }
  0x15   : > { %p617_p5 = scmp.lt.s32.totalorder %s4806_s30, 1  ;;  %p621_p6 = scmp.lt.s32.totalorder %s4802_s29, 1 }
  0x16   : > { %s5565_s0 = sld [smem:[#allocation10_spill]] }
  0x17   : > { %s5592_s30 = smov (!%p617_p5, %s4806_s30), 1  ;;  %s5566_s2 = sld [smem:[#allocation12_spill]] }
  0x18   : > { %s4944_s20 = scalar_select %p621_p6, %s4802_s29, 1 }
  0x19   : > { %s3758_s21 = sshll.u32 %s5592_s30, 3  ;;  %s3768_s22 = sshll.u32 %s5592_s30, 1 }
  0x1a   : > { %s4479_s26 = sshll.u32 %s4944_s20, 4  ;;  %s5568_s4 = sld [smem:[#allocation13_spill]] }
  0x1b   : > { %s5569_s9 = sld [smem:[#allocation15_spill]]  ;;  %s4482_s14 = sshll.u32 %s4944_s20, 10 }
  0x1c   : > { %s620_s25 = scalar_lea.vmem %s5565_s0, %s3758_s21  ;;  %s5570_s8 = sld [smem:[#allocation14_spill]] }
  0x1d   : > { %s4953_s19 = scalar_lea.vmem %s5566_s2, %s4479_s26  ;;  %s4991_s21 = scalar_lea.vmem %s5542_s10, %s4482_s14 }
  0x1e   : > { %5567 = sst [smem:[#allocation9_spill]] %s4953_s19  ;;  %s4481_s19 = sshll.u32 %s4944_s20, 8 }
  0x1f   : > { %s659_s28 = scalar_lea.vmem %s5543_s11, %s4944_s20  ;;  %s665_s1 = scalar_lea.vmem %s5545_s13, %s4944_s20 }
  0x20   : > { %s4962_s29 = scalar_lea.vmem %s5568_s4, %s4479_s26  ;;  %s5572_s23 = sld [smem:[#allocation3_spill]] }
  0x21   : > { %s4980_s15 = scalar_lea.vmem %s5569_s9, %s4479_s26  ;;  %s662_s26 = scalar_lea.vmem %s5544_s12, %s4944_s20 }
  0x22   : > { %s4985_s4 = scalar_lea.vmem %s5570_s8, %s4481_s19  ;;  %s5571_s8 = sld [smem:[#allocation16_spill]] }
  0x26   : > { %p3769_p7 = scmp.ne.s32.totalorder %s5572_s23, 0 }
  0x27   : > { %s5573_s24 = sld [smem:[#allocation11_spill]] (!%p3769_p7) }
  0x28   : > { %s5008_s9 = scalar_lea.vmem %s5571_s8, %s3768_s22  ;;  %674 = sbr.rel (%p3769_p7) target bundleno = 54 (0x36), region = 80 }
  0x2d   : > { %v676_v0 = vld [vmem:[%s5573_s24] sm:$0x3]  ;;  %vm684_vm0 = vcmask 1041408   ;;  %vm686_vm1 = vcmask 1043456   ;;  %vm688_vm2 = vcmask 1045504   ;;  %vm691_vm3 = vcmask 261120  }
  0x2e   : > { %v678_v1 = vrot.slane %v676_v0, 6  ;;  %v680_v2 = vrot.slane %v676_v0, 4  ;;  %v682_v3 = vrot.slane %v676_v0, 2  ;;  %v675_v4 = vld [vmem:[%s620_s25] sm:$0xff] }
  0x30   : > { %v685_v5 = vsel %vm684_vm0, %v676_v0, %v678_v1 }
  0x31   : > { %v687_v6 = vsel %vm686_vm1, %v685_v5, %v680_v2 }
  0x32   : > { %v689_v7 = vsel %vm688_vm2, %v687_v6, %v682_v3 }
  0x33   : > { %v690_v8 = vadd.f32 %v689_v7, %v675_v4 }
  0x35   : > { %692 = vst.msk [vmem:[#allocation2] sm:$0xff] %vm691_vm3, %v690_v8 }
  0x36 PF: > { %s5574_s0 = sld [smem:[#allocation9_spill]]  ;;  %vm715_vm4 = vcmask 261120   ;;  %s5575_s22 = scalar_lea.vmem %s5535_s3, %s4944_s20  ;;  %vm748_vm5 = vcmask 64512   ;;  %vm899_vm6 = vcmask 1040384   ;;  %vm844_vm7 = vcmask 9216  }
  0x37   : > { %v4702_v13 = vld [vmem:[%s5575_s22] ss:$0 sm:$0xff]  ;;  %s4820_s25 = smov 96   ;;  %s4821_s27 = smov 64   ;;  %vm895_vm8 = vcmask 15360   ;;  %vm1722_vm9 = vcmask 130048  }
  0x38   : > { %s4822_s16 = smov 88   ;;  %s4823_s18 = smov 120   ;;  %vm1724_vm10 = vcmask 195584  }
  0x39   : > { %s4824_s19 = smov 56   ;;  %s4825_s17 = smov 80  }
  0x3a   : > { %s4826_s23 = smov 112   ;;  %s4827_s14 = smov 48  }
  0x3b   : > { %s4828_s30 = smov 72   ;;  %s4829_s24 = smov 104  }
  0x3c   : > { %v4484_v9 = vld [vmem:[%s5574_s0 + $0x8] sm:$0xff]  ;;  %v4483_v10 = vld [vmem:[%s5574_s0] sm:$0xff]  ;;  %s4830_s0 = smov 40   ;;  %s4831_s2 = smov 8  }
  0x3d   : > { %v693_v11 = vld [vmem:[#allocation2] sm:$0xff]  ;;  %725 = vmatpush.bf16.msra.mxu0 %v4484_v9  ;;  %s4832_s8 = smov 16   ;;  %s4833_s22 = smov 24  }
  0x3e   : > { %v694_v12 = vpack.c.bf16 %v693_v11, %v693_v11 }
  0x41   : > { %726 = vmatpush.bf16.msra.mxu0 %v4483_v10 }
  0x44   : > { %3778 = vmatmul.msk.bf16.vlgmr.msra.gmra.mxu0 %vm715_vm4, %v694_v12 }
  0xc1   : > { %v728_v14 = vpop.f32.mrf.mxu0 }
  0xc2   : > { %v729_v15 = vadd.f32 %v4702_v13, %v728_v14 }
  0xc4   : > { %v733_v16 = vrot.slane %v729_v15, 2  ;;  %v735_v17 = vrot.slane %v729_v15, 6  ;;  %v739_v18 = vpack.c.bf16 %v729_v15, %v729_v15  ;;  %v734_v19 = vrot.slane %v729_v15, 4 }
  0xc6   : > { %v740_v20 = vpack.c.bf16 %v733_v16, %v733_v16  ;;  %v744_v21 = vunpack.c.l.b16 %v739_v18  ;;  %v742_v22 = vpack.c.bf16 %v735_v17, %v735_v17  ;;  %v741_v26 = vpack.c.bf16 %v734_v19, %v734_v19 }
  0xc8   : > { %v5022_v23 = vpack.c.b16 %v744_v21, %v744_v21  ;;  %v769_v24 = vunpack.c.l.b16 %v740_v20  ;;  %v817_v28 = vunpack.c.l.b16 %v742_v22  ;;  %v793_v29 = vunpack.c.l.b16 %v741_v26 }
  0xc9   : > { %v730_v25 = vpop.f32.mrf.mxu0 }
  0xca   : > { %v5024_v27 = vpack.c.b16 %v769_v24, %v769_v24  ;;  %746 = vrot.lane.b32.xlu1 %v5022_v23, %s4820_s25  ;;  %v5030_v30 = vpack.c.b16 %v817_v28, %v817_v28  ;;  %v5032_v31 = vpack.c.b16 %v793_v29, %v793_v29 }
  0xcc   : > { %916 = vrot.lane.b32.xlu2 %v5024_v27, %s4821_s27  ;;  %771 = vrot.lane.b32.xlu0 %v5024_v27, %s4820_s25 }
  0xd2   : > { %819 = vrot.lane.b32.xlu1 %v5030_v30, %s4820_s25 }
  0xd4   : > { %795 = vrot.lane.b32.xlu0 %v5032_v31, %s4820_s25 }
 0x126   : > { %v917_v33 = vpop.permute.xlu2 %916 }
 0x127   : > { %v922_v37 = vsel %vm899_vm6, %v917_v33, 0 }
 0x13c   : > { %v747_v32 = vpop.permute.xlu1 %746 }
 0x13d   : > { %v753_v34 = vsel %vm748_vm5, %v747_v32, 0 }
 0x13e   : > { %762 = vmatpush.bf16.xpose.msra.mxu1 %v753_v34  ;;  %v772_v35 = vpop.permute.xlu0 %771 }
 0x13f   : > { %v777_v36 = vsel %vm748_vm5, %v772_v35, 0 }
 0x140   : > { %786 = vmatpush.bf16.xpose.msra.mxu2 %v777_v36 }
 0x144   : > { %v820_v38 = vpop.permute.xlu1 %819 }
 0x145   : > { %3779 = vmatmul.msk.bf16.vlgmr.msra.gmra.mxu1 %vm748_vm5, %v739_v18  ;;  %v825_v39 = vsel %vm748_vm5, %v820_v38, 0 }
 0x146   : > { %834 = vmatpush.bf16.xpose.msrb.mxu0 %v825_v39  ;;  %v796_v40 = vpop.permute.xlu0 %795 }
 0x147   : > { %3780 = vmatmul.msk.bf16.vlgmr.msra.gmra.mxu2 %vm748_vm5, %v740_v20  ;;  %v801_v41 = vsel %vm748_vm5, %v796_v40, 0 }
 0x148   : > { %931 = vmatpush.bf16.msrb.mxu2 %v922_v37  ;;  %810 = vmatpush.bf16.xpose.msra.mxu3 %v801_v41 }
 0x14d   : > { %3782 = vmatmul.msk.bf16.vlgmr.msrb.gmra.mxu0 %vm748_vm5, %v742_v22 }
 0x14f   : > { %3781 = vmatmul.msk.bf16.vlgmr.msra.gmra.mxu3 %vm748_vm5, %v741_v26 }
 0x1c2   : > { %v764_v42 = vpop.f32.mrf.mxu1 }
 0x1c3   : > { %v840_v43 = vmul.f32 0.35355338, %v764_v42 }
 0x1c5   : > { %v845_v44 = vsel %vm844_vm7, %v840_v43, -inf }
 0x1c6   : > { %846 = vmax.xlane.f32.xlu0 %v845_v44 }
 0x1ca   : > { %v766_v45 = vpop.f32.mrf.mxu1  ;;  %v788_v46 = vpop.f32.mrf.mxu2 }
 0x1cb   : > { %v841_v47 = vmul.f32 0.35355338, %v788_v46  ;;  %v836_v48 = vpop.f32.mrf.mxu0 }
 0x1cc   : > { %v843_v49 = vmul.f32 0.35355338, %v836_v48 }
 0x1cd   : > { %v848_v50 = vsel %vm844_vm7, %v841_v47, -inf }
 0x1ce   : > { %v854_v51 = vsel %vm844_vm7, %v843_v49, -inf  ;;  %849 = vmax.xlane.f32.xlu2 %v848_v50 }
 0x1cf   : > { %855 = vmax.xlane.f32.xlu1 %v854_v51 }
 0x1d2   : > { %v790_v52 = vpop.f32.mrf.mxu2  ;;  %v812_v53 = vpop.f32.mrf.mxu3 }
 0x1d3   : > { %v842_v54 = vmul.f32 0.35355338, %v812_v53  ;;  %v838_v55 = vpop.f32.mrf.mxu0 }
 0x1d5   : > { %v851_v56 = vsel %vm844_vm7, %v842_v54, -inf }
 0x1d6   : > { %852 = vmax.xlane.f32.xlu2 %v851_v56 }
 0x1da   : > { %1004 = vrot.lane.b32.xlu0 %v5024_v27, %s4822_s16  ;;  %v814_v57 = vpop.f32.mrf.mxu3 }
 0x1e8   : > { %1027 = vrot.lane.b32.xlu1 %v5032_v31, %s4822_s16 }
 0x1ee   : > { %937 = vrot.lane.b32.xlu2 %v5032_v31, %s4821_s27 }
 0x1f0   : > { %1002 = vrot.lane.b32.xlu1 %v5024_v27, %s4823_s18 }
 0x1f8   : > { %1025 = vrot.lane.b32.xlu1 %v5032_v31, %s4823_s18 }
 0x200   : > { %893 = vrot.lane.b32.xlu1 %v5022_v23, %s4821_s27 }
 0x208   : > { %981 = vrot.lane.b32.xlu1 %v5022_v23, %s4822_s16 }
 0x210   : > { %1050 = vrot.lane.b32.xlu1 %v5030_v30, %s4822_s16  ;;  %s5576_s16 = scalar_lea.vmem %s5537_s5, %s4944_s20 }
 0x218   : > { %1048 = vrot.lane.b32.xlu1 %v5030_v30, %s4823_s18 }
 0x239   : > { %v847_v58 = vpop.xlane.xlu0 %846 }
 0x23a   : > { %v857_v59 = vsub.f32 %v840_v43, %v847_v58 }
 0x23c   : > { %v861_v60 = vmul.f32 1.442695, %v857_v59 }
 0x23e   : > { %4709 = vpow2.f32 %v861_v60 }
 0x241   : > { %v850_v61 = vpop.xlane.xlu2 %849 }
 0x242   : > { %v856_v62 = vpop.xlane.xlu1 %855  ;;  %v858_v63 = vsub.f32 %v841_v47, %v850_v61 }
 0x243   : > { %v860_v0 = vsub.f32 %v843_v49, %v856_v62 }
 0x244   : > { %v4710_v1 = vpop.eup %4709  ;;  %v863_v2 = vmul.f32 1.442695, %v858_v63 }
 0x245   : > { %v867_v3 = vmul.f32 1.442695, %v860_v0  ;;  %v869_v4 = vsel %vm844_vm7, %v4710_v1, 0.0 }
 0x246   : > { %4711 = vpow2.f32 %v863_v2  ;;  %870 = vadd.xlane.f32.xlu2 %v869_v4 }
 0x247   : > { %4713 = vpow2.f32 %v867_v3 }
 0x249   : > { %v853_v5 = vpop.xlane.xlu2 %852 }
 0x24a   : > { %v859_v6 = vsub.f32 %v842_v54, %v853_v5 }
 0x24c   : > { %v4712_v7 = vpop.eup %4711  ;;  %v865_v8 = vmul.f32 1.442695, %v859_v6  ;;  %v1005_v9 = vpop.permute.xlu0 %1004 }
 0x24d   : > { %v4714_v10 = vpop.eup %4713  ;;  %v1010_v11 = vsel %vm748_vm5, %v1005_v9, 0  ;;  %v872_v12 = vsel %vm844_vm7, %v4712_v7, 0.0 }
 0x24e   : > { %4715 = vpow2.f32 %v865_v8  ;;  %v878_v13 = vsel %vm844_vm7, %v4714_v10, 0.0  ;;  %873 = vadd.xlane.f32.xlu2 %v872_v12  ;;  %1019 = vmatpush.bf16.xpose.msra.mxu2 %v1010_v11 }
 0x24f   : > { %879 = vadd.xlane.f32.xlu0 %v878_v13 }
 0x251   : > { %v938_v14 = vpop.permute.xlu2 %937 }
 0x252   : > { %v943_v15 = vsel %vm899_vm6, %v938_v14, 0 }
 0x253   : > { %952 = vmatpush.bf16.msrb.mxu3 %v943_v15 }
 0x254   : > { %v4716_v16 = vpop.eup %4715 }
 0x255   : > { %v875_v17 = vsel %vm844_vm7, %v4716_v16, 0.0 }
 0x256   : > { %876 = vadd.xlane.f32.xlu2 %v875_v17 }
 0x25a   : > { %v1028_v18 = vpop.permute.xlu1 %1027 }
 0x25b   : > { %v1033_v19 = vsel %vm748_vm5, %v1028_v18, 0 }
 0x25c   : > { %1042 = vmatpush.bf16.xpose.msra.mxu3 %v1033_v19 }
 0x262   : > { %v1003_v20 = vpop.permute.xlu1 %1002 }
 0x263   : > { %979 = vrot.lane.b32.xlu0 %v5022_v23, %s4823_s18 }
 0x26a   : > { %v1026_v21 = vpop.permute.xlu1 %1025 }
 0x26e   : > { %958 = vrot.lane.b32.xlu2 %v5030_v30, %s4821_s27 }
 0x272   : > { %v894_v22 = vpop.permute.xlu1 %893 }
 0x273   : > { %v901_v24 = vsel %vm899_vm6, %v894_v22, 0 }
 0x274   : > { %910 = vmatpush.bf16.msrb.mxu1 %v901_v24 }
 0x27a   : > { %v982_v25 = vpop.permute.xlu1 %981 }
 0x27b   : > { %v987_v26 = vsel %vm748_vm5, %v982_v25, 0 }
 0x27c   : > { %996 = vmatpush.bf16.xpose.msra.mxu1 %v987_v26 }
 0x282   : > { %v1051_v42 = vpop.permute.xlu1 %1050 }
 0x283   : > { %v1056_v47 = vsel %vm748_vm5, %v1051_v42, 0 }
 0x28a   : > { %v1049_v51 = vpop.permute.xlu1 %1048 }
 0x2b9   : > { %v871_v28 = vpop.xlane.xlu2 %870 }
 0x2ba   : > { %4717 = vrcp.f32 %v871_v28 }
 0x2c0   : > { %v4718_v29 = vpop.eup %4717 }
 0x2c1   : > { %v885_v32 = vmul.f32 %v4718_v29, %v4710_v1  ;;  %v874_v33 = vpop.xlane.xlu2 %873 }
 0x2c2   : > { %4719 = vrcp.f32 %v874_v33  ;;  %v880_v35 = vpop.xlane.xlu0 %879 }
 0x2c3   : > { %v889_v34 = vpack.c.bf16 %v885_v32, %v885_v32  ;;  %4721 = vrcp.f32 %v880_v35 }
 0x2c5   : > { %3783 = vmatmul.msk.bf16.vlgmr.msrb.gmra.mxu1 %vm895_vm8, %v889_v34 }
 0x2c8   : > { %v4720_v36 = vpop.eup %4719 }
 0x2c9   : > { %v886_v37 = vmul.f32 %v4720_v36, %v4712_v7  ;;  %v877_v38 = vpop.xlane.xlu2 %876  ;;  %v4722_v40 = vpop.eup %4721 }
 0x2ca   : > { %4723 = vrcp.f32 %v877_v38  ;;  %v888_v43 = vmul.f32 %v4722_v40, %v4714_v10 }
 0x2cb   : > { %v890_v39 = vpack.c.bf16 %v886_v37, %v886_v37 }
 0x2cc   : > { %v892_v49 = vpack.c.bf16 %v888_v43, %v888_v43 }
 0x2cd   : > { %3784 = vmatmul.msk.bf16.vlgmr.msrb.gmra.mxu2 %vm895_vm8, %v890_v39 }
 0x2d0   : > { %v4724_v41 = vpop.eup %4723 }
 0x2d1   : > { %v887_v44 = vmul.f32 %v4724_v41, %v4716_v16  ;;  %v959_v45 = vpop.permute.xlu2 %958 }
 0x2d2   : > { %v964_v46 = vsel %vm899_vm6, %v959_v45, 0 }
 0x2d3   : > { %973 = vmatpush.bf16.msra.mxu0 %v964_v46  ;;  %v891_v48 = vpack.c.bf16 %v887_v44, %v887_v44 }
 0x2d5   : > { %v980_v50 = vpop.permute.xlu0 %979  ;;  %3785 = vmatmul.msk.bf16.vlgmr.msrb.gmra.mxu3 %vm895_vm8, %v891_v48 }
 0x2d6   : > { %3787 = vmatmul.msk.bf16.vlgmr.msra.gmra.mxu1 %vm748_vm5, %v980_v50  ;;  %3786 = vmatmul.msk.bf16.vlgmr.msra.gmra.mxu0 %vm895_vm8, %v892_v49 }
 0x2d7   : > { %1065 = vmatpush.bf16.xpose.msrb.mxu0 %v1056_v47 }
 0x2dd   : > { %3788 = vmatmul.msk.bf16.vlgmr.msra.gmra.mxu2 %vm748_vm5, %v1003_v20 }
 0x2e5   : > { %3789 = vmatmul.msk.bf16.vlgmr.msra.gmra.mxu3 %vm748_vm5, %v1026_v21 }
 0x2e6   : > { %3790 = vmatmul.msk.bf16.vlgmr.msrb.gmra.mxu0 %vm748_vm5, %v1049_v51 }
 0x342   : > { %v912_v52 = vpop.f32.mrf.mxu1 }
 0x343   : > { %1667 = vst [vmem:[#allocation1] ss:$4 sm:$0xff] %v912_v52 }
 0x34a   : > { %v914_v53 = vpop.f32.mrf.mxu1 }
 0x350   : > { %v933_v54 = vpop.f32.mrf.mxu2 }
 0x351   : > { %1669 = vst [vmem:[#allocation1 + $0x1] ss:$4 sm:$0xff] %v933_v54 }
 0x353   : > { %v998_v55 = vpop.f32.mrf.mxu1  ;;  %v975_v56 = vpop.f32.mrf.mxu0 }
 0x354   : > { %v1071_v57 = vmul.f32 0.35355338, %v998_v55  ;;  %1673 = vst [vmem:[#allocation1 + $0x3] ss:$4 sm:$0xff] %v975_v56 }
 0x356   : > { %v1075_v58 = vsel %vm844_vm7, %v1071_v57, -inf }
 0x357   : > { %1076 = vmax.xlane.f32.xlu0 %v1075_v58 }
 0x358   : > { %v935_v59 = vpop.f32.mrf.mxu2  ;;  %v954_v60 = vpop.f32.mrf.mxu3 }
 0x359   : > { %1671 = vst [vmem:[#allocation1 + $0x2] ss:$4 sm:$0xff] %v954_v60 }
 0x35b   : > { %v1000_v61 = vpop.f32.mrf.mxu1  ;;  %v977_v62 = vpop.f32.mrf.mxu0 }
 0x360   : > { %v956_v63 = vpop.f32.mrf.mxu3  ;;  %v1021_v0 = vpop.f32.mrf.mxu2 }
 0x361   : > { %v1072_v1 = vmul.f32 0.35355338, %v1021_v0 }
 0x363   : > { %v1067_v2 = vpop.f32.mrf.mxu0  ;;  %v1078_v3 = vsel %vm844_vm7, %v1072_v1, -inf }
 0x364   : > { %1079 = vmax.xlane.f32.xlu2 %v1078_v3  ;;  %v1074_v4 = vmul.f32 0.35355338, %v1067_v2 }
 0x366   : > { %v1084_v10 = vsel %vm844_vm7, %v1074_v4, -inf }
 0x368   : > { %v1023_v5 = vpop.f32.mrf.mxu2  ;;  %v1044_v6 = vpop.f32.mrf.mxu3 }
 0x369   : > { %v1073_v7 = vmul.f32 0.35355338, %v1044_v6 }
 0x36b   : > { %1165 = vrot.lane.b32.xlu0 %v5032_v31, %s4824_s19  ;;  %v1069_v8 = vpop.f32.mrf.mxu0  ;;  %v1081_v9 = vsel %vm844_vm7, %v1073_v7, -inf }
 0x36c   : > { %1082 = vmax.xlane.f32.xlu1 %v1081_v9  ;;  %1085 = vmax.xlane.f32.xlu2 %v1084_v10  ;;  %v5138_v8 = vld.sshfl [vmem:[#allocation1] sm:$0xff pattern:$0x73625140] }
 0x370   : > { %v1046_v11 = vpop.f32.mrf.mxu3 }
 0x373   : > { %1232 = vrot.lane.b32.xlu0 %v5024_v27, %s4825_s17 }
 0x37b   : > { %1186 = vrot.lane.b32.xlu0 %v5030_v30, %s4824_s19 }
 0x383   : > { %1253 = vrot.lane.b32.xlu0 %v5032_v31, %s4826_s23 }
 0x385   : > { %1144 = vrot.lane.b32.xlu1 %v5024_v27, %s4824_s19 }
 0x38b   : > { %1278 = vrot.lane.b32.xlu0 %v5030_v30, %s4825_s17 }
 0x3ca   : > { %v1077_v12 = vpop.xlane.xlu0 %1076 }
 0x3cb   : > { %v1087_v13 = vsub.f32 %v1071_v57, %v1077_v12 }
 0x3cd   : > { %v1091_v14 = vmul.f32 1.442695, %v1087_v13 }
 0x3cf   : > { %4725 = vpow2.f32 %v1091_v14 }
 0x3d5   : > { %v5102_v15 = vpop.eup %4725 }
 0x3d6   : > { %v1099_v16 = vsel %vm844_vm7, %v5102_v15, 0.0 }
 0x3d7   : > { %1100 = vadd.xlane.f32.xlu2 %v1099_v16  ;;  %v1080_v17 = vpop.xlane.xlu2 %1079 }
 0x3d8   : > { %v1088_v18 = vsub.f32 %v1072_v1, %v1080_v17 }
 0x3da   : > { %v1093_v19 = vmul.f32 1.442695, %v1088_v18 }
 0x3dc   : > { %4727 = vpow2.f32 %v1093_v19 }
 0x3dd   : > { %v1166_v20 = vpop.permute.xlu0 %1165 }
 0x3de   : > { %v1171_v21 = vsel %vm899_vm6, %v1166_v20, 0 }
 0x3df   : > { %1180 = vmatpush.bf16.msrb.mxu3 %v1171_v21  ;;  %v1086_v22 = vpop.xlane.xlu2 %1085  ;;  %v1083_v24 = vpop.xlane.xlu1 %1082 }
 0x3e0   : > { %v1090_v25 = vsub.f32 %v1074_v4, %v1086_v22  ;;  %v1089_v29 = vsub.f32 %v1073_v7, %v1083_v24 }
 0x3e2   : > { %v4728_v26 = vpop.eup %4727  ;;  %v1097_v28 = vmul.f32 1.442695, %v1090_v25  ;;  %v1095_v34 = vmul.f32 1.442695, %v1089_v29 }
 0x3e3   : > { %v1102_v32 = vsel %vm844_vm7, %v4728_v26, 0.0 }
 0x3e4   : > { %1103 = vadd.xlane.f32.xlu1 %v1102_v32  ;;  %4729 = vpow2.f32 %v1097_v28 }
 0x3e5   : > { %v1233_v33 = vpop.permute.xlu0 %1232  ;;  %4731 = vpow2.f32 %v1095_v34 }
 0x3e6   : > { %v1238_v44 = vsel %vm748_vm5, %v1233_v33, 0 }
 0x3ea   : > { %v4730_v35 = vpop.eup %4729 }
 0x3eb   : > { %v1108_v36 = vsel %vm844_vm7, %v4730_v35, 0.0  ;;  %v4732_v39 = vpop.eup %4731 }
 0x3ec   : > { %1109 = vadd.xlane.f32.xlu2 %v1108_v36  ;;  %v1105_v40 = vsel %vm844_vm7, %v4732_v39, 0.0 }
 0x3ed   : > { %v1187_v37 = vpop.permute.xlu0 %1186 }
 0x3ee   : > { %v1192_v38 = vsel %vm899_vm6, %v1187_v37, 0 }
 0x3ef   : > { %1201 = vmatpush.bf16.msra.mxu0 %v1192_v38 }
 0x3f4   : > { %1106 = vadd.xlane.f32.xlu2 %v1105_v40 }
 0x3f5   : > { %v1254_v41 = vpop.permute.xlu0 %1253 }
 0x3f7   : > { %v1145_v42 = vpop.permute.xlu1 %1144 }
 0x3f8   : > { %v1150_v43 = vsel %vm899_vm6, %v1145_v42, 0 }
 0x3f9   : > { %1159 = vmatpush.bf16.msrb.mxu2 %v1150_v43 }
 0x3fd   : > { %1247 = vmatpush.bf16.xpose.msra.mxu2 %v1238_v44  ;;  %v1279_v45 = vpop.permute.xlu0 %1278  ;;  %1123 = vrot.lane.b32.xlu1 %v5022_v23, %s4824_s19  ;;  %s5577_s19 = scalar_lea.vmem %s5538_s6, %s4944_s20 }
 0x3fe   : > { %v1284_v46 = vsel %vm748_vm5, %v1279_v45, 0 }
 0x3ff   : > { %1293 = vmatpush.bf16.xpose.msrb.mxu0 %v1284_v46 }
 0x405   : > { %1230 = vrot.lane.b32.xlu1 %v5024_v27, %s4826_s23 }
 0x40c   : > { %1255 = vrot.lane.b32.xlu2 %v5032_v31, %s4825_s17 }
 0x40d   : > { %1209 = vrot.lane.b32.xlu1 %v5022_v23, %s4825_s17 }
 0x414   : > { %1207 = vrot.lane.b32.xlu2 %v5022_v23, %s4826_s23 }
 0x415   : > { %1276 = vrot.lane.b32.xlu1 %v5030_v30, %s4826_s23 }
 0x44a   : > { %v1101_v48 = vpop.xlane.xlu2 %1100 }
 0x457   : > { %v1104_v47 = vpop.xlane.xlu1 %1103 }
 0x458   : > { %4733 = vrcp.f32 %v1104_v47 }
 0x45e   : > { %v4734_v49 = vpop.eup %4733 }
 0x45f   : > { %v1116_v50 = vmul.f32 %v4734_v49, %v4728_v26  ;;  %v1110_v51 = vpop.xlane.xlu2 %1109 }
 0x460   : > { %4735 = vrcp.f32 %v1110_v51 }
 0x461   : > { %v1120_v52 = vpack.c.bf16 %v1116_v50, %v1116_v50  ;;  %4737 = vrcp.f32 %v1101_v48 }
 0x463   : > { %3792 = vmatmul.msk.bf16.vlgmr.msrb.gmra.mxu2 %vm895_vm8, %v1120_v52 }
 0x466   : > { %v4736_v53 = vpop.eup %4735 }
 0x467   : > { %v1118_v54 = vmul.f32 %v4736_v53, %v4730_v35  ;;  %v1107_v55 = vpop.xlane.xlu2 %1106  ;;  %v4738_v57 = vpop.eup %4737 }
 0x468   : > { %4739 = vrcp.f32 %v1107_v55  ;;  %v1115_v58 = vmul.f32 %v4738_v57, %v5102_v15 }
 0x469   : > { %v1122_v56 = vpack.c.bf16 %v1118_v54, %v1118_v54 }
 0x46a   : > { %v1119_v1 = vpack.c.bf16 %v1115_v58, %v1115_v58 }
 0x46b   : > { %3794 = vmatmul.msk.bf16.vlgmr.msra.gmra.mxu0 %vm895_vm8, %v1122_v56 }
 0x46e   : > { %v4740_v59 = vpop.eup %4739 }
 0x46f   : > { %v1124_v60 = vpop.permute.xlu1 %1123  ;;  %v1117_v61 = vmul.f32 %v4740_v59, %v4732_v39  ;;  %v1256_v63 = vpop.permute.xlu2 %1255 }
 0x470   : > { %v1129_v62 = vsel %vm899_vm6, %v1124_v60, 0  ;;  %v1261_v0 = vsel %vm748_vm5, %v1256_v63, 0 }
 0x471   : > { %1138 = vmatpush.bf16.msrb.mxu1 %v1129_v62  ;;  %v1121_v2 = vpack.c.bf16 %v1117_v61, %v1117_v61  ;;  %1270 = vmatpush.bf16.xpose.msra.mxu3 %v1261_v0 }
 0x473   : > { %3793 = vmatmul.msk.bf16.vlgmr.msrb.gmra.mxu3 %vm895_vm8, %v1121_v2 }
 0x474   : > { %3791 = vmatmul.msk.bf16.vlgmr.msrb.gmra.mxu1 %vm895_vm8, %v1119_v1 }
 0x477   : > { %v1231_v3 = vpop.permute.xlu1 %1230  ;;  %v1208_v6 = vpop.permute.xlu2 %1207 }
 0x478   : > { %3796 = vmatmul.msk.bf16.vlgmr.msra.gmra.mxu2 %vm748_vm5, %v1231_v3 }
 0x47f   : > { %v1210_v4 = vpop.permute.xlu1 %1209 }
 0x480   : > { %v1215_v5 = vsel %vm748_vm5, %v1210_v4, 0 }
 0x481   : > { %1224 = vmatpush.bf16.xpose.msra.mxu1 %v1215_v5 }
 0x483   : > { %3797 = vmatmul.msk.bf16.vlgmr.msra.gmra.mxu3 %vm748_vm5, %v1254_v41 }
 0x487   : > { %v1277_v7 = vpop.permute.xlu1 %1276 }
 0x488   : > { %3795 = vmatmul.msk.bf16.vlgmr.msra.gmra.mxu1 %vm748_vm5, %v1208_v6  ;;  %3798 = vmatmul.msk.bf16.vlgmr.msrb.gmra.mxu0 %vm748_vm5, %v1277_v7 }
 0x4e6   : > { %v1161_v9 = vpop.f32.mrf.mxu2 }
 0x4e7   : > { %1682 = vst [vmem:[#allocation1 + $0x1] ss:$4 sm:$0xff] %v1161_v9 }
 0x4e8   : > { %v1203_v10 = vpop.f32.mrf.mxu0 }
 0x4e9   : > { %1686 = vst [vmem:[#allocation1 + $0x3] ss:$4 sm:$0xff] %v1203_v10 }
 0x4ee   : > { %v1163_v11 = vpop.f32.mrf.mxu2 }
 0x4f0   : > { %v1205_v12 = vpop.f32.mrf.mxu0 }
 0x4f1   : > { %v1140_v13 = vpop.f32.mrf.mxu1 }
 0x4f2   : > { %1680 = vst [vmem:[#allocation1] ss:$4 sm:$0xff] %v1140_v13 }
 0x4f6   : > { %v1182_v14 = vpop.f32.mrf.mxu3 }
 0x4f7   : > { %1684 = vst [vmem:[#allocation1 + $0x2] ss:$4 sm:$0xff] %v1182_v14 }
 0x4f9   : > { %v1142_v15 = vpop.f32.mrf.mxu1 }
 0x4fb   : > { %v1249_v16 = vpop.f32.mrf.mxu2 }
 0x4fc   : > { %v1300_v17 = vmul.f32 0.35355338, %v1249_v16 }
 0x4fe   : > { %v1306_v18 = vsel %vm844_vm7, %v1300_v17, -inf  ;;  %v1184_v19 = vpop.f32.mrf.mxu3 }
 0x4ff   : > { %1307 = vmax.xlane.f32.xlu0 %v1306_v18 }
 0x503   : > { %v1251_v20 = vpop.f32.mrf.mxu2 }
 0x505   : > { %v1226_v21 = vpop.f32.mrf.mxu1  ;;  %v1295_v22 = vpop.f32.mrf.mxu0 }
 0x506   : > { %v1299_v24 = vmul.f32 0.35355338, %v1226_v21  ;;  %v1272_v25 = vpop.f32.mrf.mxu3  ;;  %v1302_v34 = vmul.f32 0.35355338, %v1295_v22 }
 0x507   : > { %v1301_v26 = vmul.f32 0.35355338, %v1272_v25 }
 0x508   : > { %v1303_v28 = vsel %vm844_vm7, %v1299_v24, -inf  ;;  %v1312_v36 = vsel %vm844_vm7, %v1302_v34, -inf }
 0x509   : > { %1304 = vmax.xlane.f32.xlu1 %v1303_v28  ;;  %v1309_v29 = vsel %vm844_vm7, %v1301_v26, -inf }
 0x50a   : > { %1310 = vmax.xlane.f32.xlu2 %v1309_v29 }
 0x50d   : > { %v1228_v32 = vpop.f32.mrf.mxu1  ;;  %v1297_v33 = vpop.f32.mrf.mxu0 }
 0x50e   : > { %v1274_v35 = vpop.f32.mrf.mxu3 }
 0x50f   : > { %v5184_v35 = vld.sshfl [vmem:[#allocation1] sm:$0xff pattern:$0x73625140] }
 0x512   : > { %1313 = vmax.xlane.f32.xlu2 %v1312_v36 }
 0x513   : > { %1393 = vrot.lane.b32.xlu0 %v5032_v31, %s4827_s14 }
 0x51b   : > { %1351 = vrot.lane.b32.xlu0 %v5022_v23, %s4827_s14 }
 0x522   : > { %1414 = vrot.lane.b32.xlu1 %v5030_v30, %s4827_s14 }
 0x523   : > { %1483 = vrot.lane.b32.xlu0 %v5032_v31, %s4828_s30 }
 0x52a   : > { %1372 = vrot.lane.b32.xlu2 %v5024_v27, %s4827_s14  ;;  %s5578_s14 = scalar_lea.vmem %s5539_s7, %s4944_s20 }
 0x52b   : > { %1481 = vrot.lane.b32.xlu0 %v5032_v31, %s4829_s24 }
 0x532   : > { %1460 = vrot.lane.b32.xlu2 %v5024_v27, %s4828_s30 }
 0x53a   : > { %1458 = vrot.lane.b32.xlu2 %v5024_v27, %s4829_s24 }
 0x542   : > { %1437 = vrot.lane.b32.xlu2 %v5022_v23, %s4828_s30 }
 0x54a   : > { %1504 = vrot.lane.b32.xlu2 %v5030_v30, %s4829_s24 }
 0x572   : > { %v1308_v37 = vpop.xlane.xlu0 %1307 }
 0x573   : > { %v1316_v38 = vsub.f32 %v1300_v17, %v1308_v37 }
 0x575   : > { %v1321_v39 = vmul.f32 1.442695, %v1316_v38 }
 0x577   : > { %4741 = vpow2.f32 %v1321_v39 }
 0x57c   : > { %v1305_v40 = vpop.xlane.xlu1 %1304 }
 0x57d   : > { %v4742_v41 = vpop.eup %4741  ;;  %v1315_v42 = vsub.f32 %v1299_v24, %v1305_v40  ;;  %v1311_v43 = vpop.xlane.xlu2 %1310 }
 0x57e   : > { %v1330_v44 = vsel %vm844_vm7, %v4742_v41, 0.0  ;;  %v1317_v52 = vsub.f32 %v1301_v26, %v1311_v43 }
 0x57f   : > { %v1319_v45 = vmul.f32 1.442695, %v1315_v42  ;;  %1331 = vadd.xlane.f32.xlu0 %v1330_v44 }
 0x580   : > { %v1323_v54 = vmul.f32 1.442695, %v1317_v52 }
 0x581   : > { %4743 = vpow2.f32 %v1319_v45 }
 0x585   : > { %v1394_v46 = vpop.permute.xlu0 %1393  ;;  %v1314_v47 = vpop.xlane.xlu2 %1313 }
 0x586   : > { %v1399_v48 = vsel %vm899_vm6, %v1394_v46, 0  ;;  %v1318_v50 = vsub.f32 %v1302_v34, %v1314_v47 }
 0x587   : > { %v4744_v49 = vpop.eup %4743  ;;  %1408 = vmatpush.bf16.msrb.mxu3 %v1399_v48 }
 0x588   : > { %v1327_v51 = vsel %vm844_vm7, %v4744_v49, 0.0  ;;  %v1325_v53 = vmul.f32 1.442695, %v1318_v50 }
 0x589   : > { %1328 = vadd.xlane.f32.xlu1 %v1327_v51 }
 0x58a   : > { %4745 = vpow2.f32 %v1325_v53 }
 0x58b   : > { %4747 = vpow2.f32 %v1323_v54 }
 0x58d   : > { %v1352_v55 = vpop.permute.xlu0 %1351  ;;  %v1373_v56 = vpop.permute.xlu2 %1372 }
 0x58e   : > { %v1357_v57 = vsel %vm899_vm6, %v1352_v55, 0  ;;  %v1378_v58 = vsel %vm899_vm6, %v1373_v56, 0 }
 0x58f   : > { %1366 = vmatpush.bf16.msrb.mxu1 %v1357_v57  ;;  %1387 = vmatpush.bf16.msrb.mxu2 %v1378_v58 }
 0x590   : > { %v4746_v59 = vpop.eup %4745 }
 0x591   : > { %v1336_v60 = vsel %vm844_vm7, %v4746_v59, 0.0  ;;  %v4748_v2 = vpop.eup %4747 }
 0x592   : > { %1337 = vadd.xlane.f32.xlu1 %v1336_v60  ;;  %v1333_v4 = vsel %vm844_vm7, %v4748_v2, 0.0 }
 0x593   : > { %1506 = vrot.lane.b32.xlu0 %v5030_v30, %s4828_s30 }
 0x594   : > { %v1415_v61 = vpop.permute.xlu1 %1414 }
 0x595   : > { %v1420_v62 = vsel %vm899_vm6, %v1415_v61, 0  ;;  %v1484_v63 = vpop.permute.xlu0 %1483  ;;  %v1461_v0 = vpop.permute.xlu2 %1460 }
 0x596   : > { %v1489_v1 = vsel %vm748_vm5, %v1484_v63, 0  ;;  %1429 = vmatpush.bf16.msra.mxu0 %v1420_v62  ;;  %v1466_v3 = vsel %vm748_vm5, %v1461_v0, 0 }
 0x597   : > { %1498 = vmatpush.bf16.xpose.msra.mxu3 %v1489_v1  ;;  %1475 = vmatpush.bf16.xpose.msra.mxu2 %v1466_v3 }
 0x59a   : > { %1334 = vadd.xlane.f32.xlu1 %v1333_v4 }
 0x59d   : > { %v1459_v5 = vpop.permute.xlu2 %1458  ;;  %v1482_v9 = vpop.permute.xlu0 %1481 }
 0x5a5   : > { %v1438_v6 = vpop.permute.xlu2 %1437 }
 0x5a6   : > { %v1443_v7 = vsel %vm748_vm5, %v1438_v6, 0 }
 0x5a7   : > { %1452 = vmatpush.bf16.xpose.msra.mxu1 %v1443_v7 }
 0x5ad   : > { %v1505_v32 = vpop.permute.xlu2 %1504 }
 0x5b3   : > { %1435 = vrot.lane.b32.xlu1 %v5022_v23, %s4829_s24 }
 0x5f2   : > { %v1332_v10 = vpop.xlane.xlu0 %1331 }
 0x5f3   : > { %4749 = vrcp.f32 %v1332_v10 }
 0x5f9   : > { %v4750_v11 = vpop.eup %4749 }
 0x5fa   : > { %v1344_v12 = vmul.f32 %v4750_v11, %v4742_v41 }
 0x5fc   : > { %v1348_v13 = vpack.c.bf16 %v1344_v12, %v1344_v12  ;;  %v1329_v14 = vpop.xlane.xlu1 %1328 }
 0x5fd   : > { %4751 = vrcp.f32 %v1329_v14 }
 0x5fe   : > { %3800 = vmatmul.msk.bf16.vlgmr.msrb.gmra.mxu2 %vm895_vm8, %v1348_v13 }
 0x603   : > { %v4752_v15 = vpop.eup %4751 }
 0x604   : > { %v1343_v16 = vmul.f32 %v4752_v15, %v4744_v49 }
 0x605   : > { %v1507_v17 = vpop.permute.xlu0 %1506  ;;  %v1338_v20 = vpop.xlane.xlu1 %1337 }
 0x606   : > { %v1347_v18 = vpack.c.bf16 %v1343_v16, %v1343_v16  ;;  %v1512_v19 = vsel %vm748_vm5, %v1507_v17, 0  ;;  %4753 = vrcp.f32 %v1338_v20 }
 0x607   : > { %1521 = vmatpush.bf16.xpose.msrb.mxu0 %v1512_v19 }
 0x608   : > { %3799 = vmatmul.msk.bf16.vlgmr.msrb.gmra.mxu1 %vm895_vm8, %v1347_v18 }
 0x60c   : > { %v4754_v21 = vpop.eup %4753 }
 0x60d   : > { %v1346_v22 = vmul.f32 %v4754_v21, %v4746_v59  ;;  %v1335_v24 = vpop.xlane.xlu1 %1334 }
 0x60e   : > { %3804 = vmatmul.msk.bf16.vlgmr.msra.gmra.mxu2 %vm748_vm5, %v1459_v5  ;;  %4755 = vrcp.f32 %v1335_v24 }
 0x60f   : > { %v1350_v25 = vpack.c.bf16 %v1346_v22, %v1346_v22 }
 0x611   : > { %3802 = vmatmul.msk.bf16.vlgmr.msra.gmra.mxu0 %vm895_vm8, %v1350_v25 }
 0x614   : > { %v4756_v26 = vpop.eup %4755 }
 0x615   : > { %v1345_v28 = vmul.f32 %v4756_v26, %v4748_v2 }
 0x617   : > { %v1349_v29 = vpack.c.bf16 %v1345_v28, %v1345_v28 }
 0x619   : > { %3801 = vmatmul.msk.bf16.vlgmr.msrb.gmra.mxu3 %vm895_vm8, %v1349_v29 }
 0x621   : > { %3806 = vmatmul.msk.bf16.vlgmr.msrb.gmra.mxu0 %vm748_vm5, %v1505_v32 }
 0x625   : > { %v1436_v33 = vpop.permute.xlu1 %1435 }
 0x626   : > { %3803 = vmatmul.msk.bf16.vlgmr.msra.gmra.mxu1 %vm748_vm5, %v1436_v33 }
 0x629   : > { %3805 = vmatmul.msk.bf16.vlgmr.msra.gmra.mxu3 %vm748_vm5, %v1482_v9 }
 0x681   : > { %v1389_v34 = vpop.f32.mrf.mxu2 }
 0x682   : > { %1697 = vst [vmem:[#allocation1 + $0x1] ss:$4 sm:$0xff] %v1389_v34 }
 0x685   : > { %v1368_v36 = vpop.f32.mrf.mxu1 }
 0x686   : > { %1695 = vst [vmem:[#allocation1] ss:$4 sm:$0xff] %v1368_v36 }
 0x689   : > { %v1391_v37 = vpop.f32.mrf.mxu2 }
 0x68d   : > { %v1370_v38 = vpop.f32.mrf.mxu1 }
 0x68e   : > { %v1431_v39 = vpop.f32.mrf.mxu0 }
 0x68f   : > { %1701 = vst [vmem:[#allocation1 + $0x3] ss:$4 sm:$0xff] %v1431_v39 }
 0x691   : > { %v1477_v40 = vpop.f32.mrf.mxu2 }
 0x692   : > { %v1528_v41 = vmul.f32 0.35355338, %v1477_v40 }
 0x694   : > { %v1534_v42 = vsel %vm844_vm7, %v1528_v41, -inf }
 0x695   : > { %1535 = vmax.xlane.f32.xlu0 %v1534_v42 }
 0x696   : > { %v1433_v43 = vpop.f32.mrf.mxu0 }
 0x699   : > { %v1479_v44 = vpop.f32.mrf.mxu2 }
 0x69c   : > { %v1410_v45 = vpop.f32.mrf.mxu3 }
 0x69d   : > { %1699 = vst [vmem:[#allocation1 + $0x2] ss:$4 sm:$0xff] %v1410_v45 }
 0x69e   : > { %v1523_v46 = vpop.f32.mrf.mxu0 }
 0x69f   : > { %v1530_v47 = vmul.f32 0.35355338, %v1523_v46 }
 0x6a1   : > { %v1540_v48 = vsel %vm844_vm7, %v1530_v47, -inf }
 0x6a2   : > { %1541 = vmax.xlane.f32.xlu0 %v1540_v48 }
 0x6a3   : > { %v1454_v49 = vpop.f32.mrf.mxu1 }
 0x6a4   : > { %v1527_v50 = vmul.f32 0.35355338, %v1454_v49  ;;  %v1412_v51 = vpop.f32.mrf.mxu3  ;;  %v1702_v17 = vld.sshfl [vmem:[#allocation1] sm:$0xff pattern:$0x73625140] }
 0x6a5   : > { %v4485_v51 = vld [vmem:[%s4962_s29] sm:$0xff] }
 0x6a6   : > { %v1525_v52 = vpop.f32.mrf.mxu0  ;;  %v1531_v53 = vsel %vm844_vm7, %v1527_v50, -inf }
 0x6a7   : > { %1532 = vmax.xlane.f32.xlu2 %v1531_v53 }
 0x6ab   : > { %v1456_v54 = vpop.f32.mrf.mxu1 }
 0x6ac   : > { %v1500_v55 = vpop.f32.mrf.mxu3 }
 0x6ad   : > { %v1529_v56 = vmul.f32 0.35355338, %v1500_v55 }
 0x6af   : > { %v1537_v57 = vsel %vm844_vm7, %v1529_v56, -inf }
 0x6b0   : > { %1538 = vmax.xlane.f32.xlu1 %v1537_v57 }
 0x6b4   : > { %v1502_v58 = vpop.f32.mrf.mxu3 }
 0x6bf   : > { %1600 = vrot.lane.b32.xlu2 %v5024_v27, %s4830_s0 }
 0x708   : > { %v1536_v59 = vpop.xlane.xlu0 %1535 }
 0x709   : > { %v1544_v62 = vsub.f32 %v1528_v41, %v1536_v59  ;;  %v4486_v41 = vld [vmem:[%s4962_s29 + $0x8] sm:$0xff]  ;;  %v4703_v59 = vld [vmem:[%s5576_s16] ss:$0 sm:$0xff] }
 0x70b   : > { %v1549_v2 = vmul.f32 1.442695, %v1544_v62  ;;  %v4779_v62 = vld [vmem:[#allocation2] sm:$0xff] }
 0x715   : > { %v1542_v60 = vpop.xlane.xlu0 %1541 }
 0x716   : > { %v1546_v61 = vsub.f32 %v1530_v47, %v1542_v60 }
 0x718   : > { %v1553_v63 = vmul.f32 1.442695, %v1546_v61 }
 0x71a   : > { %4757 = vpow2.f32 %v1553_v63  ;;  %v1533_v0 = vpop.xlane.xlu2 %1532 }
 0x71b   : > { %v1543_v1 = vsub.f32 %v1527_v50, %v1533_v0 }
 0x71d   : > { %v1547_v3 = vmul.f32 1.442695, %v1543_v1 }
 0x71f   : > { %4759 = vpow2.f32 %v1547_v3 }
 0x720   : > { %v4758_v4 = vpop.eup %4757  ;;  %4761 = vpow2.f32 %v1549_v2 }
 0x721   : > { %v1564_v5 = vsel %vm844_vm7, %v4758_v4, 0.0 }
 0x722   : > { %1565 = vadd.xlane.f32.xlu1 %v1564_v5  ;;  %v1601_v6 = vpop.permute.xlu2 %1600 }
 0x723   : > { %v1606_v7 = vsel %vm899_vm6, %v1601_v6, 0  ;;  %v1539_v27 = vpop.xlane.xlu1 %1538 }
 0x724   : > { %v1545_v9 = vsub.f32 %v1529_v56, %v1539_v27  ;;  %1615 = vmatpush.bf16.msrb.mxu2 %v1606_v7 }
 0x725   : > { %v4760_v10 = vpop.eup %4759 }
 0x726   : > { %v4762_v11 = vpop.eup %4761  ;;  %v1551_v12 = vmul.f32 1.442695, %v1545_v9  ;;  %v1555_v13 = vsel %vm844_vm7, %v4760_v10, 0.0 }
 0x727   : > { %1556 = vadd.xlane.f32.xlu0 %v1555_v13  ;;  %v1558_v14 = vsel %vm844_vm7, %v4762_v11, 0.0  ;;  %v3886_v13 = vld [vmem:[%s4985_s4 + $0x80] sm:$0xf] }
 0x728   : > { %4763 = vpow2.f32 %v1551_v12 }
 0x72a   : > { %1559 = vadd.xlane.f32.xlu1 %v1558_v14  ;;  %v4511_v14 = vld [vmem:[%s4985_s4 + $0xbc] sm:$0xf0] }
 0x72e   : > { %v4764_v15 = vpop.eup %4763 }
 0x72f   : > { %v1561_v16 = vsel %vm844_vm7, %v4764_v15, 0.0 }
 0x730   : > { %1562 = vadd.xlane.f32.xlu2 %v1561_v16  ;;  %v3887_v16 = vor.u32 %v4511_v14, %v3886_v13  ;;  %v3918_v13 = vld [vmem:[%s4985_s4 + $0xa0] sm:$0xf] }
 0x731   : > { %v4515_v14 = vld [vmem:[%s4985_s4 + $0xdc] sm:$0xf0] }
 0x732   : > { %2041 = vmatpush.bf16.msra.mxu2 %v3887_v16  ;;  %v3920_v16 = vld [vmem:[%s4985_s4 + $0xe0] sm:$0xf0] }
 0x73b   : > { %1621 = vrot.lane.b32.xlu0 %v5032_v31, %s4830_s0 }
 0x743   : > { %1579 = vrot.lane.b32.xlu1 %v5022_v23, %s4830_s0  ;;  %1688 = vrot.lane.b32.xlu0 %v5184_v35, %s4831_s2 }
 0x748   : > { %1642 = vrot.lane.b32.xlu2 %v5030_v30, %s4830_s0  ;;  %s5579_s0 = sld [smem:[#allocation3_spill]] }
 0x74b   : > { %1703 = vrot.lane.b32.xlu1 %v1702_v17, %s4832_s8  ;;  %v3888_v17 = vld [vmem:[%s4985_s4 + $0xc0] sm:$0xf0] }
 0x74e   : > { %p4476_p8 = scmp.ne.s32.totalorder %s5579_s0, 1 }
 0x795   : > { %v1566_v18 = vpop.xlane.xlu1 %1565 }
 0x79a   : > { %v1557_v31 = vpop.xlane.xlu0 %1556 }
 0x79d   : > { %v1560_v19 = vpop.xlane.xlu1 %1559 }
 0x79e   : > { %4765 = vrcp.f32 %v1560_v19  ;;  %v4512_v19 = vld [vmem:[%s4985_s4 + $0xc4] sm:$0xf0] }
 0x79f   : > { %4767 = vrcp.f32 %v1566_v18  ;;  %v3894_v18 = vld [vmem:[%s4985_s4 + $0x88] sm:$0xf] }
 0x7a3   : > { %v1563_v20 = vpop.xlane.xlu2 %1562 }
 0x7a4   : > { %v4766_v21 = vpop.eup %4765  ;;  %4769 = vrcp.f32 %v1563_v20 }
 0x7a5   : > { %v1572_v22 = vmul.f32 %v4766_v21, %v4762_v11  ;;  %v4768_v24 = vpop.eup %4767  ;;  %4771 = vrcp.f32 %v1557_v31  ;;  %v3895_v21 = vor.u32 %v4512_v19, %v3894_v18  ;;  %v4504_v31 = vld [vmem:[%s4985_s4 + $0x8c] sm:$0xf]  ;;  %v4516_v19 = vld [vmem:[%s4985_s4 + $0xe4] sm:$0xf0] }
 0x7a6   : > { %v1574_v26 = vmul.f32 %v4768_v24, %v4758_v4 }
 0x7a7   : > { %v1576_v23 = vpack.c.bf16 %v1572_v22, %v1572_v22  ;;  %v3896_v22 = vld [vmem:[%s4985_s4 + $0xc8] sm:$0xf0] }
 0x7a8   : > { %v1578_v33 = vpack.c.bf16 %v1574_v26, %v1574_v26  ;;  %v3899_v24 = vor.u32 %v4504_v31, %v3896_v22  ;;  %v4487_v26 = vld [vmem:[%s4985_s4 + $0x4] sm:$0xf]  ;;  %v3919_v31 = vor.u32 %v4515_v14, %v3918_v13 }
 0x7a9   : > { %3808 = vmatmul.msk.bf16.vlgmr.msrb.gmra.mxu2 %vm895_vm8, %v1576_v23  ;;  %v3822_v23 = vld [vmem:[%s4985_s4] sm:$0xf] }
 0x7aa   : > { %v4770_v25 = vpop.eup %4769  ;;  %v4547_v13 = vld [vmem:[%s4991_s21 + $0xe0] sm:$0xff] }
 0x7ab   : > { %v1643_v30 = vpop.permute.xlu2 %1642  ;;  %v1573_v28 = vmul.f32 %v4770_v25, %v4764_v15  ;;  %v4772_v36 = vpop.eup %4771  ;;  %v4503_v15 = vld [vmem:[%s4985_s4 + $0x84] sm:$0xf]  ;;  %v4495_v25 = vld [vmem:[%s4985_s4 + $0x3c] sm:$0xf0] }
 0x7ac   : > { %v1648_v29 = vsel %vm899_vm6, %v1643_v30, 0  ;;  %v1571_v37 = vmul.f32 %v4772_v36, %v4760_v10  ;;  %v3891_v20 = vor.u32 %v4503_v15, %v3888_v17  ;;  %v3823_v30 = vor.u32 %v4495_v25, %v3822_v23  ;;  %v3832_v36 = vld [vmem:[%s4985_s4 + $0x48] sm:$0xf0]  ;;  %v4507_v15 = vld [vmem:[%s4985_s4 + $0xa4] sm:$0xf] }
 0x7ad   : > { %v1622_v32 = vpop.permute.xlu0 %1621  ;;  %1657 = vmatpush.bf16.msra.mxu0 %v1648_v29  ;;  %v1577_v35 = vpack.c.bf16 %v1573_v28, %v1573_v28  ;;  %v3824_v28 = vld [vmem:[%s4985_s4 + $0x40] sm:$0xf0]  ;;  %v3830_v29 = vld [vmem:[%s4985_s4 + $0x8] sm:$0xf]  ;;  %v3923_v22 = vor.u32 %v4507_v15, %v3920_v16  ;;  %v4499_v23 = vld [vmem:[%s4985_s4 + $0x5c] sm:$0xf0] }
 0x7ae   : > { %v1627_v34 = vsel %vm899_vm6, %v1622_v32, 0  ;;  %v1575_v40 = vpack.c.bf16 %v1571_v37, %v1571_v37  ;;  %v4496_v32 = vld [vmem:[%s4985_s4 + $0x44] sm:$0xf0]  ;;  %2042 = vmatpush.bf16.msra.mxu2 %v3823_v30  ;;  %v4491_v30 = vld [vmem:[%s4985_s4 + $0x24] sm:$0xf]  ;;  %v4538_v16 = vld [vmem:[%s4991_s21 + $0x98] sm:$0xff] }
 0x7af   : > { %1636 = vmatpush.bf16.msrb.mxu3 %v1627_v34  ;;  %v3831_v34 = vor.u32 %v4496_v32, %v3830_v29  ;;  %v3926_v17 = vld [vmem:[%s4985_s4 + $0xa8] sm:$0xf]  ;;  %v4523_v14 = vld [vmem:[%s4991_s21 + $0x20] sm:$0xff] }
 0x7b0   : > { %3810 = vmatmul.msk.bf16.vlgmr.msra.gmra.mxu0 %vm895_vm8, %v1578_v33  ;;  %v3827_v33 = vor.u32 %v4487_v26, %v3824_v28  ;;  %v3927_v25 = vor.u32 %v4516_v19, %v3926_v17  ;;  %v3856_v28 = vld [vmem:[%s4985_s4 + $0x60] sm:$0xf0]  ;;  %v3862_v29 = vld [vmem:[%s4985_s4 + $0x28] sm:$0xf]  ;;  %v4546_v17 = vld [vmem:[%s4991_s21 + $0xd8] sm:$0xff] }
 0x7b1   : > { %2067 = vmatpush.bf16.msrb.mxu0 %v3895_v21  ;;  %v3928_v21 = vld [vmem:[%s4985_s4 + $0xe8] sm:$0xf0]  ;;  %v4500_v32 = vld [vmem:[%s4985_s4 + $0x64] sm:$0xf0]  ;;  %v4531_v15 = vld [vmem:[%s4991_s21 + $0x60] sm:$0xff] }
 0x7b2   : > { %3809 = vmatmul.msk.bf16.vlgmr.msrb.gmra.mxu3 %vm895_vm8, %v1577_v35  ;;  %v4488_v35 = vld [vmem:[%s4985_s4 + $0xc] sm:$0xf]  ;;  %v4522_v19 = vld [vmem:[%s4991_s21 + $0x18] sm:$0xff] }
 0x7b3   : > { %2054 = vmatpush.bf16.msra.mxu3 %v3891_v20  ;;  %v3835_v37 = vor.u32 %v4488_v35, %v3832_v36  ;;  %v4508_v20 = vld [vmem:[%s4985_s4 + $0xac] sm:$0xf]  ;;  %v3859_v36 = vor.u32 %v4491_v30, %v3856_v28  ;;  %v4535_v30 = vld [vmem:[%s4991_s21 + $0x80] sm:$0xff] }
 0x7b4   : > { %v3931_v26 = vor.u32 %v4508_v20, %v3928_v21  ;;  %v4530_v20 = vld [vmem:[%s4991_s21 + $0x58] sm:$0xff]  ;;  %v4537_v21 = vld [vmem:[%s4991_s21 + $0x90] sm:$0xff]  ;;  %v4543_v28 = vld [vmem:[%s4991_s21 + $0xc0] sm:$0xff] }
 0x7b5   : > { %v1580_v38 = vpop.permute.xlu1 %1579  ;;  %v1689_v52 = vpop.permute.xlu0 %1688  ;;  %2068 = vmatpush.bf16.msrb.mxu0 %v3831_v34  ;;  %v3864_v34 = vld [vmem:[%s4985_s4 + $0x68] sm:$0xf0] }
 0x7b6   : > { %v1585_v39 = vsel %vm899_vm6, %v1580_v38, 0  ;;  %v1721_v54 = vsel %vm748_vm5, %v5138_v8, %v1689_v52  ;;  %v4834_v8 = vmov 32.0  }
 0x7b7   : > { %1594 = vmatpush.bf16.msrb.mxu1 %v1585_v39  ;;  %4773 = vrcp.f32 %v4834_v8  ;;  %2055 = vmatpush.bf16.msra.mxu3 %v3827_v33  ;;  %v3902_v39 = vld [vmem:[%s4985_s4 + $0x90] sm:$0xf]  ;;  %v4492_v33 = vld [vmem:[%s4985_s4 + $0x2c] sm:$0xf] }
 0x7ba   : > { %3807 = vmatmul.msk.bf16.vlgmr.msrb.gmra.mxu1 %vm895_vm8, %v1575_v40  ;;  %v4513_v40 = vld [vmem:[%s4985_s4 + $0xcc] sm:$0xf0] }
 0x7bb   : > { %1756 = vmatpush.bf16.msra.mxu1 %v4486_v41  ;;  %v4505_v41 = vld [vmem:[%s4985_s4 + $0x94] sm:$0xf] }
 0x7bd   : > { %v1704_v53 = vpop.permute.xlu1 %1703  ;;  %v4774_v2 = vpop.eup %4773 }
 0x7be   : > { %v1723_v55 = vsel %vm1722_vm9, %v1721_v54, %v1704_v53  ;;  %v1770_v3 = vmul.f32 32.0, %v4774_v2  ;;  %vm1774_vm11 = vweird.f32 %v4774_v2  ;;  %v4497_v54 = vld [vmem:[%s4985_s4 + $0x4c] sm:$0xf0] }
 0x7bf   : > { %1757 = vmatpush.bf16.msra.mxu1 %v4485_v51  ;;  %v3838_v51 = vld [vmem:[%s4985_s4 + $0x10] sm:$0xf] }
 0x7c0   : > { %v1771_v4 = vsub.f32 1.0, %v1770_v3 }
 0x7c2   : > { %v1772_v5 = vmul.f32 %v4774_v2, %v1771_v4 }
 0x7c3   : > { %2080 = vmatpush.bf16.msrb.mxu1 %v3899_v24  ;;  %v3854_v24 = vld [vmem:[%s4985_s4 + $0x20] sm:$0xf] }
 0x7c4   : > { %v1773_v6 = vadd.f32 %v4774_v2, %v1772_v5  ;;  %v3855_v35 = vor.u32 %v4499_v23, %v3854_v24  ;;  %v4529_v24 = vld [vmem:[%s4991_s21 + $0x50] sm:$0xff]  ;;  %v4536_v23 = vld [vmem:[%s4991_s21 + $0x88] sm:$0xff] }
 0x7c6   : > { %v5222_v7 = vsel %vm1774_vm11, %v4774_v2, %v1773_v6  ;;  %v4704_v6 = vld [vmem:[%s5577_s19] ss:$0 sm:$0xff] }
 0x7c7   : > { %2081 = vmatpush.bf16.msrb.mxu1 %v3835_v37  ;;  %v3863_v37 = vor.u32 %v4500_v32, %v3862_v29  ;;  %v4574_v29 = vld [vmem:[%s4991_s21 + $0x1b8] sm:$0xff] }
 0x7c8   : > { %v4582_v32 = vld [vmem:[%s4991_s21 + $0x1f8] sm:$0xff] }
 0x82c   : > { %v1617_v42 = vpop.f32.mrf.mxu2 }
 0x82d   : > { %1712 = vst [vmem:[#allocation1 + $0x1] ss:$4 sm:$0xff] %v1617_v42  ;;  %v1659_v43 = vpop.f32.mrf.mxu0 }
 0x82e   : > { %1716 = vst [vmem:[#allocation1 + $0x3] ss:$4 sm:$0xff] %v1659_v43  ;;  %v3903_v43 = vor.u32 %v4513_v40, %v3902_v39  ;;  %v3934_v39 = vld [vmem:[%s4985_s4 + $0xb0] sm:$0xf] }
 0x82f   : > { %v4517_v40 = vld [vmem:[%s4985_s4 + $0xec] sm:$0xf0] }
 0x830   : > { %2093 = vmatpush.bf16.msrb.mxu2 %v3903_v43  ;;  %v3942_v43 = vld [vmem:[%s4985_s4 + $0xb8] sm:$0xf] }
 0x834   : > { %v1619_v44 = vpop.f32.mrf.mxu2 }
 0x835   : > { %v1638_v45 = vpop.f32.mrf.mxu3  ;;  %v1661_v46 = vpop.f32.mrf.mxu0  ;;  %v3904_v44 = vld [vmem:[%s4985_s4 + $0xd0] sm:$0xf0] }
 0x836   : > { %1714 = vst [vmem:[#allocation1 + $0x2] ss:$4 sm:$0xff] %v1638_v45  ;;  %v3910_v45 = vld [vmem:[%s4985_s4 + $0x98] sm:$0xf] }
 0x837   : > { %v1596_v47 = vpop.f32.mrf.mxu1  ;;  %v4514_v46 = vld [vmem:[%s4985_s4 + $0xd4] sm:$0xf0] }
 0x838   : > { %1710 = vst [vmem:[#allocation1] ss:$4 sm:$0xff] %v1596_v47  ;;  %v3907_v47 = vor.u32 %v4505_v41, %v3904_v44  ;;  %v4509_v41 = vld [vmem:[%s4985_s4 + $0xb4] sm:$0xf]  ;;  %v4518_v44 = vld [vmem:[%s4985_s4 + $0xf4] sm:$0xf0] }
 0x83a   : > { %2106 = vmatpush.bf16.msrb.mxu3 %v3907_v47  ;;  %v3935_v47 = vor.u32 %v4517_v40, %v3934_v39  ;;  %v4557_v39 = vld [vmem:[%s4991_s21 + $0x130] sm:$0xff] }
 0x83b   : > { %v4565_v40 = vld [vmem:[%s4991_s21 + $0x170] sm:$0xff] }
 0x83d   : > { %v1640_v48 = vpop.f32.mrf.mxu3 }
 0x83e   : > { %v3911_v48 = vor.u32 %v4514_v46, %v3910_v45  ;;  %v4510_v45 = vld [vmem:[%s4985_s4 + $0xbc] sm:$0xf] }
 0x83f   : > { %v1598_v49 = vpop.f32.mrf.mxu1  ;;  %v1717_v50 = vld.sshfl [vmem:[#allocation1] sm:$0xff pattern:$0x73625140]  ;;  %v3944_v46 = vld [vmem:[%s4985_s4 + $0xf8] sm:$0xf0] }
 0x840   : > { %1718 = vrot.lane.b32.xlu2 %v1717_v50, %s4833_s22  ;;  %v4506_v49 = vld [vmem:[%s4985_s4 + $0x9c] sm:$0xf]  ;;  %2119 = vmatpush.bf16.msra.mxu0 %v3911_v48 }
 0x841   : > { %v3912_v50 = vld [vmem:[%s4985_s4 + $0xd8] sm:$0xf0] }
 0x842   : > { %v3915_v53 = vor.u32 %v4506_v49, %v3912_v50  ;;  %v3870_v49 = vld [vmem:[%s4985_s4 + $0x30] sm:$0xf] }
 0x843   : > { %v4501_v50 = vld [vmem:[%s4985_s4 + $0x6c] sm:$0xf0] }
 0x89a   : > { %v1719_v56 = vpop.permute.xlu2 %1718 }
 0x89b   : > { %v1725_v57 = vsel %vm1724_vm10, %v1723_v55, %v1719_v56  ;;  %v4489_v55 = vld [vmem:[%s4985_s4 + $0x14] sm:$0xf]  ;;  %v3839_v56 = vor.u32 %v4497_v54, %v3838_v51  ;;  %v3943_v51 = vor.u32 %v4518_v44, %v3942_v43  ;;  %v4556_v43 = vld [vmem:[%s4991_s21 + $0x128] sm:$0xff] }
 0x89c   : > { %v1726_v58 = vpack.c.bf16 %v1725_v57, %v1725_v57  ;;  %v3840_v57 = vld [vmem:[%s4985_s4 + $0x50] sm:$0xf0]  ;;  %v4564_v44 = vld [vmem:[%s4991_s21 + $0x168] sm:$0xff] }
 0x89d   : > { %2094 = vmatpush.bf16.msrb.mxu2 %v3839_v56  ;;  %v3872_v54 = vld [vmem:[%s4985_s4 + $0x70] sm:$0xf0]  ;;  %v4502_v56 = vld [vmem:[%s4985_s4 + $0x74] sm:$0xf0] }
 0x89e   : > { %3819 = vmatmul.msk.bf16.vlgmr.msra.gmra.mxu1 %vm715_vm4, %v1726_v58  ;;  %v3846_v58 = vld [vmem:[%s4985_s4 + $0x18] sm:$0xf] }
 0x89f   : > { %2132 = vmatpush.bf16.msra.mxu1 %v3915_v53  ;;  %v4493_v53 = vld [vmem:[%s4985_s4 + $0x34] sm:$0xf] }
 0x91b   : > { %v1759_v60 = vpop.f32.mrf.mxu1 }
 0x91c   : > { %v1760_v61 = vadd.f32 %v4703_v59, %v1759_v60  ;;  %v4498_v59 = vld [vmem:[%s4985_s4 + $0x54] sm:$0xf0]  ;;  %v3843_v60 = vor.u32 %v4489_v55, %v3840_v57  ;;  %v4494_v57 = vld [vmem:[%s4985_s4 + $0x3c] sm:$0xf] }
 0x91d   : > { %v3878_v55 = vld [vmem:[%s4985_s4 + $0x38] sm:$0xf] }
 0x91e   : > { %v1763_v63 = vadd.f32 %v4779_v62, %v1760_v61  ;;  %v3847_v61 = vor.u32 %v4498_v59, %v3846_v58  ;;  %v4490_v62 = vld [vmem:[%s4985_s4 + $0x1c] sm:$0xf]  ;;  %2107 = vmatpush.bf16.msrb.mxu3 %v3843_v60  ;;  %v3871_v59 = vor.u32 %v4501_v50, %v3870_v49  ;;  %v3875_v60 = vor.u32 %v4493_v53, %v3872_v54 }
 0x91f   : > { %v3880_v58 = vld [vmem:[%s4985_s4 + $0x78] sm:$0xf0] }
 0x920   : > { %v1766_v0 = vsel %vm715_vm4, %v1763_v63, 0.0  ;;  %2120 = vmatpush.bf16.msra.mxu0 %v3847_v61  ;;  %v3879_v61 = vor.u32 %v4502_v56, %v3878_v55  ;;  %v4570_v49 = vld [vmem:[%s4991_s21 + $0x198] sm:$0xff]  ;;  %v4568_v55 = vld [vmem:[%s4991_s21 + $0x188] sm:$0xff] }
 0x921   : > { %1767 = vadd.xlane.f32.xlu0 %v1766_v0  ;;  %v4578_v50 = vld [vmem:[%s4991_s21 + $0x1d8] sm:$0xff]  ;;  %v4576_v56 = vld [vmem:[%s4991_s21 + $0x1c8] sm:$0xff] }
 0x922   : > { %v4554_v53 = vld [vmem:[%s4991_s21 + $0x118] sm:$0xff] }
 0x923   : > { %v1761_v1 = vpop.f32.mrf.mxu1  ;;  %v4562_v54 = vld [vmem:[%s4991_s21 + $0x158] sm:$0xff] }
 0x994   : > { %v1768_v27 = vpop.xlane.xlu0 %1767 }
 0x995   : > { %v1776_v9 = vmul.f32 %v5222_v7, %v1768_v27 }
 0x997   : > { %v5225_v10 = vsub.f32 %v1763_v63, %v1776_v9  ;;  %v3848_v63 = vld [vmem:[%s4985_s4 + $0x58] sm:$0xf0]  ;;  %v4705_v9 = vld [vmem:[%s5578_s14] ss:$0 sm:$0xff] }
 0x998   : > { %v3851_v0 = vor.u32 %v4490_v62, %v3848_v63  ;;  %v3883_v62 = vor.u32 %v4494_v57, %v3880_v58  ;;  %v4542_v63 = vld [vmem:[%s4991_s21 + $0xb8] sm:$0xff]  ;;  %v4553_v57 = vld [vmem:[%s4991_s21 + $0x110] sm:$0xff] }
 0x999   : > { %v1778_v11 = vmul.f32 %v5225_v10, %v5225_v10  ;;  %v4561_v58 = vld [vmem:[%s4991_s21 + $0x150] sm:$0xff] }
 0x99a   : > { %2133 = vmatpush.bf16.msra.mxu1 %v3851_v0  ;;  %v4550_v0 = vld [vmem:[%s4991_s21 + $0xf8] sm:$0xff] }
 0x99b   : > { %v1779_v12 = vsel %vm715_vm4, %v1778_v11, 0.0 }
 0x99c   : > { %1780 = vadd.xlane.f32.xlu1 %v1779_v12 }
 0xa0f   : > { %v1781_v38 = vpop.xlane.xlu1 %1780 }
 0xa10   : > { %v1782_v42 = vmul.f32 %v1781_v38, %v5222_v7  ;;  %v3867_v38 = vor.u32 %v4492_v33, %v3864_v34  ;;  %v4519_v33 = vld [vmem:[%s4991_s21] sm:$0xff] }
 0xa11   : > { %v4527_v34 = vld [vmem:[%s4991_s21 + $0x40] sm:$0xff] }
 0xa12   : > { %v1783_v52 = vadd.f32 1e-05, %v1782_v42  ;;  %v3936_v42 = vld [vmem:[%s4985_s4 + $0xf0] sm:$0xf0] }
 0xa13   : > { %v3939_v48 = vor.u32 %v4509_v41, %v3936_v42  ;;  %v4572_v41 = vld [vmem:[%s4991_s21 + $0x1a8] sm:$0xff] }
 0xa14   : > { %4775 = vrsqrt.f32 %v1783_v52  ;;  %vm1790_vm13 = vweird.f32 %v1783_v52  ;;  %v4580_v42 = vld [vmem:[%s4991_s21 + $0x1e8] sm:$0xff] }
 0xa1a   : > { %v4776_v1 = vpop.eup %4775 }
 0xa1b   : > { %v1785_v8 = vmul.f32 %v4776_v1, %v1783_v52  ;;  %vm1791_vm12 = vweird.f32 %v4776_v1  ;;  %v3947_v52 = vor.u32 %v4510_v45, %v3944_v46  ;;  %v4571_v45 = vld [vmem:[%s4991_s21 + $0x1a0] sm:$0xff] }
 0xa1c   : > { %vm1792_vm14 = vmor %vm1790_vm13, %vm1791_vm12  ;;  %v4579_v46 = vld [vmem:[%s4991_s21 + $0x1e0] sm:$0xff] }
 0xa1d   : > { %v1786_v2 = vmul.f32 %v4776_v1, %v1785_v8  ;;  %v4534_v8 = vld [vmem:[%s4991_s21 + $0x78] sm:$0xff] }
 0xa1f   : > { %v1787_v3 = vmul.f32 0.5, %v1786_v2  ;;  %v4541_v2 = vld [vmem:[%s4991_s21 + $0xb0] sm:$0xff] }
 0xa21   : > { %v1788_v4 = vsub.f32 1.5, %v1787_v3  ;;  %v4549_v3 = vld [vmem:[%s4991_s21 + $0xf0] sm:$0xff] }
 0xa23   : > { %v1789_v5 = vmul.f32 %v4776_v1, %v1788_v4  ;;  %v4525_v4 = vld [vmem:[%s4991_s21 + $0x30] sm:$0xff] }
 0xa25   : > { %v1793_v27 = vsel %vm1792_vm14, %v4776_v1, %v1789_v5  ;;  %v4526_v1 = vld [vmem:[%s4991_s21 + $0x38] sm:$0xff]  ;;  %v4533_v5 = vld [vmem:[%s4991_s21 + $0x70] sm:$0xff] }
 0xa26   : > { %v1794_v11 = vmul.f32 %v1793_v27, %v5225_v10  ;;  %v4548_v27 = vld [vmem:[%s4991_s21 + $0xe8] sm:$0xff] }
 0xa28   : > { %v1798_v12 = vmul.f32 %v4704_v6, %v1794_v11  ;;  %v4540_v6 = vld [vmem:[%s4991_s21 + $0xa8] sm:$0xff] }
 0xa29   : > { %v4532_v11 = vld [vmem:[%s4991_s21 + $0x68] sm:$0xff] }
 0xa2a   : > { %v5279_v18 = vadd.f32 %v4705_v9, %v1798_v12  ;;  %v4524_v9 = vld [vmem:[%s4991_s21 + $0x28] sm:$0xff]  ;;  %v4539_v12 = vld [vmem:[%s4991_s21 + $0xa0] sm:$0xff] }
 0xa2c   : > { %v5286_v10 = vpack.c.bf16 %v5279_v18, %v5279_v18 }
 0xa2e   : > { %3948 = vmatmul.msk.bf16.vlgmr.msra.gmra.mxu2 %vm715_vm4, %v5286_v10  ;;  %3949 = vmatmul.msk.bf16.vlgmr.msra.gmra.mxu3 %vm715_vm4, %v5286_v10 }
 0xa2f   : > { %3950 = vmatmul.msk.bf16.vlgmr.msrb.gmra.mxu0 %vm715_vm4, %v5286_v10  ;;  %3951 = vmatmul.msk.bf16.vlgmr.msrb.gmra.mxu1 %vm715_vm4, %v5286_v10 }
 0xa30   : > { %2145 = vmatpush.bf16.msra.mxu2 %v3919_v31  ;;  %2158 = vmatpush.bf16.msra.mxu3 %v3923_v22  ;;  %v4545_v31 = vld [vmem:[%s4991_s21 + $0xd0] sm:$0xff] }
 0xa31   : > { %2171 = vmatpush.bf16.msrb.mxu0 %v3927_v25  ;;  %2184 = vmatpush.bf16.msrb.mxu1 %v3931_v26  ;;  %v4521_v22 = vld [vmem:[%s4991_s21 + $0x10] sm:$0xff]  ;;  %v4520_v25 = vld [vmem:[%s4991_s21 + $0x8] sm:$0xff] }
 0xa32   : > { %v4528_v26 = vld [vmem:[%s4991_s21 + $0x48] sm:$0xff] }
 0xa34   : > { %2146 = vmatpush.bf16.msra.mxu2 %v3855_v35  ;;  %2159 = vmatpush.bf16.msra.mxu3 %v3859_v36  ;;  %v4558_v35 = vld [vmem:[%s4991_s21 + $0x138] sm:$0xff] }
 0xa35   : > { %2172 = vmatpush.bf16.msrb.mxu0 %v3863_v37  ;;  %2185 = vmatpush.bf16.msrb.mxu1 %v3867_v38  ;;  %v4566_v36 = vld [vmem:[%s4991_s21 + $0x178] sm:$0xff]  ;;  %v4573_v37 = vld [vmem:[%s4991_s21 + $0x1b0] sm:$0xff] }
 0xa36   : > { %v4581_v38 = vld [vmem:[%s4991_s21 + $0x1f0] sm:$0xff] }
 0xa3e   : > { %3952 = vmatmul.msk.bf16.vlgmr.msrb.gmra.mxu2 %vm715_vm4, %v5286_v10  ;;  %3953 = vmatmul.msk.bf16.vlgmr.msrb.gmra.mxu3 %vm715_vm4, %v5286_v10 }
 0xa3f   : > { %3954 = vmatmul.msk.bf16.vlgmr.msra.gmra.mxu0 %vm715_vm4, %v5286_v10  ;;  %3955 = vmatmul.msk.bf16.vlgmr.msra.gmra.mxu1 %vm715_vm4, %v5286_v10 }
 0xa40   : > { %2197 = vmatpush.bf16.msrb.mxu2 %v3935_v47  ;;  %2210 = vmatpush.bf16.msrb.mxu3 %v3939_v48  ;;  %v4555_v47 = vld [vmem:[%s4991_s21 + $0x120] sm:$0xff] }
 0xa41   : > { %2223 = vmatpush.bf16.msra.mxu0 %v3943_v51  ;;  %2236 = vmatpush.bf16.msra.mxu1 %v3947_v52  ;;  %v4563_v48 = vld [vmem:[%s4991_s21 + $0x160] sm:$0xff]  ;;  %v4569_v51 = vld [vmem:[%s4991_s21 + $0x190] sm:$0xff] }
 0xa42   : > { %v4577_v52 = vld [vmem:[%s4991_s21 + $0x1d0] sm:$0xff] }
 0xa44   : > { %2198 = vmatpush.bf16.msrb.mxu2 %v3871_v59  ;;  %2211 = vmatpush.bf16.msrb.mxu3 %v3875_v60  ;;  %v4567_v59 = vld [vmem:[%s4991_s21 + $0x180] sm:$0xff] }
 0xa45   : > { %2224 = vmatpush.bf16.msra.mxu0 %v3879_v61  ;;  %2237 = vmatpush.bf16.msra.mxu1 %v3883_v62  ;;  %v4575_v60 = vld [vmem:[%s4991_s21 + $0x1c0] sm:$0xff]  ;;  %v4552_v61 = vld [vmem:[%s4991_s21 + $0x108] sm:$0xff] }
 0xa46   : > { %v4560_v62 = vld [vmem:[%s4991_s21 + $0x148] sm:$0xff] }
 0xa4e   : > { %3956 = vmatmul.msk.bf16.vlgmr.msra.gmra.mxu2 %vm715_vm4, %v5286_v10  ;;  %3957 = vmatmul.msk.bf16.vlgmr.msra.gmra.mxu3 %vm715_vm4, %v5286_v10 }
 0xa4f   : > { %3958 = vmatmul.msk.bf16.vlgmr.msrb.gmra.mxu0 %vm715_vm4, %v5286_v10  ;;  %3959 = vmatmul.msk.bf16.vlgmr.msrb.gmra.mxu1 %vm715_vm4, %v5286_v10 }
 0xa50   : > { %3329 = vmatpush.bf16.msrb.mxu0 %v4542_v63  ;;  %3342 = vmatpush.bf16.msrb.mxu1 %v4550_v0  ;;  %v4551_v63 = vld [vmem:[%s4991_s21 + $0x100] sm:$0xff] }
 0xa51   : > { %3303 = vmatpush.bf16.msra.mxu2 %v4526_v1  ;;  %3316 = vmatpush.bf16.msra.mxu3 %v4534_v8  ;;  %v4559_v0 = vld [vmem:[%s4991_s21 + $0x140] sm:$0xff] }
 0xa52   : > { %v5409_v1 = vld [vmem:[%s4980_s15] sm:$0xff] }
 0xa53   : > { %v1842_v8 = vperm.slane %v5409_v1, 2 }
 0xa54   : > { %3330 = vmatpush.bf16.msrb.mxu0 %v4541_v2  ;;  %3343 = vmatpush.bf16.msrb.mxu1 %v4549_v3  ;;  %v1843_v2 = vperm.slane %v5409_v1, 3 }
 0xa55   : > { %3304 = vmatpush.bf16.msra.mxu2 %v4525_v4  ;;  %3317 = vmatpush.bf16.msra.mxu3 %v4533_v5 }
 0xa58   : > { %3331 = vmatpush.bf16.msrb.mxu0 %v4540_v6  ;;  %3344 = vmatpush.bf16.msrb.mxu1 %v4548_v27  ;;  %v1840_v27 = vperm.slane %v5409_v1, 0 }
 0xa59   : > { %3305 = vmatpush.bf16.msra.mxu2 %v4524_v9  ;;  %3318 = vmatpush.bf16.msra.mxu3 %v4532_v11  ;;  %v1841_v9 = vperm.slane %v5409_v1, 1 }
 0xa5c   : > { %3332 = vmatpush.bf16.msrb.mxu0 %v4539_v12  ;;  %3345 = vmatpush.bf16.msrb.mxu1 %v4547_v13  ;;  %v4606_v13 = vld [vmem:[%s4991_s21 + $0x2b8] sm:$0xff] }
 0xa5d   : > { %3306 = vmatpush.bf16.msra.mxu2 %v4523_v14  ;;  %3319 = vmatpush.bf16.msra.mxu3 %v4531_v15  ;;  %v4614_v14 = vld [vmem:[%s4991_s21 + $0x2f8] sm:$0xff] }
 0xa5e   : > { %3960 = vmatmul.msk.bf16.vlgmr.msrb.gmra.mxu2 %vm715_vm4, %v5286_v10  ;;  %3961 = vmatmul.msk.bf16.vlgmr.msrb.gmra.mxu3 %vm715_vm4, %v5286_v10 }
 0xa5f   : > { %3962 = vmatmul.msk.bf16.vlgmr.msra.gmra.mxu0 %vm715_vm4, %v5286_v10  ;;  %3963 = vmatmul.msk.bf16.vlgmr.msra.gmra.mxu1 %vm715_vm4, %v5286_v10  ;;  %v4544_v10 = vld [vmem:[%s4991_s21 + $0xc8] sm:$0xff] }
 0xa60   : > { %3333 = vmatpush.bf16.msrb.mxu0 %v4538_v16  ;;  %3346 = vmatpush.bf16.msrb.mxu1 %v4546_v17 }
 0xa61   : > { %3307 = vmatpush.bf16.msra.mxu2 %v4522_v19  ;;  %3320 = vmatpush.bf16.msra.mxu3 %v4530_v20 }
 0xa64   : > { %3334 = vmatpush.bf16.msrb.mxu0 %v4537_v21  ;;  %3347 = vmatpush.bf16.msrb.mxu1 %v4545_v31 }
 0xa65   : > { %3308 = vmatpush.bf16.msra.mxu2 %v4521_v22  ;;  %3321 = vmatpush.bf16.msra.mxu3 %v4529_v24 }
 0xa68   : > { %3335 = vmatpush.bf16.msrb.mxu0 %v4536_v23  ;;  %3348 = vmatpush.bf16.msrb.mxu1 %v4544_v10  ;;  %v4605_v10 = vld [vmem:[%s4991_s21 + $0x2b0] sm:$0xff] }
 0xa69   : > { %3309 = vmatpush.bf16.msra.mxu2 %v4520_v25  ;;  %3322 = vmatpush.bf16.msra.mxu3 %v4528_v26  ;;  %v4613_v25 = vld [vmem:[%s4991_s21 + $0x2f0] sm:$0xff] }
 0xa6c   : > { %3336 = vmatpush.bf16.msrb.mxu0 %v4535_v30  ;;  %3349 = vmatpush.bf16.msrb.mxu1 %v4543_v28  ;;  %v4590_v28 = vld [vmem:[%s4991_s21 + $0x238] sm:$0xff] }
 0xa6d   : > { %3310 = vmatpush.bf16.msra.mxu2 %v4519_v33  ;;  %3323 = vmatpush.bf16.msra.mxu3 %v4527_v34  ;;  %v4612_v33 = vld [vmem:[%s4991_s21 + $0x2e8] sm:$0xff] }
 0xa70   : > { %3381 = vmatpush.bf16.msra.mxu0 %v4574_v29  ;;  %3394 = vmatpush.bf16.msra.mxu1 %v4582_v32  ;;  %v4598_v29 = vld [vmem:[%s4991_s21 + $0x278] sm:$0xff]  ;;  %v4604_v32 = vld [vmem:[%s4991_s21 + $0x2a8] sm:$0xff] }
 0xa71   : > { %3355 = vmatpush.bf16.msrb.mxu2 %v4558_v35  ;;  %3368 = vmatpush.bf16.msrb.mxu3 %v4566_v36  ;;  %v1846_v36 = vperm.slane %v5409_v1, 6 }
 0xa74   : > { %3382 = vmatpush.bf16.msra.mxu0 %v4573_v37  ;;  %3395 = vmatpush.bf16.msra.mxu1 %v4581_v38  ;;  %v1847_v37 = vperm.slane %v5409_v1, 7  ;;  %v4589_v38 = vld [vmem:[%s4991_s21 + $0x230] sm:$0xff] }
 0xa75   : > { %3356 = vmatpush.bf16.msrb.mxu2 %v4557_v39  ;;  %3369 = vmatpush.bf16.msrb.mxu3 %v4565_v40  ;;  %v4597_v39 = vld [vmem:[%s4991_s21 + $0x270] sm:$0xff] }
 0xa78   : > { %3383 = vmatpush.bf16.msra.mxu0 %v4572_v41  ;;  %3396 = vmatpush.bf16.msra.mxu1 %v4580_v42  ;;  %v4603_v42 = vld [vmem:[%s4991_s21 + $0x2a0] sm:$0xff] }
 0xa79   : > { %3357 = vmatpush.bf16.msrb.mxu2 %v4556_v43  ;;  %3370 = vmatpush.bf16.msrb.mxu3 %v4564_v44  ;;  %v4611_v43 = vld [vmem:[%s4991_s21 + $0x2e0] sm:$0xff] }
 0xa7c   : > { %3384 = vmatpush.bf16.msra.mxu0 %v4571_v45  ;;  %3397 = vmatpush.bf16.msra.mxu1 %v4579_v46  ;;  %v4588_v46 = vld [vmem:[%s4991_s21 + $0x228] sm:$0xff] }
 0xa7d   : > { %3358 = vmatpush.bf16.msrb.mxu2 %v4555_v47  ;;  %3371 = vmatpush.bf16.msrb.mxu3 %v4563_v48  ;;  %v4596_v47 = vld [vmem:[%s4991_s21 + $0x268] sm:$0xff]  ;;  %v1844_v48 = vperm.slane %v5409_v1, 4 }
 0xa80   : > { %3385 = vmatpush.bf16.msra.mxu0 %v4570_v49  ;;  %3398 = vmatpush.bf16.msra.mxu1 %v4578_v50  ;;  %v1845_v49 = vperm.slane %v5409_v1, 5 }
 0xa81   : > { %3359 = vmatpush.bf16.msrb.mxu2 %v4554_v53  ;;  %3372 = vmatpush.bf16.msrb.mxu3 %v4562_v54  ;;  %v4610_v53 = vld [vmem:[%s4991_s21 + $0x2d8] sm:$0xff] }
 0xa84   : > { %3386 = vmatpush.bf16.msra.mxu0 %v4569_v51  ;;  %3399 = vmatpush.bf16.msra.mxu1 %v4577_v52  ;;  %v4602_v52 = vld [vmem:[%s4991_s21 + $0x298] sm:$0xff] }
 0xa85   : > { %3360 = vmatpush.bf16.msrb.mxu2 %v4553_v57  ;;  %3373 = vmatpush.bf16.msrb.mxu3 %v4561_v58 }
 0xa88   : > { %3387 = vmatpush.bf16.msra.mxu0 %v4568_v55  ;;  %3400 = vmatpush.bf16.msra.mxu1 %v4576_v56 }
 0xa89   : > { %3361 = vmatpush.bf16.msrb.mxu2 %v4552_v61  ;;  %3374 = vmatpush.bf16.msrb.mxu3 %v4560_v62  ;;  %v4595_v61 = vld [vmem:[%s4991_s21 + $0x260] sm:$0xff] }
 0xa8c   : > { %3388 = vmatpush.bf16.msra.mxu0 %v4567_v59  ;;  %3401 = vmatpush.bf16.msra.mxu1 %v4575_v60  ;;  %v4587_v60 = vld [vmem:[%s4991_s21 + $0x220] sm:$0xff] }
 0xa8d   : > { %3362 = vmatpush.bf16.msrb.mxu2 %v4551_v63  ;;  %3375 = vmatpush.bf16.msrb.mxu3 %v4559_v0 }
 0xaac   : > { %v2070_v3 = vpop.f32.mrf.mxu0  ;;  %v2083_v4 = vpop.f32.mrf.mxu1 }
 0xaad   : > { %v2071_v5 = vadd.f32 %v2070_v3, %v1842_v8  ;;  %v2084_v6 = vadd.f32 %v2083_v4, %v1843_v2  ;;  %v4601_v8 = vld [vmem:[%s4991_s21 + $0x290] sm:$0xff] }
 0xaae   : > { %v4609_v2 = vld [vmem:[%s4991_s21 + $0x2d0] sm:$0xff] }
 0xaaf   : > { %v2245_v11 = vmax.f32 %v2071_v5, 0.0  ;;  %v2246_v12 = vmax.f32 %v2084_v6, 0.0  ;;  %v4586_v5 = vld [vmem:[%s4991_s21 + $0x218] sm:$0xff] }
 0xab0   : > { %v4594_v6 = vld [vmem:[%s4991_s21 + $0x258] sm:$0xff] }
 0xab1   : > { %v2261_v15 = vpack.c.bf16 %v2245_v11, %v2245_v11  ;;  %v2262_v16 = vpack.c.bf16 %v2246_v12, %v2246_v12  ;;  %v2044_v17 = vpop.f32.mrf.mxu2  ;;  %v2057_v19 = vpop.f32.mrf.mxu3  ;;  %v4608_v11 = vld [vmem:[%s4991_s21 + $0x2c8] sm:$0xff] }
 0xab2   : > { %v2045_v20 = vadd.f32 %v2044_v17, %v1840_v27  ;;  %v2058_v21 = vadd.f32 %v2057_v19, %v1841_v9  ;;  %v5442_v27 = vld [vmem:[%s4980_s15 + $0x8] sm:$0xff]  ;;  %v4593_v17 = vld [vmem:[%s4991_s21 + $0x250] sm:$0xff] }
 0xab3   : > { %3337 = vmatmul.bf16.vlgmr.msrb.gmra.mxu0 %v2261_v15  ;;  %3350 = vmatmul.bf16.vlgmr.msrb.gmra.mxu1 %v2262_v16  ;;  %v4600_v9 = vld [vmem:[%s4991_s21 + $0x288] sm:$0xff]  ;;  %v1851_v15 = vperm.slane %v5442_v27, 3  ;;  %v4585_v16 = vld [vmem:[%s4991_s21 + $0x210] sm:$0xff] }
 0xab4   : > { %v2243_v31 = vmax.f32 %v2045_v20, 0.0  ;;  %v2244_v22 = vmax.f32 %v2058_v21, 0.0  ;;  %3433 = vmatpush.bf16.msrb.mxu0 %v4606_v13  ;;  %3446 = vmatpush.bf16.msrb.mxu1 %v4614_v14  ;;  %v2072_v24 = vpop.f32.mrf.mxu0  ;;  %v2085_v23 = vpop.f32.mrf.mxu1  ;;  %v1850_v14 = vperm.slane %v5442_v27, 2  ;;  %v4599_v21 = vld [vmem:[%s4991_s21 + $0x280] sm:$0xff] }
 0xab5   : > { %v4638_v23 = vld [vmem:[%s4991_s21 + $0x3b8] sm:$0xff] }
 0xab6   : > { %v2259_v26 = vpack.c.bf16 %v2243_v31, %v2243_v31  ;;  %v2260_v30 = vpack.c.bf16 %v2244_v22, %v2244_v22  ;;  %v4607_v31 = vld [vmem:[%s4991_s21 + $0x2c0] sm:$0xff] }
 0xab8   : > { %3434 = vmatpush.bf16.msrb.mxu0 %v4605_v10  ;;  %3447 = vmatpush.bf16.msrb.mxu1 %v4613_v25  ;;  %v4646_v10 = vld [vmem:[%s4991_s21 + $0x3f8] sm:$0xff]  ;;  %v4584_v25 = vld [vmem:[%s4991_s21 + $0x208] sm:$0xff] }
 0xab9   : > { %3311 = vmatmul.bf16.vlgmr.msra.gmra.mxu2 %v2259_v26  ;;  %3324 = vmatmul.bf16.vlgmr.msra.gmra.mxu3 %v2260_v30  ;;  %v2046_v34 = vpop.f32.mrf.mxu2  ;;  %v2059_v35 = vpop.f32.mrf.mxu3  ;;  %v4592_v26 = vld [vmem:[%s4991_s21 + $0x248] sm:$0xff]  ;;  %v1848_v30 = vperm.slane %v5442_v27, 0 }
 0xaba   : > { %3407 = vmatpush.bf16.msra.mxu2 %v4590_v28  ;;  %3420 = vmatpush.bf16.msra.mxu3 %v4598_v29  ;;  %v1849_v28 = vperm.slane %v5442_v27, 1 }
 0xabc   : > { %3435 = vmatpush.bf16.msrb.mxu0 %v4604_v32  ;;  %3448 = vmatpush.bf16.msrb.mxu1 %v4612_v33  ;;  %v2122_v40 = vpop.f32.mrf.mxu0  ;;  %v2135_v41 = vpop.f32.mrf.mxu1 }
 0xabd   : > { %v2123_v44 = vadd.f32 %v2122_v40, %v1846_v36  ;;  %v2136_v45 = vadd.f32 %v2135_v41, %v1847_v37  ;;  %v4637_v37 = vld [vmem:[%s4991_s21 + $0x3b0] sm:$0xff]  ;;  %v4583_v41 = vld [vmem:[%s4991_s21 + $0x200] sm:$0xff] }
 0xabe   : > { %3408 = vmatpush.bf16.msra.mxu2 %v4589_v38  ;;  %3421 = vmatpush.bf16.msra.mxu3 %v4597_v39  ;;  %v4645_v38 = vld [vmem:[%s4991_s21 + $0x3f0] sm:$0xff] }
 0xabf   : > { %v2249_v50 = vmax.f32 %v2123_v44, 0.0  ;;  %v2250_v51 = vmax.f32 %v2136_v45, 0.0  ;;  %v4630_v44 = vld [vmem:[%s4991_s21 + $0x378] sm:$0xff] }
 0xac0   : > { %3436 = vmatpush.bf16.msrb.mxu0 %v4603_v42  ;;  %3449 = vmatpush.bf16.msrb.mxu1 %v4611_v43  ;;  %v4591_v42 = vld [vmem:[%s4991_s21 + $0x240] sm:$0xff]  ;;  %v4622_v43 = vld [vmem:[%s4991_s21 + $0x338] sm:$0xff] }
 0xac1   : > { %v2265_v54 = vpack.c.bf16 %v2249_v50, %v2249_v50  ;;  %v2266_v55 = vpack.c.bf16 %v2250_v51, %v2250_v51  ;;  %v2096_v56 = vpop.f32.mrf.mxu2  ;;  %v2109_v57 = vpop.f32.mrf.mxu3  ;;  %v4644_v50 = vld [vmem:[%s4991_s21 + $0x3e8] sm:$0xff] }
 0xac2   : > { %3409 = vmatpush.bf16.msra.mxu2 %v4588_v46  ;;  %3422 = vmatpush.bf16.msra.mxu3 %v4596_v47  ;;  %v2097_v58 = vadd.f32 %v2096_v56, %v1844_v48  ;;  %v2110_v59 = vadd.f32 %v2109_v57, %v1845_v49  ;;  %v4636_v49 = vld [vmem:[%s4991_s21 + $0x3a8] sm:$0xff]  ;;  %v4635_v57 = vld [vmem:[%s4991_s21 + $0x3a0] sm:$0xff] }
 0xac3   : > { %3389 = vmatmul.bf16.vlgmr.msra.gmra.mxu0 %v2265_v54  ;;  %3402 = vmatmul.bf16.vlgmr.msra.gmra.mxu1 %v2266_v55  ;;  %v4629_v54 = vld [vmem:[%s4991_s21 + $0x370] sm:$0xff] }
 0xac4   : > { %v2247_v62 = vmax.f32 %v2097_v58, 0.0  ;;  %v2248_v63 = vmax.f32 %v2110_v59, 0.0  ;;  %3437 = vmatpush.bf16.msrb.mxu0 %v4602_v52  ;;  %3450 = vmatpush.bf16.msrb.mxu1 %v4610_v53  ;;  %v2124_v0 = vpop.f32.mrf.mxu0  ;;  %v2137_v1 = vpop.f32.mrf.mxu1  ;;  %v4621_v53 = vld [vmem:[%s4991_s21 + $0x330] sm:$0xff]  ;;  %v4643_v58 = vld [vmem:[%s4991_s21 + $0x3e0] sm:$0xff]  ;;  %v4620_v59 = vld [vmem:[%s4991_s21 + $0x328] sm:$0xff] }
 0xac5   : > { %v4642_v0 = vld [vmem:[%s4991_s21 + $0x3d8] sm:$0xff]  ;;  %v4619_v1 = vld [vmem:[%s4991_s21 + $0x320] sm:$0xff] }
 0xac6   : > { %v2263_v3 = vpack.c.bf16 %v2247_v62, %v2247_v62  ;;  %v2264_v4 = vpack.c.bf16 %v2248_v63, %v2248_v63  ;;  %3410 = vmatpush.bf16.msra.mxu2 %v4587_v60  ;;  %3423 = vmatpush.bf16.msra.mxu3 %v4595_v61  ;;  %v4628_v60 = vld [vmem:[%s4991_s21 + $0x368] sm:$0xff]  ;;  %v4634_v63 = vld [vmem:[%s4991_s21 + $0x398] sm:$0xff] }
 0xac8   : > { %3438 = vmatpush.bf16.msrb.mxu0 %v4601_v8  ;;  %3451 = vmatpush.bf16.msrb.mxu1 %v4609_v2  ;;  %v4627_v8 = vld [vmem:[%s4991_s21 + $0x360] sm:$0xff] }
 0xac9   : > { %3363 = vmatmul.bf16.vlgmr.msrb.gmra.mxu2 %v2263_v3  ;;  %3376 = vmatmul.bf16.vlgmr.msrb.gmra.mxu3 %v2264_v4  ;;  %v2098_v12 = vpop.f32.mrf.mxu2  ;;  %v2111_v13 = vpop.f32.mrf.mxu3  ;;  %v4633_v4 = vld [vmem:[%s4991_s21 + $0x390] sm:$0xff] }
 0xaca   : > { %3411 = vmatpush.bf16.msra.mxu2 %v4586_v5  ;;  %3424 = vmatpush.bf16.msra.mxu3 %v4594_v6  ;;  %v4641_v5 = vld [vmem:[%s4991_s21 + $0x3d0] sm:$0xff]  ;;  %v1854_v6 = vperm.slane %v5442_v27, 6  ;;  %v4626_v12 = vld [vmem:[%s4991_s21 + $0x358] sm:$0xff] }
 0xacc   : > { %3439 = vmatpush.bf16.msrb.mxu0 %v4600_v9  ;;  %3452 = vmatpush.bf16.msrb.mxu1 %v4608_v11  ;;  %v2174_v19 = vpop.f32.mrf.mxu0  ;;  %v2187_v20 = vpop.f32.mrf.mxu1  ;;  %v1855_v9 = vperm.slane %v5442_v27, 7  ;;  %v4618_v11 = vld [vmem:[%s4991_s21 + $0x318] sm:$0xff] }
 0xacd   : > { %v2175_v22 = vadd.f32 %v2174_v19, %v1850_v14  ;;  %v2188_v24 = vadd.f32 %v2187_v20, %v1851_v15  ;;  %v4632_v15 = vld [vmem:[%s4991_s21 + $0x388] sm:$0xff]  ;;  %v4617_v20 = vld [vmem:[%s4991_s21 + $0x310] sm:$0xff] }
 0xace   : > { %3412 = vmatpush.bf16.msra.mxu2 %v4585_v16  ;;  %3425 = vmatpush.bf16.msra.mxu3 %v4593_v17  ;;  %v4640_v16 = vld [vmem:[%s4991_s21 + $0x3c8] sm:$0xff] }
 0xacf   : > { %v2253_v29 = vmax.f32 %v2175_v22, 0.0  ;;  %v2254_v32 = vmax.f32 %v2188_v24, 0.0  ;;  %v1853_v22 = vperm.slane %v5442_v27, 5 }
 0xad0   : > { %3440 = vmatpush.bf16.msrb.mxu0 %v4599_v21  ;;  %3453 = vmatpush.bf16.msrb.mxu1 %v4607_v31  ;;  %v4625_v21 = vld [vmem:[%s4991_s21 + $0x350] sm:$0xff]  ;;  %v1852_v31 = vperm.slane %v5442_v27, 4 }
 0xad1   : > { %v2269_v33 = vpack.c.bf16 %v2253_v29, %v2253_v29  ;;  %v2270_v34 = vpack.c.bf16 %v2254_v32, %v2254_v32  ;;  %v2148_v35 = vpop.f32.mrf.mxu2  ;;  %v2161_v36 = vpop.f32.mrf.mxu3  ;;  %v4624_v29 = vld [vmem:[%s4991_s21 + $0x348] sm:$0xff] }
 0xad2   : > { %3413 = vmatpush.bf16.msra.mxu2 %v4584_v25  ;;  %3426 = vmatpush.bf16.msra.mxu3 %v4592_v26  ;;  %v2149_v39 = vadd.f32 %v2148_v35, %v1848_v30  ;;  %v2162_v40 = vadd.f32 %v2161_v36, %v1849_v28  ;;  %v4639_v25 = vld [vmem:[%s4991_s21 + $0x3c0] sm:$0xff]  ;;  %v4616_v28 = vld [vmem:[%s4991_s21 + $0x308] sm:$0xff] }
 0xad3   : > { %3441 = vmatmul.bf16.vlgmr.msrb.gmra.mxu0 %v2269_v33  ;;  %3454 = vmatmul.bf16.vlgmr.msrb.gmra.mxu1 %v2270_v34  ;;  %v4615_v35 = vld [vmem:[%s4991_s21 + $0x300] sm:$0xff] }
 0xad4   : > { %3485 = vmatpush.bf16.msra.mxu0 %v4638_v23  ;;  %3498 = vmatpush.bf16.msra.mxu1 %v4646_v10  ;;  %v2251_v45 = vmax.f32 %v2149_v39, 0.0  ;;  %v2252_v46 = vmax.f32 %v2162_v40, 0.0  ;;  %v2176_v47 = vpop.f32.mrf.mxu0  ;;  %v2189_v48 = vpop.f32.mrf.mxu1  ;;  %v4631_v10 = vld [vmem:[%s4991_s21 + $0x380] sm:$0xff] }
 0xad5   : > { %v4623_v36 = vld [vmem:[%s4991_s21 + $0x340] sm:$0xff] }
 0xad6   : > { %v2267_v51 = vpack.c.bf16 %v2251_v45, %v2251_v45  ;;  %v2268_v52 = vpack.c.bf16 %v2252_v46, %v2252_v46  ;;  %3414 = vmatpush.bf16.msra.mxu2 %v4583_v41  ;;  %3427 = vmatpush.bf16.msra.mxu3 %v4591_v42 }
 0xad8   : > { %3486 = vmatpush.bf16.msra.mxu0 %v4637_v37  ;;  %3499 = vmatpush.bf16.msra.mxu1 %v4645_v38 }
 0xad9   : > { %v2150_v55 = vpop.f32.mrf.mxu2  ;;  %v2163_v56 = vpop.f32.mrf.mxu3  ;;  %3415 = vmatmul.bf16.vlgmr.msra.gmra.mxu2 %v2267_v51  ;;  %3428 = vmatmul.bf16.vlgmr.msra.gmra.mxu3 %v2268_v52 }
 0xada   : > { %3459 = vmatpush.bf16.msrb.mxu2 %v4622_v43  ;;  %3472 = vmatpush.bf16.msrb.mxu3 %v4630_v44 }
 0xadc   : > { %3487 = vmatpush.bf16.msra.mxu0 %v4636_v49  ;;  %3500 = vmatpush.bf16.msra.mxu1 %v4644_v50  ;;  %v2226_v61 = vpop.f32.mrf.mxu0  ;;  %v2239_v62 = vpop.f32.mrf.mxu1 }
 0xadd   : > { %v2227_v17 = vadd.f32 %v2226_v61, %v1854_v6  ;;  %v2240_v19 = vadd.f32 %v2239_v62, %v1855_v9 }
 0xade   : > { %3460 = vmatpush.bf16.msrb.mxu2 %v4621_v53  ;;  %3473 = vmatpush.bf16.msrb.mxu3 %v4629_v54  ;;  %v4706_v53 = vld [vmem:[%s659_s28] ss:$0 sm:$0xff] }
 0xadf   : > { %v2257_v26 = vmax.f32 %v2227_v17, 0.0  ;;  %v2258_v30 = vmax.f32 %v2240_v19, 0.0 }
 0xae0   : > { %3488 = vmatpush.bf16.msra.mxu0 %v4635_v57  ;;  %3501 = vmatpush.bf16.msra.mxu1 %v4643_v58 }
 0xae1   : > { %v2200_v2 = vpop.f32.mrf.mxu2  ;;  %v2213_v3 = vpop.f32.mrf.mxu3  ;;  %v2273_v34 = vpack.c.bf16 %v2257_v26, %v2257_v26  ;;  %v2274_v27 = vpack.c.bf16 %v2258_v30, %v2258_v30 }
 0xae2   : > { %3461 = vmatpush.bf16.msrb.mxu2 %v4620_v59  ;;  %3474 = vmatpush.bf16.msrb.mxu3 %v4628_v60  ;;  %v2201_v32 = vadd.f32 %v2200_v2, %v1852_v31  ;;  %v2214_v33 = vadd.f32 %v2213_v3, %v1853_v22 }
 0xae4   : > { %3489 = vmatpush.bf16.msra.mxu0 %v4634_v63  ;;  %3502 = vmatpush.bf16.msra.mxu1 %v4642_v0  ;;  %v2228_v13 = vpop.f32.mrf.mxu0  ;;  %v2241_v14 = vpop.f32.mrf.mxu1  ;;  %v2255_v37 = vmax.f32 %v2201_v32, 0.0  ;;  %v2256_v38 = vmax.f32 %v2214_v33, 0.0 }
 0xae6   : > { %3462 = vmatpush.bf16.msrb.mxu2 %v4619_v1  ;;  %3475 = vmatpush.bf16.msrb.mxu3 %v4627_v8  ;;  %v2271_v39 = vpack.c.bf16 %v2255_v37, %v2255_v37  ;;  %v2272_v40 = vpack.c.bf16 %v2256_v38, %v2256_v38 }
 0xae8   : > { %3490 = vmatpush.bf16.msra.mxu0 %v4633_v4  ;;  %3503 = vmatpush.bf16.msra.mxu1 %v4641_v5 }
 0xae9   : > { %v2202_v24 = vpop.f32.mrf.mxu2  ;;  %v2215_v23 = vpop.f32.mrf.mxu3 }
 0xaea   : > { %3463 = vmatpush.bf16.msrb.mxu2 %v4618_v11  ;;  %3476 = vmatpush.bf16.msrb.mxu3 %v4626_v12 }
 0xaec   : > { %3491 = vmatpush.bf16.msra.mxu0 %v4632_v15  ;;  %3504 = vmatpush.bf16.msra.mxu1 %v4640_v16 }
 0xaee   : > { %3464 = vmatpush.bf16.msrb.mxu2 %v4617_v20  ;;  %3477 = vmatpush.bf16.msrb.mxu3 %v4625_v21 }
 0xaf0   : > { %3492 = vmatpush.bf16.msra.mxu0 %v4631_v10  ;;  %3505 = vmatpush.bf16.msra.mxu1 %v4639_v25 }
 0xaf2   : > { %3465 = vmatpush.bf16.msrb.mxu2 %v4616_v28  ;;  %3478 = vmatpush.bf16.msrb.mxu3 %v4624_v29 }
 0xaf3   : > { %3493 = vmatmul.bf16.vlgmr.msra.gmra.mxu0 %v2273_v34  ;;  %3506 = vmatmul.bf16.vlgmr.msra.gmra.mxu1 %v2274_v27 }
 0xaf6   : > { %3466 = vmatpush.bf16.msrb.mxu2 %v4615_v35  ;;  %3479 = vmatpush.bf16.msrb.mxu3 %v4623_v36 }
 0xaf9   : > { %3467 = vmatmul.bf16.vlgmr.msrb.gmra.mxu2 %v2271_v39  ;;  %3480 = vmatmul.bf16.vlgmr.msrb.gmra.mxu3 %v2272_v40 }
 0xb30   : > { %v3338_v41 = vpop.f32.mrf.mxu0  ;;  %v3351_v42 = vpop.f32.mrf.mxu1 }
 0xb38   : > { %v3340_v43 = vpop.f32.mrf.mxu0  ;;  %v3353_v44 = vpop.f32.mrf.mxu1 }
 0xb39   : > { %v4707_v43 = vld [vmem:[%s662_s26] ss:$0 sm:$0xff] }
 0xb3c   : > { %v3312_v45 = vpop.f32.mrf.mxu2  ;;  %v3325_v46 = vpop.f32.mrf.mxu3 }
 0xb3d   : > { %v3313_v56 = vadd.f32 %v4706_v53, %v3312_v45 }
 0xb3f   : > { %v3326_v59 = vadd.f32 %v3325_v46, %v3313_v56 }
 0xb40   : > { %v3390_v47 = vpop.f32.mrf.mxu0  ;;  %v3403_v48 = vpop.f32.mrf.mxu1 }
 0xb41   : > { %v3339_v62 = vadd.f32 %v3338_v41, %v3326_v59 }
 0xb43   : > { %v3352_v1 = vadd.f32 %v3351_v42, %v3339_v62 }
 0xb44   : > { %v3314_v49 = vpop.f32.mrf.mxu2  ;;  %v3327_v50 = vpop.f32.mrf.mxu3 }
 0xb48   : > { %v3392_v51 = vpop.f32.mrf.mxu0  ;;  %v3405_v52 = vpop.f32.mrf.mxu1 }
 0xb4c   : > { %v3364_v54 = vpop.f32.mrf.mxu2  ;;  %v3377_v55 = vpop.f32.mrf.mxu3 }
 0xb4d   : > { %v3365_v3 = vadd.f32 %v3364_v54, %v3352_v1 }
 0xb4f   : > { %v3378_v4 = vadd.f32 %v3377_v55, %v3365_v3 }
 0xb50   : > { %v3442_v57 = vpop.f32.mrf.mxu0  ;;  %v3455_v58 = vpop.f32.mrf.mxu1 }
 0xb51   : > { %v3391_v9 = vadd.f32 %v3390_v47, %v3378_v4 }
 0xb53   : > { %v3404_v11 = vadd.f32 %v3403_v48, %v3391_v9 }
 0xb54   : > { %v3366_v60 = vpop.f32.mrf.mxu2  ;;  %v3379_v61 = vpop.f32.mrf.mxu3 }
 0xb58   : > { %v3444_v63 = vpop.f32.mrf.mxu0  ;;  %v3457_v0 = vpop.f32.mrf.mxu1 }
 0xb5c   : > { %v3416_v8 = vpop.f32.mrf.mxu2  ;;  %v3429_v2 = vpop.f32.mrf.mxu3 }
 0xb5d   : > { %v3417_v12 = vadd.f32 %v3416_v8, %v3404_v11 }
 0xb5f   : > { %v3430_v15 = vadd.f32 %v3429_v2, %v3417_v12 }
 0xb61   : > { %v3443_v16 = vadd.f32 %v3442_v57, %v3430_v15 }
 0xb63   : > { %v3456_v20 = vadd.f32 %v3455_v58, %v3443_v16 }
 0xb64   : > { %v3418_v5 = vpop.f32.mrf.mxu2  ;;  %v3431_v6 = vpop.f32.mrf.mxu3 }
 0xb70   : > { %v3494_v13 = vpop.f32.mrf.mxu0  ;;  %v3507_v14 = vpop.f32.mrf.mxu1 }
 0xb78   : > { %v3496_v17 = vpop.f32.mrf.mxu0  ;;  %v3509_v19 = vpop.f32.mrf.mxu1 }
 0xb7c   : > { %v3468_v21 = vpop.f32.mrf.mxu2  ;;  %v3481_v31 = vpop.f32.mrf.mxu3 }
 0xb7d   : > { %v3469_v22 = vadd.f32 %v3468_v21, %v3456_v20 }
 0xb7f   : > { %v3482_v24 = vadd.f32 %v3481_v31, %v3469_v22 }
 0xb81   : > { %v3495_v23 = vadd.f32 %v3494_v13, %v3482_v24 }
 0xb83   : > { %v3508_v10 = vadd.f32 %v3507_v14, %v3495_v23 }
 0xb84   : > { %v3470_v25 = vpop.f32.mrf.mxu2  ;;  %v3483_v26 = vpop.f32.mrf.mxu3 }
 0xb85   : > { %v3511_v30 = vadd.f32 %v3508_v10, %v5279_v18 }
 0xb87   : > { %v3514_v28 = vsel %vm715_vm4, %v3511_v30, 0.0 }
 0xb88   : > { %3515 = vadd.xlane.f32.xlu2 %v3514_v28 }
 0xbfb   : > { %v3516_v29 = vpop.xlane.xlu2 %3515 }
 0xbfc   : > { %v3517_v32 = vmul.f32 %v3516_v29, %v5222_v7 }
 0xbfe   : > { %v3518_v33 = vsub.f32 %v3511_v30, %v3517_v32 }
 0xc00   : > { %v3519_v34 = vmul.f32 %v3518_v33, %v3518_v33 }
 0xc02   : > { %v3520_v27 = vsel %vm715_vm4, %v3519_v34, 0.0 }
 0xc03   : > { %3521 = vadd.xlane.f32.xlu0 %v3520_v27 }
 0xc76   : > { %v3522_v35 = vpop.xlane.xlu0 %3521 }
 0xc77   : > { %v3523_v36 = vmul.f32 %v3522_v35, %v5222_v7  ;;  %v4708_v7 = vld [vmem:[%s665_s1] ss:$0 sm:$0xff] }
 0xc79   : > { %v3524_v37 = vadd.f32 1e-05, %v3523_v36 }
 0xc7b   : > { %4777 = vrsqrt.f32 %v3524_v37  ;;  %vm3531_vm0 = vweird.f32 %v3524_v37 }
 0xc81   : > { %v4778_v38 = vpop.eup %4777 }
 0xc82   : > { %v3526_v18 = vmul.f32 %v4778_v38, %v3524_v37  ;;  %vm3532_vm15 = vweird.f32 %v4778_v38 }
 0xc83   : > { %vm3533_vm1 = vmor %vm3531_vm0, %vm3532_vm15 }
 0xc84   : > { %v3527_v39 = vmul.f32 %v4778_v38, %v3526_v18 }
 0xc86   : > { %v3528_v40 = vmul.f32 0.5, %v3527_v39 }
 0xc88   : > { %v3529_v41 = vsub.f32 1.5, %v3528_v40 }
 0xc8a   : > { %v3530_v42 = vmul.f32 %v4778_v38, %v3529_v41 }
 0xc8c   : > { %v3534_v44 = vsel %vm3533_vm1, %v4778_v38, %v3530_v42 }
 0xc8d   : > { %v3535_v45 = vmul.f32 %v3534_v44, %v3518_v33 }
 0xc8f   : > { %v3539_v46 = vmul.f32 %v4707_v43, %v3535_v45  ;;  %3548 = sbr.rel (%p4476_p8) target bundleno = 3232 (0xca0), region = 84 }
 0xc91   : > { %v3543_v47 = vadd.f32 %v4708_v7, %v3539_v46 }
 0xc93   : > { %3544 = vst.msk [vmem:[#allocation2] sm:$0xff] %vm715_vm4, %v3543_v47 }
 0xc94   : > { %v3550_v48 = vrot.slane %v3543_v47, 2  ;;  %v3551_v49 = vrot.slane %v3543_v47, 4  ;;  %v3552_v50 = vrot.slane %v3543_v47, 6  ;;  %vm3556_vm2 = vcmask 254976  }
 0xc95   : > { %v3557_v51 = vsel %vm3556_vm2, %v3543_v47, 0.0 }
 0xc96   : > { %v3558_v52 = vsel %vm3556_vm2, %v3550_v48, 0.0  ;;  %v3560_v53 = vsel %vm3556_vm2, %v3551_v49, 0.0  ;;  %v3562_v55 = vsel %vm3556_vm2, %v3552_v50, 0.0 }
 0xc97   : > { %v3559_v54 = vadd.f32 %v3558_v52, %v3557_v51 }
 0xc99   : > { %v3561_v56 = vadd.f32 %v3560_v53, %v3559_v54 }
 0xc9b   : > { %v3563_v57 = vadd.f32 %v3562_v55, %v3561_v56 }
 0xc9d   : > { %v3564_v58 = vmul.f32 0.125, %v3563_v57 }
 0xc9f   : > { %3565 = vst.msk [vmem:[%s5008_s9] sm:$0x3] %vm3556_vm2, %v3564_v58 }
 0xca0 PF: > { %s5580_s20 = sld [smem:[#allocation6_spill]] }
 0xca1   : > { %s5581_s29 = sld [smem:[#allocation4_spill]] }
 0xca2   : > { %s5582_s30 = sld [smem:[#allocation5_spill]] }
 0xca3   : > { %s5583_s15 = sld [smem:[#allocation7_spill]] }
 0xca4   : > { %s5584_s16 = sld [smem:[#allocation8_spill]] }
 0xca6   : > { %s24_s17 = sadd.s32 1, %s5580_s20  }
 0xca7   : > { %p21_p9 = scmp.ge.s32.totalorder %s24_s17, 6  }
 0xca9   :  { %23 = sbr.rel (!%p21_p9) target bundleno = 8 (0x8), region = 162 }

</bundles_post_ra>
